<compile_context>
chip_gen: v6e
topology: v6e:2x2x1
jax: 0.10.0
libtpu: 0.0.40
codegen_flags: <defaults>
</compile_context>

<pallas_src>
import jax
import jax.numpy as jnp
from jax.experimental import pallas as pl
from jax.experimental.pallas import tpu as pltpu

FC1_PAD = 512   # fc1 output lanes (500 real + 12 zero pad)
FC2_PAD = 128   # fc2 output lanes (10 real + 118 pad, bias -1e30)
C2_PAD = 128    # conv2 output channels (50 real + 78 zero pad) -> lane-dense store


# ----------------------------- Pallas kernels -------------------------------

def _conv1_relu_pool_kernel(p_ref, w_ref, b_ref, o_ref):
    """Fused conv1 (im2col matmul) + bias + ReLU + 2x2 max-pool.

    p_ref: (4, TM, 25) im2col patches, one slab per 2x2 pool tap
    w_ref: (25, 20)    matmul-layout conv weight
    b_ref: (1, 20)     f32 bias
    o_ref: (TM, 20)    pooled, ReLU'd activations (compute dtype)

    relu(maxpool(conv)) == relu(max_t(patches_t @ W) + b): bias identical per tap
    and ReLU monotone, so the pool costs three elementwise maxes, no extra HBM.
    """
    w = w_ref[...]
    y = jnp.dot(p_ref[0], w, preferred_element_type=jnp.float32)
    for t in range(1, 4):
        y = jnp.maximum(y, jnp.dot(p_ref[t], w, preferred_element_type=jnp.float32))
    y = jnp.maximum(y + b_ref[...], 0.0)          # bias + ReLU in f32
    o_ref[...] = y.astype(o_ref.dtype)


def _conv2_relu_pool_kernel(xr_ref, w_ref, b_ref, o_ref):
    """Fused conv2: in-kernel kernel-row accumulation + bias + ReLU + 2x2 max-pool.

    xr_ref: (TB, 12, 8, 100) row-direction im2col slab (columns = kj*IC + ic)
    w_ref:  (5, 100, 128)    one matmul RHS per kernel row, OC padded to 128
    b_ref:  (1, 128)         f32 bias (zeros on padded channels)
    o_ref:  (TB, 16, 128)    pooled activations, (ph*4+pw, padded-c) layout

    The 5 LHS slices are static pl.ds windows along an outer dim (free indexing),
    the reshape to (TB*64, 100) keeps the sublane dim at exactly 8 (metadata only),
    and the pooling relayouts only touch the tiny post-matmul activations.
    """
    tb, h, ow, kwic = xr_ref.shape
    kh, _, oc = w_ref.shape
    oh = h - kh + 1                                   # 8 unpooled output rows
    m = tb * oh * ow
    acc = None
    for ki in range(kh):                              # 5 accumulated MXU matmuls
        lhs = xr_ref[:, pl.ds(ki, oh), :, :].reshape(m, kwic)
        y = jnp.dot(lhs, w_ref[ki], preferred_element_type=jnp.float32)
        acc = y if acc is None else acc + y
    y = jnp.maximum(acc + b_ref[...], 0.0)            # bias + ReLU, f32
    # 2x2 max-pool. rows: split flat rows into (b*ph, dh, ow) with the minor piece
    # kept at 8 sublanes -> metadata reshape + outer-dim max (cheap).
    y = y.reshape(tb * (oh // 2), 2, ow, oc)
    y = jnp.max(y, axis=1)                            # (tb*4, 8, oc)
    y = y.astype(o_ref.dtype)                         # bf16 before the small relayouts
    # columns: tiny sublane relayout (post-matmul data only), then compact.
    y = y.reshape(tb * (oh // 2), ow // 2, 2, oc)
    y = jnp.max(y, axis=2)                            # (tb*4, 4, oc)
    o_ref[...] = y.reshape(tb, (oh // 2) * (ow // 2), oc)


def _mlp_head_kernel(x_ref, w1_ref, b1_ref, w2_ref, b2_ref, o_ref):
    """Fused fc1 + ReLU + fc2 + log_softmax on one (TB, *) batch tile.

    x_ref: (TB, 2048) bf16/f32, w1: (2048, 512), b1: (1, 512),
    w2: (512, 128), b2: (1, 128) with -1e30 on the 118 padded logit lanes,
    o_ref: (TB, 128) f32 log-probabilities (first 10 lanes valid).
    """
    h = jnp.dot(x_ref[...], w1_ref[...], preferred_element_type=jnp.float32)
    h = jnp.maximum(h + b1_ref[...], 0.0)                       # f32 epilogue
    logits = jnp.dot(h.astype(w2_ref.dtype), w2_ref[...],
                     preferred_element_type=jnp.float32) + b2_ref[...]
    m = jnp.max(logits, axis=1, keepdims=True)                  # padded lanes = -1e30
    s = logits - m
    lse = jnp.log(jnp.sum(jnp.exp(s), axis=1, keepdims=True))   # exp(pad) == 0
    o_ref[...] = s - lse


# ----------------------------- kernel wrappers -------------------------------

def _pick_tile(m, target, gran):
    """Largest divisor of m that is a multiple of `gran`, <= target, and (when
    possible) leaves >= 2 grid blocks (v7x has 2 TensorCores); falls back to m."""
    cands = [t for t in range(gran, m + 1, gran) if m % t == 0]
    good = [t for t in cands if t <= target and (t < m or m <= gran)]
    if good:
        return max(good)
    if cands:
        return min(cands)
    return m          # awkward m (e.g. tiny/odd batch): single block, full extent


def _cparams():
    # 48 MiB scoped VMEM: above v5e's 16 MiB default, below v7x's 64 MiB physical.
    return pltpu.CompilerParams(dimension_semantics=("parallel",),
                                vmem_limit_bytes=48 << 20)


def pallas_conv1_relu_pool(p_taps, w, b, *, tile_rows=2048):
    """p_taps: (4, M, 25), w: (25, 20), b: (1, 20)  ->  (M, 20) pooled activations."""
    _, M, K = p_taps.shape
    K2, OC = w.shape
    assert K == K2
    tm = _pick_tile(M, tile_rows, 16)
    itemsize = p_taps.dtype.itemsize
    cost = pl.CostEstimate(
        flops=2 * 4 * M * K * OC,
        transcendentals=0,
        bytes_accessed=4 * M * K * itemsize + K * OC * itemsize + M * OC * itemsize)
    return pl.pallas_call(
        _conv1_relu_pool_kernel,
        out_shape=jax.ShapeDtypeStruct((M, OC), p_taps.dtype),
        grid=(M // tm,),
        in_specs=[
            pl.BlockSpec((4, tm, K), lambda i: (0, i, 0)),
            pl.BlockSpec((K, OC), lambda i: (0, 0)),
            pl.BlockSpec((1, OC), lambda i: (0, 0)),
        ],
        out_specs=pl.BlockSpec((tm, OC), lambda i: (i, 0)),
        compiler_params=_cparams(),
        cost_estimate=cost,
    )(p_taps, w, b)


def pallas_conv2_relu_pool(xr, w, b, *, tile_imgs=128):
    """xr: (B, 12, 8, 100), w: (5, 100, 128), b: (1, 128)  ->  (B, 16, 128)."""
    B, H, OW, KWIC = xr.shape
    KH, K, OC = w.shape
    assert K == KWIC
    OH = H - KH + 1
    POOL = (OH // 2) * (OW // 2)
    tb = _pick_tile(B, tile_imgs, 8)
    itemsize = xr.dtype.itemsize
    cost = pl.CostEstimate(
        flops=2 * KH * B * OH * OW * K * OC,
        transcendentals=0,
        bytes_accessed=B * H * OW * KWIC * itemsize + KH * K * OC * itemsize
                       + B * POOL * OC * itemsize)
    return pl.pallas_call(
        _conv2_relu_pool_kernel,
        out_shape=jax.ShapeDtypeStruct((B, POOL, OC), xr.dtype),
        grid=(B // tb,),
        in_specs=[
            pl.BlockSpec((tb, H, OW, KWIC), lambda i: (i, 0, 0, 0)),
            pl.BlockSpec((KH, K, OC), lambda i: (0, 0, 0)),
            pl.BlockSpec((1, OC), lambda i: (0, 0)),
        ],
        out_specs=pl.BlockSpec((tb, POOL, OC), lambda i: (i, 0, 0)),
        compiler_params=_cparams(),
        cost_estimate=cost,
    )(xr, w, b)


def pallas_mlp_head(x, w1, b1, w2, b2, *, tile_rows=512):
    """Fused fc1+ReLU+fc2+log_softmax.  x: (B, 2048) -> (B, FC2_PAD) f32."""
    B, K1 = x.shape
    _, N1 = w1.shape
    _, N2 = w2.shape
    tb = _pick_tile(B, tile_rows, 16)
    itemsize = x.dtype.itemsize
    cost = pl.CostEstimate(
        flops=2 * B * K1 * N1 + 2 * B * N1 * N2,
        transcendentals=B * (N2 + 1),
        bytes_accessed=B * K1 * itemsize + K1 * N1 * itemsize + N1 * N2 * itemsize
                       + B * N2 * 4)
    return pl.pallas_call(
        _mlp_head_kernel,
        out_shape=jax.ShapeDtypeStruct((B, N2), jnp.float32),
        grid=(B // tb,),
        in_specs=[
            pl.BlockSpec((tb, K1), lambda i: (i, 0)),
            pl.BlockSpec((K1, N1), lambda i: (0, 0)),
            pl.BlockSpec((1, N1), lambda i: (0, 0)),
            pl.BlockSpec((N1, N2), lambda i: (0, 0)),
            pl.BlockSpec((1, N2), lambda i: (0, 0)),
        ],
        out_specs=pl.BlockSpec((tb, N2), lambda i: (i, 0)),
        compiler_params=_cparams(),
        cost_estimate=cost,
    )(x, w1, b1, w2, b2)


# ------------------------------- glue (JAX) ----------------------------------

def _im2col_pool_taps(x, kh, kw):
    """x: (B,H,W,C) NHWC -> (4, B*OHP*OWP, KH*KW*C) im2col slabs, one per 2x2 pool tap.

    Tap (ti,tj) of pooled output (po,qo) is the conv patch starting at
    (2*po+ti, 2*qo+tj); the kernel maxes the 4 tap matmuls, fusing the pool.
    Kept in XLA for conv1 only (IC == 1 makes in-kernel assembly lane-starved).
    """
    B, H, W, C = x.shape
    oh, ow = H - kh + 1, W - kw + 1
    ohp, owp = oh // 2, ow // 2
    taps = []
    for ti in range(2):
        for tj in range(2):
            cols = []
            for ki in range(kh):
                for kj in range(kw):
                    i0, j0 = ti + ki, tj + kj
                    cols.append(x[:, i0:i0 + 2 * ohp:2, j0:j0 + 2 * owp:2, :])
            p = jnp.stack(cols, axis=3)                    # (B, OHP, OWP, KH*KW, C)
            taps.append(p.reshape(B * ohp * owp, kh * kw * C))
    return jnp.stack(taps, axis=0), ohp, owp


def _im2col_rows(x, kw):
    """Row-direction-only im2col: (B,H,W,C) -> (B, H, W-kw+1, kw*C).

    Column index = kj*C + c.  Only ~kw*(W-kw+1)/W (~3.3x) inflation instead of the
    ~11x of full im2col; the kernel-row (ki) unroll happens inside the conv2 kernel.
    """
    B, H, W, C = x.shape
    ow = W - kw + 1
    cols = [x[:, :, j:j + ow, :] for j in range(kw)]
    return jnp.concatenate(cols, axis=-1)                  # (B, H, ow, kw*C)


def init_params(key):
    """Random params in the torch layouts (OIHW conv, (out,in) linear)."""
    ks = jax.random.split(key, 8)
    scale = 0.05
    return {
        "conv1_w": scale * jax.random.normal(ks[0], (20, 1, 5, 5), jnp.float32),
        "conv1_b": scale * jax.random.normal(ks[1], (20,), jnp.float32),
        "conv2_w": scale * jax.random.normal(ks[2], (50, 20, 5, 5), jnp.float32),
        "conv2_b": scale * jax.random.normal(ks[3], (50,), jnp.float32),
        "fc1_w":   scale * jax.random.normal(ks[4], (500, 800), jnp.float32),
        "fc1_b":   scale * jax.random.normal(ks[5], (500,), jnp.float32),
        "fc2_w":   scale * jax.random.normal(ks[6], (10, 500), jnp.float32),
        "fc2_b":   scale * jax.random.normal(ks[7], (10,), jnp.float32),
    }


def prepare_params(params, compute_dtype=jnp.bfloat16):
    """One-time, hoisted weight prep: matmul layouts, flatten permutation, padding.

    Call once; the per-forward path then contains no weight transposes/reshapes.
    """
    cd = compute_dtype
    # conv1: (OC, IC, KH, KW) -> (KH*KW*IC, OC), matching im2col column order.
    w_c1 = jnp.transpose(params["conv1_w"], (2, 3, 1, 0)).reshape(25, 20).astype(cd)
    b_c1 = params["conv1_b"].reshape(1, 20).astype(jnp.float32)

    # conv2: (OC, IC, KH, KW) -> (KH, KW*IC, C2_PAD): one matmul RHS per kernel row,
    # columns ordered (kj, ic) to match the row-im2col slab; OC padded 50 -> 128
    # (zero columns) so the conv2 store is lane-dense and fc1's K becomes 2048.
    w_c2 = jnp.transpose(params["conv2_w"], (2, 3, 1, 0))        # (KH, KW, IC, OC)
    w_c2 = w_c2.reshape(5, 5 * 20, 50)
    w_c2 = jnp.pad(w_c2, ((0, 0), (0, 0), (0, C2_PAD - 50))).astype(cd)
    b_c2 = jnp.pad(params["conv2_b"], (0, C2_PAD - 50)).reshape(1, C2_PAD)
    b_c2 = b_c2.astype(jnp.float32)

    # fc1: torch (500, 800) expects an NCHW (c,h,w) flatten of (B,50,4,4).  The
    # kernel produces (B, ph, pw, c_pad) with c_pad = 128, so fold both the
    # permutation and the channel zero-padding into fc1's input rows (K = 2048),
    # and pad N 500 -> 512 (zero columns -> ReLU(0)=0, zero fc2 rows).
    w1 = params["fc1_w"].reshape(500, 50, 4, 4)                  # (out, c, h, w)
    w1 = jnp.transpose(w1, (2, 3, 1, 0))                         # (h, w, c, out)
    w1 = jnp.pad(w1, ((0, 0), (0, 0), (0, C2_PAD - 50), (0, 0)))
    w1 = w1.reshape(4 * 4 * C2_PAD, 500)
    w1 = jnp.pad(w1, ((0, 0), (0, FC1_PAD - 500))).astype(cd)
    b1 = jnp.pad(params["fc1_b"], (0, FC1_PAD - 500)).reshape(1, FC1_PAD)
    b1 = b1.astype(jnp.float32)

    # fc2: (10, 500) -> (512, 128); padded logit lanes get a -1e30 bias so the
    # fused log-softmax ignores them (exp underflows to exactly 0 in f32).
    w2 = jnp.transpose(params["fc2_w"])                          # (500, 10)
    w2 = jnp.pad(w2, ((0, FC1_PAD - 500), (0, FC2_PAD - 10))).astype(cd)
    b2 = jnp.pad(params["fc2_b"], (0, FC2_PAD - 10), constant_values=-1e30)
    b2 = b2.reshape(1, FC2_PAD).astype(jnp.float32)

    return {"w_conv1": w_c1, "b_conv1": b_c1,
            "w_conv2": w_c2, "b_conv2": b_c2,
            "w_fc1": w1, "b_fc1": b1,
            "w_fc2": w2, "b_fc2": b2}


def net_forward(prep, x_nchw):
    """Pallas forward.  x_nchw: (B, 1, 28, 28) f32 (torch layout) -> (B, 10) f32."""
    B = x_nchw.shape[0]
    cd = prep["w_conv1"].dtype
    # IC == 1: NCHW -> NHWC is a pure metadata reshape (no transpose kernel).
    x = x_nchw.reshape(B, 28, 28, 1).astype(cd)

    # conv1 (1->20, k5) + ReLU + 2x2 pool, fused (XLA 4-tap im2col slabs)
    p, _, _ = _im2col_pool_taps(x, 5, 5)                             # (4, B*144, 25)
    y = pallas_conv1_relu_pool(p, prep["w_conv1"], prep["b_conv1"])  # (B*144, 20)
    y = y.reshape(B, 12, 12, 20)

    # conv2 (20->50, k5) + ReLU + 2x2 pool: row-only im2col slab, the rest in-kernel
    xr = _im2col_rows(y, 5)                                          # (B, 12, 8, 100)
    y = pallas_conv2_relu_pool(xr, prep["w_conv2"], prep["b_conv2"])  # (B, 16, 128)

    # flatten (no transpose: permutation + channel padding are folded into w_fc1)
    y = y.reshape(B, 16 * C2_PAD)                                    # (B, 2048)

    # fc1 + ReLU + fc2 + log_softmax, fused; lane-dense (B, 128) then slice
    out = pallas_mlp_head(y, prep["w_fc1"], prep["b_fc1"],
                          prep["w_fc2"], prep["b_fc2"])              # (B, 128) f32
    return out[:, :10]


# ------------------------------ pure-JAX reference ---------------------------

def net_forward_ref(params, x_nchw, compute_dtype=jnp.float32):
    """Reference of the torch module.  compute_dtype=f32 == original semantics;
    compute_dtype=bf16 mirrors the matmul-input casts of the Pallas path."""
    cd = compute_dtype

    def conv(x, w, b):
        y = jax.lax.conv_general_dilated(
            x.astype(cd), w.astype(cd), (1, 1), "VALID",
            dimension_numbers=("NCHW", "OIHW", "NCHW"),
            preferred_element_type=jnp.float32)
        return jax.nn.relu(y + b[None, :, None, None])

    def pool(x):
        return jax.lax.reduce_window(x, -jnp.inf, jax.lax.max,
                                     (1, 1, 2, 2), (1, 1, 2, 2), "VALID")

    y = pool(conv(x_nchw, params["conv1_w"], params["conv1_b"]))
    y = pool(conv(y, params["conv2_w"], params["conv2_b"]))
    y = y.reshape(y.shape[0], -1)                                    # NCHW flatten
    y = jax.nn.relu(jnp.dot(y.astype(cd), params["fc1_w"].T.astype(cd),
                            preferred_element_type=jnp.float32) + params["fc1_b"])
    y = jnp.dot(y.astype(cd), params["fc2_w"].T.astype(cd),
                preferred_element_type=jnp.float32) + params["fc2_b"]
    return jax.nn.log_softmax(y, axis=1)


# ----------------------------------- main ------------------------------------

if __name__ == "__main__":
    key = jax.random.PRNGKey(0)
    k_x, k_p = jax.random.split(key)
    x = jax.random.normal(k_x, (2, 1, 28, 28), jnp.float32)   # MNIST-sized, NCHW
    params = init_params(k_p)

    compute_dtype = jnp.bfloat16          # MXU inputs; accumulation/epilogues stay f32
    prep = prepare_params(params, compute_dtype)

    fwd = jax.jit(net_forward)
    out = jax.block_until_ready(fwd(prep, x))
    assert out.shape == (2, 10)

    # exact check vs a reference that mirrors the bf16 matmul-input casts
    ref_cd = net_forward_ref(params, x, compute_dtype)
    assert jnp.allclose(out, ref_cd, atol=2e-3, rtol=2e-3), \
        "mismatch vs matched-precision reference"

    # loose sanity check vs the original full-f32 torch semantics (gap = bf16 inputs)
    ref_f32 = net_forward_ref(params, x, jnp.float32)
    assert jnp.allclose(out, ref_f32, atol=5e-2, rtol=5e-2), \
        "mismatch vs f32 reference"

    print("KERNEL_OK")
</pallas_src>

<mosaic_0001>
module attributes {stable_mosaic.version = 11 : i64} {
  func.func @_conv1_relu_pool_kernel(%arg0: i32, %arg1: memref<4x144x25xbf16, #tpu.memory_space<vmem>>, %arg2: memref<25x20xbf16, #tpu.memory_space<vmem>>, %arg3: memref<1x20xf32, #tpu.memory_space<vmem>>, %arg4: memref<144x20xbf16, #tpu.memory_space<vmem>>) attributes {dimension_semantics = [#tpu.dimension_semantics<parallel>], iteration_bounds = array<i64: 2>, scalar_prefetch = 0 : i64, scratch_operands = 0 : i64, tpu.core_type = #tpu.core_type<tc>, window_params = [{transform_indices = @transform_0, window_bounds = array<i64: 4, 144, 25>}, {pipeline_mode = #tpu.pipeline_mode<synchronous>, transform_indices = @transform_1, window_bounds = array<i64: 25, 20>}, {pipeline_mode = #tpu.pipeline_mode<synchronous>, transform_indices = @transform_2, window_bounds = array<i64: 1, 20>}, {transform_indices = @transform_3, window_bounds = array<i64: 144, 20>}]} {
    %c0 = arith.constant 0 : index
    %c0_0 = arith.constant 0 : index
    %0 = vector.load %arg2[%c0, %c0_0] : memref<25x20xbf16, #tpu.memory_space<vmem>>, vector<25x20xbf16>
    %c0_1 = arith.constant 0 : index
    %c0_2 = arith.constant 0 : index
    %c0_3 = arith.constant 0 : index
    %1 = vector.load %arg1[%c0_1, %c0_2, %c0_3] : memref<4x144x25xbf16, #tpu.memory_space<vmem>>, vector<1x144x25xbf16>
    %2 = vector.shape_cast %1 : vector<1x144x25xbf16> to vector<144x25xbf16>
    %cst = arith.constant dense<0.000000e+00> : vector<144x20xf32>
    %3 = tpu.matmul %2, %0, %cst {dimension_numbers = #tpu.dot_dimension_numbers<[1], [0], [0], [1], [0, 0, 1, 1], [], []>} : vector<144x25xbf16>, vector<25x20xbf16>, vector<144x20xf32> -> vector<144x20xf32>
    %c1 = arith.constant 1 : index
    %c0_4 = arith.constant 0 : index
    %c0_5 = arith.constant 0 : index
    %4 = vector.load %arg1[%c1, %c0_4, %c0_5] : memref<4x144x25xbf16, #tpu.memory_space<vmem>>, vector<1x144x25xbf16>
    %5 = vector.shape_cast %4 : vector<1x144x25xbf16> to vector<144x25xbf16>
    %cst_6 = arith.constant dense<0.000000e+00> : vector<144x20xf32>
    %6 = tpu.matmul %5, %0, %cst_6 {dimension_numbers = #tpu.dot_dimension_numbers<[1], [0], [0], [1], [0, 0, 1, 1], [], []>} : vector<144x25xbf16>, vector<25x20xbf16>, vector<144x20xf32> -> vector<144x20xf32>
    %7 = arith.maximumf %3, %6 : vector<144x20xf32>
    %c2 = arith.constant 2 : index
    %c0_7 = arith.constant 0 : index
    %c0_8 = arith.constant 0 : index
    %8 = vector.load %arg1[%c2, %c0_7, %c0_8] : memref<4x144x25xbf16, #tpu.memory_space<vmem>>, vector<1x144x25xbf16>
    %9 = vector.shape_cast %8 : vector<1x144x25xbf16> to vector<144x25xbf16>
    %cst_9 = arith.constant dense<0.000000e+00> : vector<144x20xf32>
    %10 = tpu.matmul %9, %0, %cst_9 {dimension_numbers = #tpu.dot_dimension_numbers<[1], [0], [0], [1], [0, 0, 1, 1], [], []>} : vector<144x25xbf16>, vector<25x20xbf16>, vector<144x20xf32> -> vector<144x20xf32>
    %11 = arith.maximumf %7, %10 : vector<144x20xf32>
    %c3 = arith.constant 3 : index
    %c0_10 = arith.constant 0 : index
    %c0_11 = arith.constant 0 : index
    %12 = vector.load %arg1[%c3, %c0_10, %c0_11] : memref<4x144x25xbf16, #tpu.memory_space<vmem>>, vector<1x144x25xbf16>
    %13 = vector.shape_cast %12 : vector<1x144x25xbf16> to vector<144x25xbf16>
    %cst_12 = arith.constant dense<0.000000e+00> : vector<144x20xf32>
    %14 = tpu.matmul %13, %0, %cst_12 {dimension_numbers = #tpu.dot_dimension_numbers<[1], [0], [0], [1], [0, 0, 1, 1], [], []>} : vector<144x25xbf16>, vector<25x20xbf16>, vector<144x20xf32> -> vector<144x20xf32>
    %15 = arith.maximumf %11, %14 : vector<144x20xf32>
    %c0_13 = arith.constant 0 : index
    %c0_14 = arith.constant 0 : index
    %16 = vector.load %arg3[%c0_13, %c0_14] : memref<1x20xf32, #tpu.memory_space<vmem>>, vector<1x20xf32>
    %17 = vector.broadcast %16 : vector<1x20xf32> to vector<144x20xf32>
    %18 = arith.addf %15, %17 : vector<144x20xf32>
    %cst_15 = arith.constant 0.000000e+00 : f32
    %19 = vector.broadcast %cst_15 : f32 to vector<144x20xf32>
    %20 = arith.maximumf %18, %19 : vector<144x20xf32>
    %21 = arith.truncf %20 : vector<144x20xf32> to vector<144x20xbf16>
    %c0_16 = arith.constant 0 : index
    %c0_17 = arith.constant 0 : index
    %22 = vector.load %arg4[%c0_16, %c0_17] : memref<144x20xbf16, #tpu.memory_space<vmem>>, vector<144x20xbf16>
    tpu.vector_store %arg4[%c0_16, %c0_17], %21 {strides = array<i32>} : memref<144x20xbf16, #tpu.memory_space<vmem>>, vector<144x20xbf16>,
    return
  }
  func.func @transform_0(%arg0: i32) -> (i32, i32, i32) {
    %c0_i32 = arith.constant 0 : i32
    %c0_i32_0 = arith.constant 0 : i32
    %c0_i32_1 = arith.constant 0 : i32
    return %c0_i32, %arg0, %c0_i32_0 : i32, i32, i32
  }
  func.func @transform_1(%arg0: i32) -> (i32, i32) {
    %c0_i32 = arith.constant 0 : i32
    %c0_i32_0 = arith.constant 0 : i32
    %c0_i32_1 = arith.constant 0 : i32
    return %c0_i32, %c0_i32_0 : i32, i32
  }
  func.func @transform_2(%arg0: i32) -> (i32, i32) {
    %c0_i32 = arith.constant 0 : i32
    %c0_i32_0 = arith.constant 0 : i32
    %c0_i32_1 = arith.constant 0 : i32
    return %c0_i32, %c0_i32_0 : i32, i32
  }
  func.func @transform_3(%arg0: i32) -> (i32, i32) {
    %c0_i32 = arith.constant 0 : i32
    %c0_i32_0 = arith.constant 0 : i32
    return %arg0, %c0_i32 : i32, i32
  }
}

module attributes {stable_mosaic.version = 11 : i64} {
  func.func @_mlp_head_kernel(%arg0: i32, %arg1: memref<2x2048xbf16, #tpu.memory_space<vmem>>, %arg2: memref<2048x512xbf16, #tpu.memory_space<vmem>>, %arg3: memref<1x512xf32, #tpu.memory_space<vmem>>, %arg4: memref<512x128xbf16, #tpu.memory_space<vmem>>, %arg5: memref<1x128xf32, #tpu.memory_space<vmem>>, %arg6: memref<2x128xf32, #tpu.memory_space<vmem>>) attributes {dimension_semantics = [#tpu.dimension_semantics<parallel>], iteration_bounds = array<i64: 1>, scalar_prefetch = 0 : i64, scratch_operands = 0 : i64, tpu.core_type = #tpu.core_type<tc>, window_params = [{transform_indices = @transform_0, window_bounds = array<i64: 2, 2048>}, {pipeline_mode = #tpu.pipeline_mode<synchronous>, transform_indices = @transform_1, window_bounds = array<i64: 2048, 512>}, {pipeline_mode = #tpu.pipeline_mode<synchronous>, transform_indices = @transform_2, window_bounds = array<i64: 1, 512>}, {pipeline_mode = #tpu.pipeline_mode<synchronous>, transform_indices = @transform_3, window_bounds = array<i64: 512, 128>}, {pipeline_mode = #tpu.pipeline_mode<synchronous>, transform_indices = @transform_4, window_bounds = array<i64: 1, 128>}, {transform_indices = @transform_5, window_bounds = array<i64: 2, 128>}]} {
    %c0 = arith.constant 0 : index
    %c0_0 = arith.constant 0 : index
    %0 = vector.load %arg1[%c0, %c0_0] : memref<2x2048xbf16, #tpu.memory_space<vmem>>, vector<2x2048xbf16>
    %c0_1 = arith.constant 0 : index
    %c0_2 = arith.constant 0 : index
    %1 = vector.load %arg2[%c0_1, %c0_2] : memref<2048x512xbf16, #tpu.memory_space<vmem>>, vector<2048x512xbf16>
    %cst = arith.constant dense<0.000000e+00> : vector<2x512xf32>
    %2 = tpu.matmul %0, %1, %cst {dimension_numbers = #tpu.dot_dimension_numbers<[1], [0], [0], [1], [0, 0, 1, 1], [], []>} : vector<2x2048xbf16>, vector<2048x512xbf16>, vector<2x512xf32> -> vector<2x512xf32>
    %c0_3 = arith.constant 0 : index
    %c0_4 = arith.constant 0 : index
    %3 = vector.load %arg3[%c0_3, %c0_4] : memref<1x512xf32, #tpu.memory_space<vmem>>, vector<1x512xf32>
    %4 = vector.broadcast %3 : vector<1x512xf32> to vector<2x512xf32>
    %5 = arith.addf %2, %4 : vector<2x512xf32>
    %cst_5 = arith.constant 0.000000e+00 : f32
    %6 = vector.broadcast %cst_5 : f32 to vector<2x512xf32>
    %7 = arith.maximumf %5, %6 : vector<2x512xf32>
    %8 = arith.truncf %7 : vector<2x512xf32> to vector<2x512xbf16>
    %c0_6 = arith.constant 0 : index
    %c0_7 = arith.constant 0 : index
    %9 = vector.load %arg4[%c0_6, %c0_7] : memref<512x128xbf16, #tpu.memory_space<vmem>>, vector<512x128xbf16>
    %cst_8 = arith.constant dense<0.000000e+00> : vector<2x128xf32>
    %10 = tpu.matmul %8, %9, %cst_8 {dimension_numbers = #tpu.dot_dimension_numbers<[1], [0], [0], [1], [0, 0, 1, 1], [], []>} : vector<2x512xbf16>, vector<512x128xbf16>, vector<2x128xf32> -> vector<2x128xf32>
    %c0_9 = arith.constant 0 : index
    %c0_10 = arith.constant 0 : index
    %11 = vector.load %arg5[%c0_9, %c0_10] : memref<1x128xf32, #tpu.memory_space<vmem>>, vector<1x128xf32>
    %12 = vector.broadcast %11 : vector<1x128xf32> to vector<2x128xf32>
    %13 = arith.addf %10, %12 : vector<2x128xf32>
    %cst_11 = arith.constant dense<0xFF800000> : vector<2xf32>
    %14 = vector.multi_reduction <maximumf>, %13, %cst_11 [1] : vector<2x128xf32> to vector<2xf32>
    %15 = vector.shape_cast %14 : vector<2xf32> to vector<2x1xf32>
    %16 = vector.broadcast %15 : vector<2x1xf32> to vector<2x128xf32>
    %17 = arith.subf %13, %16 : vector<2x128xf32>
    %18 = math.exp %17 : vector<2x128xf32>
    %cst_12 = arith.constant dense<0.000000e+00> : vector<2xf32>
    %19 = vector.multi_reduction <add>, %18, %cst_12 [1] : vector<2x128xf32> to vector<2xf32>
    %20 = vector.shape_cast %19 : vector<2xf32> to vector<2x1xf32>
    %21 = math.log %20 : vector<2x1xf32>
    %22 = vector.broadcast %21 : vector<2x1xf32> to vector<2x128xf32>
    %23 = arith.subf %17, %22 : vector<2x128xf32>
    %c0_13 = arith.constant 0 : index
    %c0_14 = arith.constant 0 : index
    %24 = vector.load %arg6[%c0_13, %c0_14] : memref<2x128xf32, #tpu.memory_space<vmem>>, vector<2x128xf32>
    tpu.vector_store %arg6[%c0_13, %c0_14], %23 {strides = array<i32>} : memref<2x128xf32, #tpu.memory_space<vmem>>, vector<2x128xf32>,
    return
  }
  func.func @transform_0(%arg0: i32) -> (i32, i32) {
    %c0_i32 = arith.constant 0 : i32
    %c0_i32_0 = arith.constant 0 : i32
    return %arg0, %c0_i32 : i32, i32
  }
  func.func @transform_1(%arg0: i32) -> (i32, i32) {
    %c0_i32 = arith.constant 0 : i32
    %c0_i32_0 = arith.constant 0 : i32
    %c0_i32_1 = arith.constant 0 : i32
    return %c0_i32, %c0_i32_0 : i32, i32
  }
  func.func @transform_2(%arg0: i32) -> (i32, i32) {
    %c0_i32 = arith.constant 0 : i32
    %c0_i32_0 = arith.constant 0 : i32
    %c0_i32_1 = arith.constant 0 : i32
    return %c0_i32, %c0_i32_0 : i32, i32
  }
  func.func @transform_3(%arg0: i32) -> (i32, i32) {
    %c0_i32 = arith.constant 0 : i32
    %c0_i32_0 = arith.constant 0 : i32
    %c0_i32_1 = arith.constant 0 : i32
    return %c0_i32, %c0_i32_0 : i32, i32
  }
  func.func @transform_4(%arg0: i32) -> (i32, i32) {
    %c0_i32 = arith.constant 0 : i32
    %c0_i32_0 = arith.constant 0 : i32
    %c0_i32_1 = arith.constant 0 : i32
    return %c0_i32, %c0_i32_0 : i32, i32
  }
  func.func @transform_5(%arg0: i32) -> (i32, i32) {
    %c0_i32 = arith.constant 0 : i32
    %c0_i32_0 = arith.constant 0 : i32
    return %arg0, %c0_i32 : i32, i32
  }
}

module attributes {stable_mosaic.version = 11 : i64} {
  func.func @_conv2_relu_pool_kernel(%arg0: i32, %arg1: memref<2x12x8x100xbf16, #tpu.memory_space<vmem>>, %arg2: memref<5x100x128xbf16, #tpu.memory_space<vmem>>, %arg3: memref<1x128xf32, #tpu.memory_space<vmem>>, %arg4: memref<2x16x128xbf16, #tpu.memory_space<vmem>>) attributes {dimension_semantics = [#tpu.dimension_semantics<parallel>], iteration_bounds = array<i64: 1>, scalar_prefetch = 0 : i64, scratch_operands = 0 : i64, tpu.core_type = #tpu.core_type<tc>, window_params = [{transform_indices = @transform_0, window_bounds = array<i64: 2, 12, 8, 100>}, {pipeline_mode = #tpu.pipeline_mode<synchronous>, transform_indices = @transform_1, window_bounds = array<i64: 5, 100, 128>}, {pipeline_mode = #tpu.pipeline_mode<synchronous>, transform_indices = @transform_2, window_bounds = array<i64: 1, 128>}, {transform_indices = @transform_3, window_bounds = array<i64: 2, 16, 128>}]} {
    %c0 = arith.constant 0 : index
    %c0_0 = arith.constant 0 : index
    %c0_1 = arith.constant 0 : index
    %c0_2 = arith.constant 0 : index
    %0 = vector.load %arg1[%c0, %c0_0, %c0_1, %c0_2] : memref<2x12x8x100xbf16, #tpu.memory_space<vmem>>, vector<2x8x8x100xbf16>
    %1 = vector.shape_cast %0 : vector<2x8x8x100xbf16> to vector<128x100xbf16>
    %c0_3 = arith.constant 0 : index
    %c0_4 = arith.constant 0 : index
    %c0_5 = arith.constant 0 : index
    %2 = vector.load %arg2[%c0_3, %c0_4, %c0_5] : memref<5x100x128xbf16, #tpu.memory_space<vmem>>, vector<1x100x128xbf16>
    %3 = vector.shape_cast %2 : vector<1x100x128xbf16> to vector<100x128xbf16>
    %cst = arith.constant dense<0.000000e+00> : vector<128x128xf32>
    %4 = tpu.matmul %1, %3, %cst {dimension_numbers = #tpu.dot_dimension_numbers<[1], [0], [0], [1], [0, 0, 1, 1], [], []>} : vector<128x100xbf16>, vector<100x128xbf16>, vector<128x128xf32> -> vector<128x128xf32>
    %c0_6 = arith.constant 0 : index
    %c1 = arith.constant 1 : index
    %c0_7 = arith.constant 0 : index
    %c0_8 = arith.constant 0 : index
    %5 = vector.load %arg1[%c0_6, %c1, %c0_7, %c0_8] : memref<2x12x8x100xbf16, #tpu.memory_space<vmem>>, vector<2x8x8x100xbf16>
    %6 = vector.shape_cast %5 : vector<2x8x8x100xbf16> to vector<128x100xbf16>
    %c1_9 = arith.constant 1 : index
    %c0_10 = arith.constant 0 : index
    %c0_11 = arith.constant 0 : index
    %7 = vector.load %arg2[%c1_9, %c0_10, %c0_11] : memref<5x100x128xbf16, #tpu.memory_space<vmem>>, vector<1x100x128xbf16>
    %8 = vector.shape_cast %7 : vector<1x100x128xbf16> to vector<100x128xbf16>
    %cst_12 = arith.constant dense<0.000000e+00> : vector<128x128xf32>
    %9 = tpu.matmul %6, %8, %cst_12 {dimension_numbers = #tpu.dot_dimension_numbers<[1], [0], [0], [1], [0, 0, 1, 1], [], []>} : vector<128x100xbf16>, vector<100x128xbf16>, vector<128x128xf32> -> vector<128x128xf32>
    %10 = arith.addf %4, %9 : vector<128x128xf32>
    %c0_13 = arith.constant 0 : index
    %c2 = arith.constant 2 : index
    %c0_14 = arith.constant 0 : index
    %c0_15 = arith.constant 0 : index
    %11 = vector.load %arg1[%c0_13, %c2, %c0_14, %c0_15] : memref<2x12x8x100xbf16, #tpu.memory_space<vmem>>, vector<2x8x8x100xbf16>
    %12 = vector.shape_cast %11 : vector<2x8x8x100xbf16> to vector<128x100xbf16>
    %c2_16 = arith.constant 2 : index
    %c0_17 = arith.constant 0 : index
    %c0_18 = arith.constant 0 : index
    %13 = vector.load %arg2[%c2_16, %c0_17, %c0_18] : memref<5x100x128xbf16, #tpu.memory_space<vmem>>, vector<1x100x128xbf16>
    %14 = vector.shape_cast %13 : vector<1x100x128xbf16> to vector<100x128xbf16>
    %cst_19 = arith.constant dense<0.000000e+00> : vector<128x128xf32>
    %15 = tpu.matmul %12, %14, %cst_19 {dimension_numbers = #tpu.dot_dimension_numbers<[1], [0], [0], [1], [0, 0, 1, 1], [], []>} : vector<128x100xbf16>, vector<100x128xbf16>, vector<128x128xf32> -> vector<128x128xf32>
    %16 = arith.addf %10, %15 : vector<128x128xf32>
    %c0_20 = arith.constant 0 : index
    %c3 = arith.constant 3 : index
    %c0_21 = arith.constant 0 : index
    %c0_22 = arith.constant 0 : index
    %17 = vector.load %arg1[%c0_20, %c3, %c0_21, %c0_22] : memref<2x12x8x100xbf16, #tpu.memory_space<vmem>>, vector<2x8x8x100xbf16>
    %18 = vector.shape_cast %17 : vector<2x8x8x100xbf16> to vector<128x100xbf16>
    %c3_23 = arith.constant 3 : index
    %c0_24 = arith.constant 0 : index
    %c0_25 = arith.constant 0 : index
    %19 = vector.load %arg2[%c3_23, %c0_24, %c0_25] : memref<5x100x128xbf16, #tpu.memory_space<vmem>>, vector<1x100x128xbf16>
    %20 = vector.shape_cast %19 : vector<1x100x128xbf16> to vector<100x128xbf16>
    %cst_26 = arith.constant dense<0.000000e+00> : vector<128x128xf32>
    %21 = tpu.matmul %18, %20, %cst_26 {dimension_numbers = #tpu.dot_dimension_numbers<[1], [0], [0], [1], [0, 0, 1, 1], [], []>} : vector<128x100xbf16>, vector<100x128xbf16>, vector<128x128xf32> -> vector<128x128xf32>
    %22 = arith.addf %16, %21 : vector<128x128xf32>
    %c0_27 = arith.constant 0 : index
    %c4 = arith.constant 4 : index
    %c0_28 = arith.constant 0 : index
    %c0_29 = arith.constant 0 : index
    %23 = vector.load %arg1[%c0_27, %c4, %c0_28, %c0_29] : memref<2x12x8x100xbf16, #tpu.memory_space<vmem>>, vector<2x8x8x100xbf16>
    %24 = vector.shape_cast %23 : vector<2x8x8x100xbf16> to vector<128x100xbf16>
    %c4_30 = arith.constant 4 : index
    %c0_31 = arith.constant 0 : index
    %c0_32 = arith.constant 0 : index
    %25 = vector.load %arg2[%c4_30, %c0_31, %c0_32] : memref<5x100x128xbf16, #tpu.memory_space<vmem>>, vector<1x100x128xbf16>
    %26 = vector.shape_cast %25 : vector<1x100x128xbf16> to vector<100x128xbf16>
    %cst_33 = arith.constant dense<0.000000e+00> : vector<128x128xf32>
    %27 = tpu.matmul %24, %26, %cst_33 {dimension_numbers = #tpu.dot_dimension_numbers<[1], [0], [0], [1], [0, 0, 1, 1], [], []>} : vector<128x100xbf16>, vector<100x128xbf16>, vector<128x128xf32> -> vector<128x128xf32>
    %28 = arith.addf %22, %27 : vector<128x128xf32>
    %c0_34 = arith.constant 0 : index
    %c0_35 = arith.constant 0 : index
    %29 = vector.load %arg3[%c0_34, %c0_35] : memref<1x128xf32, #tpu.memory_space<vmem>>, vector<1x128xf32>
    %30 = vector.broadcast %29 : vector<1x128xf32> to vector<128x128xf32>
    %31 = arith.addf %28, %30 : vector<128x128xf32>
    %cst_36 = arith.constant 0.000000e+00 : f32
    %32 = vector.broadcast %cst_36 : f32 to vector<128x128xf32>
    %33 = arith.maximumf %31, %32 : vector<128x128xf32>
    %34 = vector.shape_cast %33 : vector<128x128xf32> to vector<8x2x8x128xf32>
    %cst_37 = arith.constant dense<0xFF800000> : vector<8x8x128xf32>
    %35 = vector.multi_reduction <maximumf>, %34, %cst_37 [1] : vector<8x2x8x128xf32> to vector<8x8x128xf32>
    %36 = arith.truncf %35 : vector<8x8x128xf32> to vector<8x8x128xbf16>
    %37 = vector.shape_cast %36 : vector<8x8x128xbf16> to vector<8x4x2x128xbf16>
    %cst_38 = arith.constant dense<0xFF80> : vector<8x4x128xbf16>
    %38 = vector.multi_reduction <maximumf>, %37, %cst_38 [2] : vector<8x4x2x128xbf16> to vector<8x4x128xbf16>
    %39 = vector.shape_cast %38 : vector<8x4x128xbf16> to vector<2x16x128xbf16>
    %c0_39 = arith.constant 0 : index
    %c0_40 = arith.constant 0 : index
    %c0_41 = arith.constant 0 : index
    %40 = vector.load %arg4[%c0_39, %c0_40, %c0_41] : memref<2x16x128xbf16, #tpu.memory_space<vmem>>, vector<2x16x128xbf16>
    tpu.vector_store %arg4[%c0_39, %c0_40, %c0_41], %39 {strides = array<i32>} : memref<2x16x128xbf16, #tpu.memory_space<vmem>>, vector<2x16x128xbf16>,
    return
  }
  func.func @transform_0(%arg0: i32) -> (i32, i32, i32, i32) {
    %c0_i32 = arith.constant 0 : i32
    %c0_i32_0 = arith.constant 0 : i32
    %c0_i32_1 = arith.constant 0 : i32
    %c0_i32_2 = arith.constant 0 : i32
    return %arg0, %c0_i32, %c0_i32_0, %c0_i32_1 : i32, i32, i32, i32
  }
  func.func @transform_1(%arg0: i32) -> (i32, i32, i32) {
    %c0_i32 = arith.constant 0 : i32
    %c0_i32_0 = arith.constant 0 : i32
    %c0_i32_1 = arith.constant 0 : i32
    %c0_i32_2 = arith.constant 0 : i32
    return %c0_i32, %c0_i32_0, %c0_i32_1 : i32, i32, i32
  }
  func.func @transform_2(%arg0: i32) -> (i32, i32) {
    %c0_i32 = arith.constant 0 : i32
    %c0_i32_0 = arith.constant 0 : i32
    %c0_i32_1 = arith.constant 0 : i32
    return %c0_i32, %c0_i32_0 : i32, i32
  }
  func.func @transform_3(%arg0: i32) -> (i32, i32, i32) {
    %c0_i32 = arith.constant 0 : i32
    %c0_i32_0 = arith.constant 0 : i32
    %c0_i32_1 = arith.constant 0 : i32
    return %arg0, %c0_i32, %c0_i32_0 : i32, i32, i32
  }
}

</mosaic_0001>

<bundles_post_ra>
// kernel: net_forward.3
= control target key start
LH: loop header
LB: loop body
LE: loop exit
PB: predicated region body
PF: predicated region fallthrough
CT: control target
= control target key end

     0   :  { %s2051_s12 = smov 0   ;;  %s2053_s13 = smov 0   ;;  %s2562_s0 = inlined_call_operand.vmem [shape: bf16[4,288,25], index: 0, kind: input, shape index: {}]   ;;  %s2563_s1 = inlined_call_operand.vmem [shape: bf16[25,20], index: 1, kind: input, shape index: {}]   ;;  %s2564_s2 = inlined_call_operand.vmem [shape: f32[1,20], index: 2, kind: input, shape index: {}]   ;;  %s2565_s3 = inlined_call_operand.vmem [shape: bf16[288,20], index: 3, kind: output, shape index: {}]  }
   0x1   :  { %s2055_s14 = smov 0  }
   0x2 LB: > { %s1558_s15 = sadd.s32 4294967295, %s2026_s14   ;;  %s2068_s16 = sadd.s32 1, %s2026_s14   ;;  %s2026_s14 = sphi %s2055_s14, %s2569_s14   ;;  %s2022_s13 = sphi %s2053_s13, %s2568_s13   ;;  %s2018_s12 = sphi %s2051_s12, %s2567_s12  }
   0x3   : > { %s17_s17 = ssub.s32 %s2026_s14, %s2068_s16  ;;  %s20_s18 = sadd.s32 1, %s2022_s13 }
   0x4   : > { %p18_p0 = scmp.eq.s32.totalorder %s17_s17, 0  ;;  %p27_p1 = scmp.ne.s32.totalorder %s2022_s13, %s2018_s12 }
   0x5   : > { %p28_p2 = scmp.eq.s32.totalorder %s2026_s14, 0  ;;  %p1561_p4 = scmp.ge.s32.totalorder %s2026_s14, 2 }
   0x6   : > { %s2077_s19 = scalar_select %p18_p0, %s2022_s13, %s20_s18  }
   0x7   : > { %p29_p3 = por %p28_p2, %p27_p1  ;;  %127 = sbr.rel (%p1561_p4) target bundleno = 35 (0x23), region = 24 }
   0xc   : > { %130 = sbr.rel (!%p29_p3) target bundleno = 35 (0x23), region = 28  ;;  %s132_s20 = sand.u32 (%p29_p3), 1, %s2022_s13  }
   0xd   : > { %s1714_s21 = smul.u32 (%p29_p3), 72, %s2026_s14 }
   0xe   : > { %s1937_s22 = smul.u32 (%p29_p3), 288, %s132_s20 }
   0xf   : > { %s2085_s25 = scalar_lea.vmem (%p29_p3), %s2562_s0, %s1714_s21 }
  0x10   : > { %v154_v0 = vld [vmem:[%s2085_s25] sm:$0xff] (%p29_p3)   ;;  %v158_v1 = vld [vmem:[%s2085_s25 + $0x8] sm:$0xff] (%p29_p3)   ;;  %v162_v2 = vld [vmem:[%s2085_s25 + $0x10] sm:$0xff] (%p29_p3)   ;;  %s2090_s26 = scalar_lea.vmem (%p29_p3), [#allocation2], %s1937_s22 }
  0x11   : > { %155 = vst [vmem:[%s2090_s26] sm:$0xff] %v154_v0   ;;  %159 = vst [vmem:[%s2090_s26 + $0x8] sm:$0xff] %v158_v1   ;;  %v166_v3 = vld [vmem:[%s2085_s25 + $0x18] sm:$0xff]   ;;  %v170_v4 = vld [vmem:[%s2085_s25 + $0x20] sm:$0xff]  }
  0x12   : > { %163 = vst [vmem:[%s2090_s26 + $0x10] sm:$0xff] %v162_v2   ;;  %v174_v5 = vld [vmem:[%s2085_s25 + $0x28] sm:$0xff]   ;;  %167 = vst [vmem:[%s2090_s26 + $0x18] sm:$0xff] %v166_v3   ;;  %v178_v6 = vld [vmem:[%s2085_s25 + $0x30] sm:$0xff]  }
  0x13   : > { %171 = vst [vmem:[%s2090_s26 + $0x20] sm:$0xff] %v170_v4   ;;  %175 = vst [vmem:[%s2090_s26 + $0x28] sm:$0xff] %v174_v5   ;;  %v182_v7 = vld [vmem:[%s2085_s25 + $0x38] sm:$0xff]   ;;  %v186_v8 = vld [vmem:[%s2085_s25 + $0x40] sm:$0xff]  }
  0x14   : > { %179 = vst [vmem:[%s2090_s26 + $0x30] sm:$0xff] %v178_v6   ;;  %183 = vst [vmem:[%s2090_s26 + $0x38] sm:$0xff] %v182_v7   ;;  %v190_v9 = vld [vmem:[%s2085_s25 + $0x90] sm:$0xff]   ;;  %v194_v10 = vld [vmem:[%s2085_s25 + $0x98] sm:$0xff]  }
  0x15   : > { %187 = vst [vmem:[%s2090_s26 + $0x40] sm:$0xff] %v186_v8   ;;  %v198_v11 = vld [vmem:[%s2085_s25 + $0xa0] sm:$0xff]   ;;  %191 = vst [vmem:[%s2090_s26 + $0x48] sm:$0xff] %v190_v9   ;;  %v202_v12 = vld [vmem:[%s2085_s25 + $0xa8] sm:$0xff]  }
  0x16   : > { %195 = vst [vmem:[%s2090_s26 + $0x50] sm:$0xff] %v194_v10   ;;  %199 = vst [vmem:[%s2090_s26 + $0x58] sm:$0xff] %v198_v11   ;;  %v206_v13 = vld [vmem:[%s2085_s25 + $0xb0] sm:$0xff]   ;;  %v210_v14 = vld [vmem:[%s2085_s25 + $0xb8] sm:$0xff]  }
  0x17   : > { %203 = vst [vmem:[%s2090_s26 + $0x60] sm:$0xff] %v202_v12   ;;  %207 = vst [vmem:[%s2090_s26 + $0x68] sm:$0xff] %v206_v13   ;;  %v214_v15 = vld [vmem:[%s2085_s25 + $0xc0] sm:$0xff]   ;;  %v218_v16 = vld [vmem:[%s2085_s25 + $0xc8] sm:$0xff]  }
  0x18   : > { %211 = vst [vmem:[%s2090_s26 + $0x70] sm:$0xff] %v210_v14   ;;  %v222_v17 = vld [vmem:[%s2085_s25 + $0xd0] sm:$0xff]   ;;  %215 = vst [vmem:[%s2090_s26 + $0x78] sm:$0xff] %v214_v15   ;;  %v226_v18 = vld [vmem:[%s2085_s25 + $0x120] sm:$0xff]  }
  0x19   : > { %219 = vst [vmem:[%s2090_s26 + $0x80] sm:$0xff] %v218_v16   ;;  %223 = vst [vmem:[%s2090_s26 + $0x88] sm:$0xff] %v222_v17   ;;  %v230_v19 = vld [vmem:[%s2085_s25 + $0x128] sm:$0xff]   ;;  %v234_v20 = vld [vmem:[%s2085_s25 + $0x130] sm:$0xff]  }
  0x1a   : > { %227 = vst [vmem:[%s2090_s26 + $0x90] sm:$0xff] %v226_v18   ;;  %231 = vst [vmem:[%s2090_s26 + $0x98] sm:$0xff] %v230_v19   ;;  %v238_v21 = vld [vmem:[%s2085_s25 + $0x138] sm:$0xff]   ;;  %v242_v22 = vld [vmem:[%s2085_s25 + $0x140] sm:$0xff]  }
  0x1b   : > { %235 = vst [vmem:[%s2090_s26 + $0xa0] sm:$0xff] %v234_v20   ;;  %v246_v23 = vld [vmem:[%s2085_s25 + $0x148] sm:$0xff]   ;;  %239 = vst [vmem:[%s2090_s26 + $0xa8] sm:$0xff] %v238_v21   ;;  %v250_v24 = vld [vmem:[%s2085_s25 + $0x150] sm:$0xff]  }
  0x1c   : > { %243 = vst [vmem:[%s2090_s26 + $0xb0] sm:$0xff] %v242_v22   ;;  %247 = vst [vmem:[%s2090_s26 + $0xb8] sm:$0xff] %v246_v23   ;;  %v254_v25 = vld [vmem:[%s2085_s25 + $0x158] sm:$0xff]   ;;  %v258_v26 = vld [vmem:[%s2085_s25 + $0x160] sm:$0xff]  }
  0x1d   : > { %251 = vst [vmem:[%s2090_s26 + $0xc0] sm:$0xff] %v250_v24   ;;  %255 = vst [vmem:[%s2090_s26 + $0xc8] sm:$0xff] %v254_v25   ;;  %v262_v27 = vld [vmem:[%s2085_s25 + $0x1b0] sm:$0xff]   ;;  %v266_v28 = vld [vmem:[%s2085_s25 + $0x1b8] sm:$0xff]  }
  0x1e   : > { %259 = vst [vmem:[%s2090_s26 + $0xd0] sm:$0xff] %v258_v26   ;;  %v270_v29 = vld [vmem:[%s2085_s25 + $0x1c0] sm:$0xff]   ;;  %263 = vst [vmem:[%s2090_s26 + $0xd8] sm:$0xff] %v262_v27   ;;  %v274_v30 = vld [vmem:[%s2085_s25 + $0x1c8] sm:$0xff]  }
  0x1f   : > { %267 = vst [vmem:[%s2090_s26 + $0xe0] sm:$0xff] %v266_v28   ;;  %271 = vst [vmem:[%s2090_s26 + $0xe8] sm:$0xff] %v270_v29   ;;  %v278_v31 = vld [vmem:[%s2085_s25 + $0x1d0] sm:$0xff]   ;;  %v282_v32 = vld [vmem:[%s2085_s25 + $0x1d8] sm:$0xff]  }
  0x20   : > { %275 = vst [vmem:[%s2090_s26 + $0xf0] sm:$0xff] %v274_v30   ;;  %279 = vst [vmem:[%s2090_s26 + $0xf8] sm:$0xff] %v278_v31   ;;  %v286_v33 = vld [vmem:[%s2085_s25 + $0x1e0] sm:$0xff]   ;;  %v290_v34 = vld [vmem:[%s2085_s25 + $0x1e8] sm:$0xff]  }
  0x21   : > { %283 = vst [vmem:[%s2090_s26 + $0x100] sm:$0xff] %v282_v32   ;;  %v294_v35 = vld [vmem:[%s2085_s25 + $0x1f0] sm:$0xff]   ;;  %287 = vst [vmem:[%s2090_s26 + $0x108] sm:$0xff] %v286_v33  }
  0x22   : > { %291 = vst [vmem:[%s2090_s26 + $0x110] sm:$0xff] %v290_v34   ;;  %295 = vst [vmem:[%s2090_s26 + $0x118] sm:$0xff] %v294_v35  }
  0x23 PF: > { %p1563_p5 = scmp.ge.s32.totalorder %s2026_s14, 1  ;;  %p464_p6 = scmp.lt.s32.totalorder %s2026_s14, 3 }
  0x25   : > { %p465_p7 = pnand %p1563_p5, %p464_p6 }
  0x26   : > { %s471_s29 = sand.u32 (!%p465_p7), 1, %s2018_s12   ;;  %s495_s7 = smul.u32 (!%p465_p7), 18, %s1558_s15 }
  0x27   : > { %468 = sbr.rel (%p465_p7) target bundleno = 400 (0x190), region = 69 }
  0x28   : > { %s1938_s30 = smul.u32 (!%p465_p7), 288, %s471_s29  ;;  %p496_p8 = scmp.lt.s32.totalorder (!%p465_p7), %s495_s7, 35 }
  0x2a   : > { %s2176_s6 = scalar_lea.vmem (!%p465_p7), [#allocation2], %s1938_s30 }
  0x2c   : > { %vm608_vm0 = vcmask 1043456   ;;  %v2028_v36 = vmov 0.0   ;;  %v1966_v37 = vld [vmem:[%s2563_s1 + $0x8] sm:$0x1f]   ;;  %vm609_vm1 = vcmask 1044480   ;;  %v2029_v38 = vmov 65535  }
  0x2d   : > { %1777 = vmatprep.subr.bf16.mxu0 %v2028_v36  ;;  %1817 = vmatprep.subr.bf16.mxu1 %v2028_v36  ;;  %v610_v39 = vsel %vm608_vm0, 4294967295, %v2029_v38  ;;  %vm2030_vm2 = vmmov 0   ;;  %v1967_v42 = vld [vmem:[%s2563_s1] sm:$0xff]   ;;  %v1969_v44 = vld [vmem:[%s2176_s6 + $0x48] sm:$0xff]   ;;  %vm580_vm3 = vcmask 203776   ;;  %v1971_v46 = vld [vmem:[%s2176_s6 + $0x50] sm:$0xff]  }
  0x2e   : > { %v611_v40 = vsel %vm609_vm1, %v610_v39, 0  ;;  %1781 = vmatprep.mubr.msk.bf16.mxu0 %vm2030_vm2, %v2028_v36  ;;  %1821 = vmatprep.mubr.msk.bf16.mxu1 %vm2030_vm2, %v2028_v36  ;;  %v1968_v43 = vld [vmem:[%s2176_s6] sm:$0xff]   ;;  %v1970_v45 = vld [vmem:[%s2176_s6 + $0x8] sm:$0xff]   ;;  %v1972_v47 = vld [vmem:[%s2176_s6 + $0x10] sm:$0xff]   ;;  %s2571_s7 = smov (!%p496_p8, %s495_s7), 35  ;;  %vm1477_vm4 = vcmask 158720  }
  0x2f   : > { %v613_v41 = vand.u32 %v1966_v37, %v611_v40  ;;  %v1973_v48 = vld [vmem:[%s2176_s6 + $0x58] sm:$0xff]   ;;  %v1975_v50 = vld [vmem:[%s2176_s6 + $0x60] sm:$0xff]   ;;  %v1977_v52 = vld [vmem:[%s2176_s6 + $0x68] sm:$0xff]   ;;  %s1564_s10 = sshll.u32 %s2571_s7, 2 }
  0x30   : > { %v1974_v49 = vld [vmem:[%s2176_s6 + $0x18] sm:$0xff]   ;;  %v1976_v51 = vld [vmem:[%s2176_s6 + $0x20] sm:$0xff]   ;;  %v1978_v53 = vld [vmem:[%s2176_s6 + $0x28] sm:$0xff]   ;;  %s2449_s14 = scalar_lea.vmem %s2565_s3, %s1564_s10 }
  0x31   : > { %1778 = vmatpush3.bf16.msra.mxu0 %v613_v41  ;;  %1818 = vmatpush3.bf16.msra.mxu1 %v613_v41  ;;  %v1979_v54 = vld [vmem:[%s2176_s6 + $0x70] sm:$0xff]   ;;  %v1981_v56 = vld [vmem:[%s2176_s6 + $0x78] sm:$0xff]   ;;  %v1983_v58 = vld [vmem:[%s2176_s6 + $0x80] sm:$0xff]  }
  0x32   : > { %1779 = vmatprep.subr.bf16.mxu0 %v2028_v36  ;;  %1819 = vmatprep.subr.bf16.mxu1 %v2028_v36  ;;  %v1980_v55 = vld [vmem:[%s2176_s6 + $0x30] sm:$0xff]   ;;  %v1982_v57 = vld [vmem:[%s2176_s6 + $0x38] sm:$0xff]   ;;  %v1984_v59 = vld [vmem:[%s2176_s6 + $0x40] sm:$0xff]  }
  0x33   : > { %v1985_v60 = vld [vmem:[%s2176_s6 + $0x88] sm:$0xff]   ;;  %v1986_v61 = vld [vmem:[%s2176_s6 + $0x90] sm:$0xff]   ;;  %v1987_v62 = vld [vmem:[%s2176_s6 + $0xd8] sm:$0xff]  }
  0x34   : > { %v1988_v63 = vld [vmem:[%s2176_s6 + $0x98] sm:$0xff]   ;;  %v1989_v0 = vld [vmem:[%s2176_s6 + $0xe0] sm:$0xff]   ;;  %v1991_v2 = vld [vmem:[%s2176_s6 + $0xe8] sm:$0xff]  }
  0x35   : > { %1780 = vmatpush3.bf16.msra.mxu0 %v1967_v42  ;;  %1820 = vmatpush3.bf16.msra.mxu1 %v1967_v42  ;;  %v1990_v1 = vld [vmem:[%s2176_s6 + $0xa0] sm:$0xff]   ;;  %v1992_v3 = vld [vmem:[%s2176_s6 + $0xa8] sm:$0xff]   ;;  %v1993_v4 = vld [vmem:[%s2176_s6 + $0xf0] sm:$0xff]  }
  0x36   : > { %1857 = vmatprep.subr.bf16.mxu0 %v2028_v36  ;;  %1897 = vmatprep.subr.bf16.mxu1 %v2028_v36  ;;  %v1994_v5 = vld [vmem:[%s2176_s6 + $0xb0] sm:$0xff]   ;;  %v1995_v6 = vld [vmem:[%s2176_s6 + $0xf8] sm:$0xff]   ;;  %v1997_v8 = vld [vmem:[%s2176_s6 + $0x100] sm:$0xff]  }
  0x37   : > { %v1996_v7 = vld [vmem:[%s2176_s6 + $0xb8] sm:$0xff]   ;;  %v1998_v9 = vld [vmem:[%s2176_s6 + $0xc0] sm:$0xff]   ;;  %v1999_v10 = vld [vmem:[%s2176_s6 + $0x108] sm:$0xff]  }
  0x38   : > { %1782 = vmatmul.mubr.msk.bf16.vlgmr.msra.gmra.mxu0 %vm580_vm3, %v1968_v43  ;;  %1822 = vmatmul.mubr.msk.bf16.vlgmr.msra.gmra.mxu1 %vm580_vm3, %v1969_v44  ;;  %v2000_v11 = vld [vmem:[%s2176_s6 + $0xc8] sm:$0xff]   ;;  %v2001_v12 = vld [vmem:[%s2176_s6 + $0x110] sm:$0xff]   ;;  %v2003_v14 = vld [vmem:[%s2176_s6 + $0x118] sm:$0xff]  }
  0x39   : > { %1858 = vmatpush3.bf16.msra.mxu0 %v613_v41  ;;  %1898 = vmatpush3.bf16.msra.mxu1 %v613_v41  ;;  %v2002_v13 = vld [vmem:[%s2176_s6 + $0xd0] sm:$0xff]  }
  0x3a   : > { %1785 = vmatprep.mubr.msk.bf16.mxu0 %vm2030_vm2, %v2028_v36  ;;  %1825 = vmatprep.mubr.msk.bf16.mxu1 %vm2030_vm2, %v2028_v36 }
  0x3b   : > { %1859 = vmatprep.subr.bf16.mxu0 %v2028_v36  ;;  %1899 = vmatprep.subr.bf16.mxu1 %v2028_v36 }
  0x3d   : > { %1860 = vmatpush3.bf16.msra.mxu0 %v1967_v42  ;;  %1900 = vmatpush3.bf16.msra.mxu1 %v1967_v42 }
  0x40   : > { %1786 = vmatmul.mubr.msk.bf16.gmra.mxu0 %vm580_vm3, %v1970_v45  ;;  %1826 = vmatmul.mubr.msk.bf16.gmra.mxu1 %vm580_vm3, %v1971_v46 }
  0x41   : > { %1789 = vmatprep.mubr.msk.bf16.mxu0 %vm2030_vm2, %v2028_v36  ;;  %1829 = vmatprep.mubr.msk.bf16.mxu1 %vm2030_vm2, %v2028_v36 }
  0x48   : > { %1790 = vmatmul.mubr.msk.bf16.gmra.mxu0 %vm580_vm3, %v1972_v47  ;;  %1830 = vmatmul.mubr.msk.bf16.gmra.mxu1 %vm580_vm3, %v1973_v48 }
  0x49   : > { %1793 = vmatprep.mubr.msk.bf16.mxu0 %vm2030_vm2, %v2028_v36  ;;  %1833 = vmatprep.mubr.msk.bf16.mxu1 %vm2030_vm2, %v2028_v36 }
  0x50   : > { %1794 = vmatmul.mubr.msk.bf16.gmra.mxu0 %vm580_vm3, %v1974_v49  ;;  %1834 = vmatmul.mubr.msk.bf16.gmra.mxu1 %vm580_vm3, %v1975_v50 }
  0x51   : > { %1797 = vmatprep.mubr.msk.bf16.mxu0 %vm2030_vm2, %v2028_v36  ;;  %1837 = vmatprep.mubr.msk.bf16.mxu1 %vm2030_vm2, %v2028_v36 }
  0x58   : > { %1798 = vmatmul.mubr.msk.bf16.gmra.mxu0 %vm580_vm3, %v1976_v51  ;;  %1838 = vmatmul.mubr.msk.bf16.gmra.mxu1 %vm580_vm3, %v1977_v52 }
  0x59   : > { %1801 = vmatprep.mubr.msk.bf16.mxu0 %vm2030_vm2, %v2028_v36  ;;  %1841 = vmatprep.mubr.msk.bf16.mxu1 %vm2030_vm2, %v2028_v36 }
  0x60   : > { %1802 = vmatmul.mubr.msk.bf16.gmra.mxu0 %vm580_vm3, %v1978_v53  ;;  %1842 = vmatmul.mubr.msk.bf16.gmra.mxu1 %vm580_vm3, %v1979_v54 }
  0x61   : > { %1805 = vmatprep.mubr.msk.bf16.mxu0 %vm2030_vm2, %v2028_v36  ;;  %1845 = vmatprep.mubr.msk.bf16.mxu1 %vm2030_vm2, %v2028_v36 }
  0x68   : > { %1806 = vmatmul.mubr.msk.bf16.gmra.mxu0 %vm580_vm3, %v1980_v55  ;;  %1846 = vmatmul.mubr.msk.bf16.gmra.mxu1 %vm580_vm3, %v1981_v56 }
  0x69   : > { %1809 = vmatprep.mubr.msk.bf16.mxu0 %vm2030_vm2, %v2028_v36  ;;  %1849 = vmatprep.mubr.msk.bf16.mxu1 %vm2030_vm2, %v2028_v36 }
  0x70   : > { %1810 = vmatmul.mubr.msk.bf16.gmra.mxu0 %vm580_vm3, %v1982_v57  ;;  %1850 = vmatmul.mubr.msk.bf16.gmra.mxu1 %vm580_vm3, %v1983_v58 }
  0x71   : > { %1813 = vmatprep.mubr.msk.bf16.mxu0 %vm2030_vm2, %v2028_v36  ;;  %1853 = vmatprep.mubr.msk.bf16.mxu1 %vm2030_vm2, %v2028_v36 }
  0x78   : > { %1814 = vmatmul.mubr.msk.bf16.gmra.mxu0 %vm580_vm3, %v1984_v59  ;;  %1854 = vmatmul.mubr.msk.bf16.gmra.mxu1 %vm580_vm3, %v1985_v60 }
  0x79   : > { %1861 = vmatprep.mubr.msk.bf16.mxu0 %vm2030_vm2, %v2028_v36  ;;  %1901 = vmatprep.mubr.msk.bf16.mxu1 %vm2030_vm2, %v2028_v36 }
  0x80   : > { %1862 = vmatmul.mubr.msk.bf16.vlgmr.msra.gmra.mxu0 %vm580_vm3, %v1986_v61  ;;  %1902 = vmatmul.mubr.msk.bf16.vlgmr.msra.gmra.mxu1 %vm580_vm3, %v1987_v62 }
  0x81   : > { %1865 = vmatprep.mubr.msk.bf16.mxu0 %vm2030_vm2, %v2028_v36  ;;  %1905 = vmatprep.mubr.msk.bf16.mxu1 %vm2030_vm2, %v2028_v36 }
  0x88   : > { %1866 = vmatmul.mubr.msk.bf16.gmra.mxu0 %vm580_vm3, %v1988_v63  ;;  %1906 = vmatmul.mubr.msk.bf16.gmra.mxu1 %vm580_vm3, %v1989_v0 }
  0x89   : > { %1869 = vmatprep.mubr.msk.bf16.mxu0 %vm2030_vm2, %v2028_v36  ;;  %1909 = vmatprep.mubr.msk.bf16.mxu1 %vm2030_vm2, %v2028_v36 }
  0x90   : > { %1870 = vmatmul.mubr.msk.bf16.gmra.mxu0 %vm580_vm3, %v1990_v1  ;;  %1910 = vmatmul.mubr.msk.bf16.gmra.mxu1 %vm580_vm3, %v1991_v2 }
  0x91   : > { %1873 = vmatprep.mubr.msk.bf16.mxu0 %vm2030_vm2, %v2028_v36  ;;  %1913 = vmatprep.mubr.msk.bf16.mxu1 %vm2030_vm2, %v2028_v36 }
  0x98   : > { %1874 = vmatmul.mubr.msk.bf16.gmra.mxu0 %vm580_vm3, %v1992_v3  ;;  %1914 = vmatmul.mubr.msk.bf16.gmra.mxu1 %vm580_vm3, %v1993_v4 }
  0x99   : > { %1877 = vmatprep.mubr.msk.bf16.mxu0 %vm2030_vm2, %v2028_v36  ;;  %1917 = vmatprep.mubr.msk.bf16.mxu1 %vm2030_vm2, %v2028_v36 }
  0xa0   : > { %1878 = vmatmul.mubr.msk.bf16.gmra.mxu0 %vm580_vm3, %v1994_v5  ;;  %1918 = vmatmul.mubr.msk.bf16.gmra.mxu1 %vm580_vm3, %v1995_v6 }
  0xa1   : > { %1881 = vmatprep.mubr.msk.bf16.mxu0 %vm2030_vm2, %v2028_v36  ;;  %1921 = vmatprep.mubr.msk.bf16.mxu1 %vm2030_vm2, %v2028_v36 }
  0xa8   : > { %1882 = vmatmul.mubr.msk.bf16.gmra.mxu0 %vm580_vm3, %v1996_v7  ;;  %1922 = vmatmul.mubr.msk.bf16.gmra.mxu1 %vm580_vm3, %v1997_v8 }
  0xa9   : > { %1885 = vmatprep.mubr.msk.bf16.mxu0 %vm2030_vm2, %v2028_v36  ;;  %1925 = vmatprep.mubr.msk.bf16.mxu1 %vm2030_vm2, %v2028_v36 }
  0xb0   : > { %1886 = vmatmul.mubr.msk.bf16.gmra.mxu0 %vm580_vm3, %v1998_v9  ;;  %1926 = vmatmul.mubr.msk.bf16.gmra.mxu1 %vm580_vm3, %v1999_v10 }
  0xb1   : > { %1889 = vmatprep.mubr.msk.bf16.mxu0 %vm2030_vm2, %v2028_v36  ;;  %1929 = vmatprep.mubr.msk.bf16.mxu1 %vm2030_vm2, %v2028_v36 }
  0xb8   : > { %1890 = vmatmul.mubr.msk.bf16.gmra.mxu0 %vm580_vm3, %v2000_v11  ;;  %1930 = vmatmul.mubr.msk.bf16.gmra.mxu1 %vm580_vm3, %v2001_v12 }
  0xb9   : > { %1893 = vmatprep.mubr.msk.bf16.mxu0 %vm2030_vm2, %v2028_v36  ;;  %1933 = vmatprep.mubr.msk.bf16.mxu1 %vm2030_vm2, %v2028_v36 }
  0xc0   : > { %1894 = vmatmul.mubr.msk.bf16.gmra.mxu0 %vm580_vm3, %v2002_v13  ;;  %1934 = vmatmul.mubr.msk.bf16.gmra.mxu1 %vm580_vm3, %v2003_v14 }
  0xf8   : > { %v2324_v15 = vpop.f32.mrf.mxu0  ;;  %v2326_v16 = vpop.f32.mrf.mxu1 }
  0xf9   : > { %v916_v17 = vmax.f32 %v2324_v15, %v2326_v16 }
  0xfa   : > { %v1783_v18 = vpop.f32.mrf.mxu0  ;;  %v1823_v19 = vpop.f32.mrf.mxu1 }
  0xfc   : > { %v2330_v20 = vpop.f32.mrf.mxu0  ;;  %v2332_v21 = vpop.f32.mrf.mxu1 }
  0xfd   : > { %v917_v22 = vmax.f32 %v2330_v20, %v2332_v21 }
  0xfe   : > { %v1784_v23 = vpop.f32.mrf.mxu0  ;;  %v1824_v24 = vpop.f32.mrf.mxu1 }
 0x100   : > { %v2336_v25 = vpop.f32.mrf.mxu0  ;;  %v2338_v26 = vpop.f32.mrf.mxu1 }
 0x101   : > { %v918_v27 = vmax.f32 %v2336_v25, %v2338_v26 }
 0x102   : > { %v1787_v28 = vpop.f32.mrf.mxu0  ;;  %v1827_v29 = vpop.f32.mrf.mxu1 }
 0x104   : > { %v2342_v30 = vpop.f32.mrf.mxu0  ;;  %v2344_v31 = vpop.f32.mrf.mxu1 }
 0x105   : > { %v919_v32 = vmax.f32 %v2342_v30, %v2344_v31 }
 0x106   : > { %v1788_v33 = vpop.f32.mrf.mxu0  ;;  %v1828_v34 = vpop.f32.mrf.mxu1 }
 0x108   : > { %v2348_v35 = vpop.f32.mrf.mxu0  ;;  %v2350_v36 = vpop.f32.mrf.mxu1 }
 0x109   : > { %v920_v37 = vmax.f32 %v2348_v35, %v2350_v36 }
 0x10a   : > { %v1791_v38 = vpop.f32.mrf.mxu0  ;;  %v1831_v39 = vpop.f32.mrf.mxu1 }
 0x10c   : > { %v2354_v40 = vpop.f32.mrf.mxu0  ;;  %v2356_v41 = vpop.f32.mrf.mxu1 }
 0x10d   : > { %v921_v42 = vmax.f32 %v2354_v40, %v2356_v41 }
 0x10e   : > { %v1792_v43 = vpop.f32.mrf.mxu0  ;;  %v1832_v44 = vpop.f32.mrf.mxu1 }
 0x110   : > { %v2360_v45 = vpop.f32.mrf.mxu0  ;;  %v2362_v46 = vpop.f32.mrf.mxu1 }
 0x111   : > { %v922_v47 = vmax.f32 %v2360_v45, %v2362_v46 }
 0x112   : > { %v1795_v48 = vpop.f32.mrf.mxu0  ;;  %v1835_v49 = vpop.f32.mrf.mxu1 }
 0x114   : > { %v2366_v50 = vpop.f32.mrf.mxu0  ;;  %v2368_v51 = vpop.f32.mrf.mxu1 }
 0x115   : > { %v923_v52 = vmax.f32 %v2366_v50, %v2368_v51 }
 0x116   : > { %v1796_v53 = vpop.f32.mrf.mxu0  ;;  %v1836_v54 = vpop.f32.mrf.mxu1 }
 0x118   : > { %v2372_v55 = vpop.f32.mrf.mxu0  ;;  %v2374_v56 = vpop.f32.mrf.mxu1 }
 0x119   : > { %v924_v57 = vmax.f32 %v2372_v55, %v2374_v56 }
 0x11a   : > { %v1799_v58 = vpop.f32.mrf.mxu0  ;;  %v1839_v59 = vpop.f32.mrf.mxu1 }
 0x11c   : > { %v2378_v60 = vpop.f32.mrf.mxu0  ;;  %v2380_v61 = vpop.f32.mrf.mxu1 }
 0x11d   : > { %v925_v62 = vmax.f32 %v2378_v60, %v2380_v61 }
 0x11e   : > { %v1800_v63 = vpop.f32.mrf.mxu0  ;;  %v1840_v0 = vpop.f32.mrf.mxu1 }
 0x120   : > { %v2384_v1 = vpop.f32.mrf.mxu0  ;;  %v2386_v2 = vpop.f32.mrf.mxu1 }
 0x121   : > { %v926_v3 = vmax.f32 %v2384_v1, %v2386_v2 }
 0x122   : > { %v1803_v4 = vpop.f32.mrf.mxu0  ;;  %v1843_v5 = vpop.f32.mrf.mxu1 }
 0x124   : > { %v2390_v6 = vpop.f32.mrf.mxu0  ;;  %v2392_v7 = vpop.f32.mrf.mxu1 }
 0x125   : > { %v927_v8 = vmax.f32 %v2390_v6, %v2392_v7 }
 0x126   : > { %v1804_v9 = vpop.f32.mrf.mxu0  ;;  %v1844_v10 = vpop.f32.mrf.mxu1 }
 0x128   : > { %v2396_v11 = vpop.f32.mrf.mxu0  ;;  %v2398_v12 = vpop.f32.mrf.mxu1 }
 0x129   : > { %v928_v13 = vmax.f32 %v2396_v11, %v2398_v12 }
 0x12a   : > { %v1807_v14 = vpop.f32.mrf.mxu0  ;;  %v1847_v18 = vpop.f32.mrf.mxu1 }
 0x12c   : > { %v2402_v19 = vpop.f32.mrf.mxu0  ;;  %v2404_v23 = vpop.f32.mrf.mxu1 }
 0x12d   : > { %v929_v24 = vmax.f32 %v2402_v19, %v2404_v23 }
 0x12e   : > { %v1808_v28 = vpop.f32.mrf.mxu0  ;;  %v1848_v29 = vpop.f32.mrf.mxu1 }
 0x130   : > { %v2408_v33 = vpop.f32.mrf.mxu0  ;;  %v2410_v34 = vpop.f32.mrf.mxu1 }
 0x131   : > { %v930_v38 = vmax.f32 %v2408_v33, %v2410_v34 }
 0x132   : > { %v1811_v39 = vpop.f32.mrf.mxu0  ;;  %v1851_v43 = vpop.f32.mrf.mxu1 }
 0x133   : > { %v2440_v43 = vld [vmem:[%s2564_s2] ss:$0 sm:$0xff] }
 0x134   : > { %v2414_v44 = vpop.f32.mrf.mxu0  ;;  %v2416_v48 = vpop.f32.mrf.mxu1 }
 0x135   : > { %v931_v49 = vmax.f32 %v2414_v44, %v2416_v48 }
 0x136   : > { %v1812_v53 = vpop.f32.mrf.mxu0  ;;  %v1852_v54 = vpop.f32.mrf.mxu1 }
 0x138   : > { %v2420_v58 = vpop.f32.mrf.mxu0  ;;  %v2422_v59 = vpop.f32.mrf.mxu1 }
 0x139   : > { %v932_v63 = vmax.f32 %v2420_v58, %v2422_v59 }
 0x13a   : > { %v1815_v0 = vpop.f32.mrf.mxu0  ;;  %v1855_v4 = vpop.f32.mrf.mxu1 }
 0x13c   : > { %v2428_v5 = vpop.f32.mrf.mxu0  ;;  %v2430_v9 = vpop.f32.mrf.mxu1 }
 0x13e   : > { %v1816_v14 = vpop.f32.mrf.mxu0  ;;  %v1856_v18 = vpop.f32.mrf.mxu1 }
 0x140   : > { %v1059_v28 = vpop.f32.mrf.mxu0  ;;  %v1273_v29 = vpop.f32.mrf.mxu1 }
 0x141   : > { %v1130_v39 = vmax.f32 %v916_v17, %v1059_v28 }
 0x142   : > { %v1863_v53 = vpop.f32.mrf.mxu0  ;;  %v1903_v54 = vpop.f32.mrf.mxu1 }
 0x143   : > { %v1344_v0 = vmax.f32 %v1130_v39, %v1273_v29 }
 0x144   : > { %v1062_v4 = vpop.f32.mrf.mxu0  ;;  %v1276_v10 = vpop.f32.mrf.mxu1 }
 0x145   : > { %v1369_v14 = vadd.f32 %v2440_v43, %v1344_v0  ;;  %v1131_v18 = vmax.f32 %v917_v22, %v1062_v4 }
 0x146   : > { %v1864_v15 = vpop.f32.mrf.mxu0  ;;  %v1904_v16 = vpop.f32.mrf.mxu1 }
 0x147   : > { %v1387_v17 = vmax.f32 %v1369_v14, 0.0  ;;  %v1345_v28 = vmax.f32 %v1131_v18, %v1276_v10 }
 0x148   : > { %v1067_v29 = vpop.f32.mrf.mxu0  ;;  %v1281_v39 = vpop.f32.mrf.mxu1 }
 0x149   : > { %v1715_v53 = vpack.c.bf16 %v1387_v17, %v1387_v17  ;;  %v1370_v54 = vadd.f32 %v2440_v43, %v1345_v28  ;;  %v1132_v20 = vmax.f32 %v918_v27, %v1067_v29 }
 0x14a   : > { %v1867_v21 = vpop.f32.mrf.mxu0  ;;  %v1907_v22 = vpop.f32.mrf.mxu1 }
 0x14b   : > { %1478 = vst.msk [vmem:[%s2449_s14] sm:$0xf] %vm1477_vm4, %v1715_v53  ;;  %v1388_v10 = vmax.f32 %v1370_v54, 0.0  ;;  %v1346_v0 = vmax.f32 %v1132_v20, %v1281_v39 }
 0x14c   : > { %v1070_v4 = vpop.f32.mrf.mxu0  ;;  %v1284_v14 = vpop.f32.mrf.mxu1 }
 0x14d   : > { %v1716_v18 = vpack.c.bf16 %v1388_v10, %v1388_v10  ;;  %v1371_v15 = vadd.f32 %v2440_v43, %v1346_v0  ;;  %v1133_v16 = vmax.f32 %v919_v32, %v1070_v4 }
 0x14e   : > { %v1868_v17 = vpop.f32.mrf.mxu0  ;;  %v1908_v28 = vpop.f32.mrf.mxu1 }
 0x14f   : > { %1479 = vst.msk [vmem:[%s2449_s14 + $0x4] sm:$0xf] %vm1477_vm4, %v1716_v18  ;;  %v1389_v25 = vmax.f32 %v1371_v15, 0.0  ;;  %v1347_v26 = vmax.f32 %v1133_v16, %v1284_v14 }
 0x150   : > { %v1075_v27 = vpop.f32.mrf.mxu0  ;;  %v1289_v29 = vpop.f32.mrf.mxu1 }
 0x151   : > { %v1717_v39 = vpack.c.bf16 %v1389_v25, %v1389_v25  ;;  %v1372_v53 = vadd.f32 %v2440_v43, %v1347_v26  ;;  %v1134_v54 = vmax.f32 %v920_v37, %v1075_v27 }
 0x152   : > { %v1871_v20 = vpop.f32.mrf.mxu0  ;;  %v1911_v21 = vpop.f32.mrf.mxu1 }
 0x153   : > { %1480 = vst.msk [vmem:[%s2449_s14 + $0x8] sm:$0xf] %vm1477_vm4, %v1717_v39  ;;  %v1390_v30 = vmax.f32 %v1372_v53, 0.0  ;;  %v1348_v31 = vmax.f32 %v1134_v54, %v1289_v29 }
 0x154   : > { %v1078_v32 = vpop.f32.mrf.mxu0  ;;  %v1292_v22 = vpop.f32.mrf.mxu1 }
 0x155   : > { %v1718_v10 = vpack.c.bf16 %v1390_v30, %v1390_v30  ;;  %v1373_v0 = vadd.f32 %v2440_v43, %v1348_v31  ;;  %v1135_v4 = vmax.f32 %v921_v42, %v1078_v32 }
 0x156   : > { %v1872_v14 = vpop.f32.mrf.mxu0  ;;  %v1912_v18 = vpop.f32.mrf.mxu1 }
 0x157   : > { %1481 = vst.msk [vmem:[%s2449_s14 + $0xc] sm:$0xf] %vm1477_vm4, %v1718_v10  ;;  %v1391_v35 = vmax.f32 %v1373_v0, 0.0  ;;  %v1349_v36 = vmax.f32 %v1135_v4, %v1292_v22 }
 0x158   : > { %v1083_v37 = vpop.f32.mrf.mxu0  ;;  %v1297_v15 = vpop.f32.mrf.mxu1 }
 0x159   : > { %v1719_v16 = vpack.c.bf16 %v1391_v35, %v1391_v35  ;;  %v1374_v17 = vadd.f32 %v2440_v43, %v1349_v36  ;;  %v1136_v28 = vmax.f32 %v922_v47, %v1083_v37 }
 0x15a   : > { %v1875_v25 = vpop.f32.mrf.mxu0  ;;  %v1915_v26 = vpop.f32.mrf.mxu1 }
 0x15b   : > { %1482 = vst.msk [vmem:[%s2449_s14 + $0x10] sm:$0xf] %vm1477_vm4, %v1719_v16  ;;  %v1392_v40 = vmax.f32 %v1374_v17, 0.0  ;;  %v1350_v41 = vmax.f32 %v1136_v28, %v1297_v15 }
 0x15c   : > { %v1086_v42 = vpop.f32.mrf.mxu0  ;;  %v1300_v27 = vpop.f32.mrf.mxu1 }
 0x15d   : > { %v1720_v29 = vpack.c.bf16 %v1392_v40, %v1392_v40  ;;  %v1375_v39 = vadd.f32 %v2440_v43, %v1350_v41  ;;  %v1137_v53 = vmax.f32 %v923_v52, %v1086_v42 }
 0x15e   : > { %v1876_v54 = vpop.f32.mrf.mxu0  ;;  %v1916_v20 = vpop.f32.mrf.mxu1 }
 0x15f   : > { %1483 = vst.msk [vmem:[%s2449_s14 + $0x14] sm:$0xf] %vm1477_vm4, %v1720_v29  ;;  %v1393_v45 = vmax.f32 %v1375_v39, 0.0  ;;  %v1351_v46 = vmax.f32 %v1137_v53, %v1300_v27 }
 0x160   : > { %v1091_v47 = vpop.f32.mrf.mxu0  ;;  %v1305_v21 = vpop.f32.mrf.mxu1 }
 0x161   : > { %v1721_v30 = vpack.c.bf16 %v1393_v45, %v1393_v45  ;;  %v1376_v31 = vadd.f32 %v2440_v43, %v1351_v46  ;;  %v1138_v32 = vmax.f32 %v924_v57, %v1091_v47 }
 0x162   : > { %v1879_v22 = vpop.f32.mrf.mxu0  ;;  %v1919_v10 = vpop.f32.mrf.mxu1 }
 0x163   : > { %1484 = vst.msk [vmem:[%s2449_s14 + $0x18] sm:$0xf] %vm1477_vm4, %v1721_v30  ;;  %v1394_v50 = vmax.f32 %v1376_v31, 0.0  ;;  %v1352_v51 = vmax.f32 %v1138_v32, %v1305_v21 }
 0x164   : > { %v1094_v52 = vpop.f32.mrf.mxu0  ;;  %v1308_v0 = vpop.f32.mrf.mxu1 }
 0x165   : > { %v1722_v4 = vpack.c.bf16 %v1394_v50, %v1394_v50  ;;  %v1377_v14 = vadd.f32 %v2440_v43, %v1352_v51  ;;  %v1139_v18 = vmax.f32 %v925_v62, %v1094_v52 }
 0x166   : > { %v1880_v35 = vpop.f32.mrf.mxu0  ;;  %v1920_v36 = vpop.f32.mrf.mxu1 }
 0x167   : > { %1485 = vst.msk [vmem:[%s2449_s14 + $0x1c] sm:$0xf] %vm1477_vm4, %v1722_v4  ;;  %v1395_v55 = vmax.f32 %v1377_v14, 0.0  ;;  %v1353_v56 = vmax.f32 %v1139_v18, %v1308_v0 }
 0x168   : > { %v1099_v57 = vpop.f32.mrf.mxu0  ;;  %v1313_v37 = vpop.f32.mrf.mxu1 }
 0x169   : > { %v1723_v15 = vpack.c.bf16 %v1395_v55, %v1395_v55  ;;  %v1378_v16 = vadd.f32 %v2440_v43, %v1353_v56  ;;  %v1140_v17 = vmax.f32 %v926_v3, %v1099_v57 }
 0x16a   : > { %v1883_v28 = vpop.f32.mrf.mxu0  ;;  %v1923_v25 = vpop.f32.mrf.mxu1 }
 0x16b   : > { %1486 = vst.msk [vmem:[%s2449_s14 + $0x20] sm:$0xf] %vm1477_vm4, %v1723_v15  ;;  %v1396_v60 = vmax.f32 %v1378_v16, 0.0  ;;  %v1354_v61 = vmax.f32 %v1140_v17, %v1313_v37 }
 0x16c   : > { %v1102_v62 = vpop.f32.mrf.mxu0  ;;  %v1316_v26 = vpop.f32.mrf.mxu1 }
 0x16d   : > { %v1724_v40 = vpack.c.bf16 %v1396_v60, %v1396_v60  ;;  %v1379_v41 = vadd.f32 %v2440_v43, %v1354_v61  ;;  %v1141_v42 = vmax.f32 %v927_v8, %v1102_v62  ;;  %v2566_v62 = vmax.f32 %v2428_v5, %v2430_v9 }
 0x16e   : > { %v1884_v27 = vpop.f32.mrf.mxu0  ;;  %v1924_v29 = vpop.f32.mrf.mxu1 }
 0x16f   : > { %1487 = vst.msk [vmem:[%s2449_s14 + $0x24] sm:$0xf] %vm1477_vm4, %v1724_v40  ;;  %v1397_v1 = vmax.f32 %v1379_v41, 0.0  ;;  %v1355_v2 = vmax.f32 %v1141_v42, %v1316_v26 }
 0x170   : > { %v1107_v3 = vpop.f32.mrf.mxu0  ;;  %v1321_v39 = vpop.f32.mrf.mxu1 }
 0x171   : > { %v1725_v53 = vpack.c.bf16 %v1397_v1, %v1397_v1  ;;  %v1380_v54 = vadd.f32 %v2440_v43, %v1355_v2  ;;  %v1142_v20 = vmax.f32 %v928_v13, %v1107_v3 }
 0x172   : > { %v1887_v45 = vpop.f32.mrf.mxu0  ;;  %v1927_v46 = vpop.f32.mrf.mxu1 }
 0x173   : > { %1488 = vst.msk [vmem:[%s2449_s14 + $0x28] sm:$0xf] %vm1477_vm4, %v1725_v53  ;;  %v1398_v6 = vmax.f32 %v1380_v54, 0.0  ;;  %v1356_v7 = vmax.f32 %v1142_v20, %v1321_v39 }
 0x174   : > { %v1110_v8 = vpop.f32.mrf.mxu0  ;;  %v1324_v47 = vpop.f32.mrf.mxu1 }
 0x175   : > { %v1726_v21 = vpack.c.bf16 %v1398_v6, %v1398_v6  ;;  %v1381_v30 = vadd.f32 %v2440_v43, %v1356_v7  ;;  %v1143_v31 = vmax.f32 %v929_v24, %v1110_v8 }
 0x176   : > { %v1888_v32 = vpop.f32.mrf.mxu0  ;;  %v1928_v22 = vpop.f32.mrf.mxu1 }
 0x177   : > { %1489 = vst.msk [vmem:[%s2449_s14 + $0x2c] sm:$0xf] %vm1477_vm4, %v1726_v21  ;;  %v1399_v11 = vmax.f32 %v1381_v30, 0.0  ;;  %v1357_v12 = vmax.f32 %v1143_v31, %v1324_v47 }
 0x178   : > { %v1115_v13 = vpop.f32.mrf.mxu0  ;;  %v1329_v10 = vpop.f32.mrf.mxu1 }
 0x179   : > { %v1727_v50 = vpack.c.bf16 %v1399_v11, %v1399_v11  ;;  %v1382_v51 = vadd.f32 %v2440_v43, %v1357_v12  ;;  %v1144_v52 = vmax.f32 %v930_v38, %v1115_v13 }
 0x17a   : > { %v1891_v0 = vpop.f32.mrf.mxu0  ;;  %v1931_v4 = vpop.f32.mrf.mxu1 }
 0x17b   : > { %1490 = vst.msk [vmem:[%s2449_s14 + $0x30] sm:$0xf] %vm1477_vm4, %v1727_v50  ;;  %v1400_v19 = vmax.f32 %v1382_v51, 0.0  ;;  %v1358_v23 = vmax.f32 %v1144_v52, %v1329_v10 }
 0x17c   : > { %v1118_v24 = vpop.f32.mrf.mxu0  ;;  %v1332_v14 = vpop.f32.mrf.mxu1 }
 0x17d   : > { %v1728_v18 = vpack.c.bf16 %v1400_v19, %v1400_v19  ;;  %v1383_v35 = vadd.f32 %v2440_v43, %v1358_v23  ;;  %v1145_v36 = vmax.f32 %v931_v49, %v1118_v24 }
 0x17e   : > { %v1892_v55 = vpop.f32.mrf.mxu0  ;;  %v1932_v56 = vpop.f32.mrf.mxu1 }
 0x17f   : > { %1491 = vst.msk [vmem:[%s2449_s14 + $0x34] sm:$0xf] %vm1477_vm4, %v1728_v18  ;;  %v1401_v33 = vmax.f32 %v1383_v35, 0.0  ;;  %v1359_v34 = vmax.f32 %v1145_v36, %v1332_v14 }
 0x180   : > { %v1123_v38 = vpop.f32.mrf.mxu0  ;;  %v1337_v57 = vpop.f32.mrf.mxu1 }
 0x181   : > { %v1729_v37 = vpack.c.bf16 %v1401_v33, %v1401_v33  ;;  %v1384_v15 = vadd.f32 %v2440_v43, %v1359_v34  ;;  %v1146_v16 = vmax.f32 %v932_v63, %v1123_v38 }
 0x182   : > { %v1895_v17 = vpop.f32.mrf.mxu0  ;;  %v1935_v28 = vpop.f32.mrf.mxu1 }
 0x183   : > { %1492 = vst.msk [vmem:[%s2449_s14 + $0x38] sm:$0xf] %vm1477_vm4, %v1729_v37  ;;  %v1402_v44 = vmax.f32 %v1384_v15, 0.0  ;;  %v1360_v48 = vmax.f32 %v1146_v16, %v1337_v57 }
 0x184   : > { %v1126_v49 = vpop.f32.mrf.mxu0  ;;  %v1340_v25 = vpop.f32.mrf.mxu1 }
 0x185   : > { %v1730_v60 = vpack.c.bf16 %v1402_v44, %v1402_v44  ;;  %v1385_v61 = vadd.f32 %v2440_v43, %v1360_v48  ;;  %v1147_v26 = vmax.f32 %v2566_v62, %v1126_v49 }
 0x186   : > { %v1896_v40 = vpop.f32.mrf.mxu0  ;;  %v1936_v58 = vpop.f32.mrf.mxu1 }
 0x187   : > { %1493 = vst.msk [vmem:[%s2449_s14 + $0x3c] sm:$0xf] %vm1477_vm4, %v1730_v60  ;;  %v1403_v59 = vmax.f32 %v1385_v61, 0.0  ;;  %v1361_v63 = vmax.f32 %v1147_v26, %v1340_v25 }
 0x189   : > { %v1731_v41 = vpack.c.bf16 %v1403_v59, %v1403_v59  ;;  %v1386_v42 = vadd.f32 %v2440_v43, %v1361_v63 }
 0x18b   : > { %1494 = vst.msk [vmem:[%s2449_s14 + $0x40] sm:$0xf] %vm1477_vm4, %v1731_v41  ;;  %v1404_v27 = vmax.f32 %v1386_v42, 0.0 }
 0x18d   : > { %v1732_v29 = vpack.c.bf16 %v1404_v27, %v1404_v27 }
 0x18f   : > { %1495 = vst.msk [vmem:[%s2449_s14 + $0x44] sm:$0xf] %vm1477_vm4, %v1732_v29 }
 0x190 PF: > { %p10_p9 = scmp.ge.s32.totalorder %s2068_s16, 4   ;;  %s2567_s12 = smov %s2022_s13 }
 0x191   : > { %s2568_s13 = smov %s2077_s19  ;;  %s2569_s14 = smov %s2068_s16 }
 0x192   :  { %12 = sbr.rel (!%p10_p9) target bundleno = 2 (0x2), region = 111 }

// kernel: net_forward.4
= control target key start
LH: loop header
LB: loop body
LE: loop exit
PB: predicated region body
PF: predicated region fallthrough
CT: control target
= control target key end

     0   :  { %vm180_vm0 = vcmask 1041408   ;;  %vm155_vm1 = vcmask 818176   ;;  %vm1489_vm2 = vcmask 1040384   ;;  %vm2035_vm3 = vcmask 1041409   ;;  %s3261_s1 = inlined_call_operand.vmem [shape: bf16[5,100,128], index: 1, kind: input, shape index: {}]   ;;  %s3262_s0 = inlined_call_operand.vmem [shape: bf16[2,12,8,100], index: 0, kind: input, shape index: {}]   ;;  %s3263_s2 = inlined_call_operand.vmem [shape: f32[1,128], index: 2, kind: input, shape index: {}]   ;;  %s3264_s3 = inlined_call_operand.vmem [shape: bf16[2,16,128], index: 3, kind: output, shape index: {}]  }
   0x1   :  { %v2596_v0 = vld [vmem:[%s3261_s1 + $0x64] ss:$0 sps:$4 sm:$0x33]   ;;  %v2598_v1 = vld [vmem:[%s3261_s1 + $0x5c] sm:$0xff]   ;;  %v2599_v3 = vld [vmem:[%s3261_s1 + $0x28] sm:$0xff]   ;;  %vm2037_vm4 = vcmask 1042434  }
   0x2   :  { %v2597_v2 = vld [vmem:[%s3261_s1 + $0x30] ss:$0 sps:$4 sm:$0x33]   ;;  %2589 = vmatprep.subr.msk.bf16.mxu0 %vm180_vm0, %v2596_v0  ;;  %v182_v4 = vsel %vm180_vm0, %v2596_v0, 0  ;;  %v2600_v5 = vld [vmem:[%s3261_s1 + $0x54] sm:$0xff]   ;;  %v2601_v7 = vld [vmem:[%s3261_s1 + $0x20] sm:$0xff]  }
   0x3   :  { %2590 = vmatprep.subr.msk.bf16.mxu1 %vm180_vm0, %v2597_v2  ;;  %2426 = vmatpush3.bf16.msra.mxu0 %v182_v4  ;;  %v385_v6 = vsel %vm180_vm0, %v2597_v2, 0  ;;  %v2602_v8 = vld [vmem:[%s3261_s1 + $0x4c] sm:$0xff]   ;;  %v2603_v9 = vld [vmem:[%s3261_s1 + $0x18] sm:$0xff]   ;;  %v2604_v10 = vld [vmem:[%s3261_s1 + $0x44] sm:$0xff]   ;;  %vm2039_vm5 = vcmask 1043459   ;;  %vm2041_vm6 = vcmask 1044484  }
   0x4   :  { %2456 = vmatpush3.bf16.msra.mxu1 %v385_v6  ;;  %2427 = vmatprep.subr.bf16.mxu0 %v2598_v1  ;;  %v2605_v11 = vld [vmem:[%s3261_s1 + $0x10] sm:$0xff]   ;;  %v2610_v12 = vld [vmem:[%s3262_s0 + $0x4] sm:$0xff]   ;;  %v2606_v14 = vld [vmem:[%s3261_s1 + $0x3c] sm:$0xff]   ;;  %vm2043_vm7 = vcmask 1045509   ;;  %vm2045_vm8 = vcmask 1046534   ;;  %vm2047_vm9 = vcmask 1047559  }
   0x5   :  { %2457 = vmatprep.subr.bf16.mxu1 %v2599_v3  ;;  %v2611_v13 = vld [vmem:[%s3262_s0] sm:$0xff]   ;;  %v2607_v15 = vld [vmem:[%s3261_s1 + $0x8] sm:$0xff]   ;;  %2439 = vmatprep.mubr.msk.bf16.mxu0 %vm155_vm1, %v2610_v12  ;;  %v2608_v16 = vld [vmem:[%s3261_s1 + $0x34] sm:$0xff]  }
   0x6   :  { %2469 = vmatprep.mubr.msk.bf16.mxu1 %vm155_vm1, %v2611_v13  ;;  %v2609_v17 = vld [vmem:[%s3261_s1] sm:$0xff]   ;;  %v2614_v18 = vld [vmem:[%s3261_s1 + $0x98] ss:$0 sps:$4 sm:$0x33]   ;;  %v2612_v20 = vld [vmem:[%s3262_s0 + $0xc] sm:$0xff]  }
   0x7   :  { %2428 = vmatpush3.bf16.msra.mxu0 %v2598_v1  ;;  %v2615_v19 = vld [vmem:[%s3261_s1 + $0xcc] ss:$0 sps:$4 sm:$0x33]   ;;  %v2616_v22 = vld [vmem:[%s3261_s1 + $0x90] sm:$0xff]   ;;  %v619_v23 = vsel %vm180_vm0, %v2614_v18, 0  ;;  %v2617_v24 = vld [vmem:[%s3261_s1 + $0xc4] sm:$0xff]  }
   0x8   :  { %2458 = vmatpush3.bf16.msra.mxu1 %v2599_v3  ;;  %2429 = vmatprep.subr.bf16.mxu0 %v2600_v5  ;;  %v2613_v21 = vld [vmem:[%s3262_s0 + $0x8] sm:$0xff]   ;;  %v869_v25 = vsel %vm180_vm0, %v2615_v19, 0  ;;  %v2618_v26 = vld [vmem:[%s3262_s0 + $0x14] sm:$0xff]   ;;  %v2620_v28 = vld [vmem:[%s3262_s0 + $0x1c] sm:$0xff]  }
   0x9   :  { %2459 = vmatprep.subr.bf16.mxu1 %v2601_v7  ;;  %v2619_v27 = vld [vmem:[%s3262_s0 + $0x10] sm:$0xff]   ;;  %v2622_v29 = vld [vmem:[%s3261_s1 + $0x88] sm:$0xff]   ;;  %v2623_v30 = vld [vmem:[%s3261_s1 + $0xbc] sm:$0xff]  }
   0xa   :  { %v2621_v31 = vld [vmem:[%s3262_s0 + $0x18] sm:$0xff]   ;;  %v2624_v32 = vld [vmem:[%s3261_s1 + $0x80] sm:$0xff]   ;;  %v2627_v35 = vld [vmem:[%s3262_s0 + $0x30] sm:$0xff]  }
   0xb   :  { %2430 = vmatpush3.bf16.msra.mxu0 %v2600_v5  ;;  %v2625_v33 = vld [vmem:[%s3261_s1 + $0xb4] sm:$0xff]   ;;  %v2628_v36 = vld [vmem:[%s3262_s0 + $0x3c] sm:$0xff]   ;;  %v2631_v38 = vld [vmem:[%s3261_s1 + $0xac] sm:$0xff]  }
   0xc   :  { %2460 = vmatpush3.bf16.msra.mxu1 %v2601_v7  ;;  %2431 = vmatprep.subr.bf16.mxu0 %v2602_v8  ;;  %v2626_v34 = vld [vmem:[%s3262_s0 + $0x34] sm:$0xff]   ;;  %v2632_v40 = vld [vmem:[%s3262_s0 + $0x44] sm:$0xff]   ;;  %v2639_v45 = vld [vmem:[%s3261_s1 + $0x9c] sm:$0xff]  }
   0xd   :  { %2461 = vmatprep.subr.bf16.mxu1 %v2603_v9  ;;  %v2630_v37 = vld [vmem:[%s3261_s1 + $0x78] sm:$0xff]   ;;  %v2633_v41 = vld [vmem:[%s3262_s0 + $0x40] sm:$0xff]   ;;  %v2634_v42 = vld [vmem:[%s3261_s1 + $0x70] sm:$0xff]  }
   0xe   :  { %v2629_v39 = vld [vmem:[%s3262_s0 + $0x38] sm:$0xff]   ;;  %v2635_v43 = vld [vmem:[%s3261_s1 + $0xa4] sm:$0xff]   ;;  %v2636_v46 = vld [vmem:[%s3262_s0 + $0x4c] sm:$0xff]  }
   0xf   :  { %2432 = vmatpush3.bf16.msra.mxu0 %v2602_v8  ;;  %v2638_v44 = vld [vmem:[%s3261_s1 + $0x68] sm:$0xff]   ;;  %v2644_v48 = vld [vmem:[%s3261_s1 + $0x100] ss:$0 sps:$4 sm:$0x33]   ;;  %v2642_v51 = vld [vmem:[%s3262_s0 + $0x10] sm:$0xff]  }
  0x10   :  { %2462 = vmatpush3.bf16.msra.mxu1 %v2603_v9  ;;  %2433 = vmatprep.subr.bf16.mxu0 %v2604_v10  ;;  %v2637_v47 = vld [vmem:[%s3262_s0 + $0x48] sm:$0xff]   ;;  %v2643_v52 = vld [vmem:[%s3262_s0 + $0x14] sm:$0xff]   ;;  %v1119_v53 = vsel %vm180_vm0, %v2644_v48, 0  ;;  %v2647_v56 = vld [vmem:[%s3262_s0 + $0x1c] sm:$0xff]  }
  0x11   :  { %2463 = vmatprep.subr.bf16.mxu1 %v2605_v11  ;;  %v2640_v49 = vld [vmem:[%s3262_s0 + $0x8] sm:$0xff]   ;;  %v2645_v54 = vld [vmem:[%s3261_s1 + $0xf8] sm:$0xff]   ;;  %v2650_v57 = vld [vmem:[%s3261_s1 + $0xf0] sm:$0xff]  }
  0x12   :  { %v2641_v50 = vld [vmem:[%s3262_s0 + $0xc] sm:$0xff]   ;;  %v2646_v55 = vld [vmem:[%s3262_s0 + $0x18] sm:$0xff]   ;;  %v2648_v58 = vld [vmem:[%s3262_s0 + $0x20] sm:$0xff]  }
  0x13   :  { %2434 = vmatpush3.bf16.msra.mxu0 %v2604_v10  ;;  %v2649_v59 = vld [vmem:[%s3262_s0 + $0x24] sm:$0xff]   ;;  %v2652_v61 = vld [vmem:[%s3262_s0 + $0x38] sm:$0xff]   ;;  %v2658_v3 = vld [vmem:[%s3262_s0 + $0x4c] sm:$0xff]  }
  0x14   :  { %2464 = vmatpush3.bf16.msra.mxu1 %v2605_v11  ;;  %2435 = vmatprep.subr.bf16.mxu0 %v2606_v14  ;;  %v2651_v60 = vld [vmem:[%s3261_s1 + $0xe8] sm:$0xff]   ;;  %v2653_v62 = vld [vmem:[%s3262_s0 + $0x3c] sm:$0xff]   ;;  %v2662_v5 = vld [vmem:[%s3261_s1 + $0xd0] sm:$0xff]  }
  0x15   :  { %2465 = vmatprep.subr.bf16.mxu1 %v2607_v15  ;;  %v2656_v63 = vld [vmem:[%s3261_s1 + $0xe0] sm:$0xff]   ;;  %v2657_v2 = vld [vmem:[%s3262_s0 + $0x48] sm:$0xff]   ;;  %v2659_v4 = vld [vmem:[%s3261_s1 + $0xd8] sm:$0xff]  }
  0x16   :  { %v2654_v0 = vld [vmem:[%s3262_s0 + $0x40] sm:$0xff]   ;;  %v2660_v6 = vld [vmem:[%s3262_s0 + $0x50] sm:$0xff]   ;;  %v2665_v10 = vld [vmem:[%s3262_s0 + $0x18] sm:$0xff]  }
  0x17   :  { %2436 = vmatpush3.bf16.msra.mxu0 %v2606_v14  ;;  %v2655_v1 = vld [vmem:[%s3262_s0 + $0x44] sm:$0xff]   ;;  %v2661_v7 = vld [vmem:[%s3262_s0 + $0x54] sm:$0xff]  }
  0x18   :  { %2466 = vmatpush3.bf16.msra.mxu1 %v2607_v15  ;;  %2437 = vmatprep.subr.bf16.mxu0 %v2608_v16  ;;  %v2663_v8 = vld [vmem:[%s3262_s0 + $0x10] sm:$0xff]   ;;  %v2664_v9 = vld [vmem:[%s3262_s0 + $0x40] sm:$0xff]   ;;  %v2666_v11 = vld [vmem:[%s3262_s0 + $0x48] sm:$0xff]  }
  0x19   :  { %2467 = vmatprep.subr.bf16.mxu1 %v2609_v17  ;;  %v2667_v12 = vld [vmem:[%s3262_s0 + $0x20] sm:$0xff]   ;;  %v2668_v13 = vld [vmem:[%s3262_s0 + $0x50] sm:$0xff]   ;;  %v2669_v14 = vld [vmem:[%s3262_s0 + $0x28] sm:$0xff]  }
  0x1a   :  { %v2670_v15 = vld [vmem:[%s3262_s0 + $0x58] sm:$0xff]  }
  0x1b   :  { %2438 = vmatpush3.bf16.msra.mxu0 %v2608_v16 }
  0x1c   :  { %2468 = vmatpush3.bf16.msra.mxu1 %v2609_v17  ;;  %2591 = vmatprep.subr.msk.bf16.mxu0 %vm180_vm0, %v2614_v18 }
  0x1d   :  { %2592 = vmatprep.subr.msk.bf16.mxu1 %vm180_vm0, %v2615_v19 }
  0x1e   :  { %2440 = vmatmul.mubr.msk.bf16.vlgmr.msra.gmra.mxu0 %vm155_vm1, %v2612_v20 }
  0x1f   :  { %2470 = vmatmul.mubr.msk.bf16.vlgmr.msra.gmra.mxu1 %vm155_vm1, %v2613_v21  ;;  %2486 = vmatpush3.bf16.msra.mxu0 %v619_v23 }
  0x20   :  { %2516 = vmatpush3.bf16.msra.mxu1 %v869_v25  ;;  %2487 = vmatprep.subr.bf16.mxu0 %v2616_v22 }
  0x21   :  { %2517 = vmatprep.subr.bf16.mxu1 %v2617_v24  ;;  %2443 = vmatprep.mubr.msk.bf16.mxu0 %vm155_vm1, %v2618_v26 }
  0x22   :  { %2473 = vmatprep.mubr.msk.bf16.mxu1 %vm155_vm1, %v2619_v27 }
  0x23   :  { %2488 = vmatpush3.bf16.msra.mxu0 %v2616_v22 }
  0x24   :  { %2518 = vmatpush3.bf16.msra.mxu1 %v2617_v24  ;;  %2489 = vmatprep.subr.bf16.mxu0 %v2622_v29 }
  0x25   :  { %2519 = vmatprep.subr.bf16.mxu1 %v2623_v30 }
  0x26   :  { %2444 = vmatmul.mubr.msk.bf16.gmra.mxu0 %vm155_vm1, %v2620_v28 }
  0x27   :  { %2474 = vmatmul.mubr.msk.bf16.gmra.mxu1 %vm155_vm1, %v2621_v31  ;;  %2490 = vmatpush3.bf16.msra.mxu0 %v2622_v29 }
  0x28   :  { %2520 = vmatpush3.bf16.msra.mxu1 %v2623_v30  ;;  %2491 = vmatprep.subr.bf16.mxu0 %v2624_v32 }
  0x29   :  { %2521 = vmatprep.subr.bf16.mxu1 %v2625_v33  ;;  %2447 = vmatprep.mubr.msk.bf16.mxu0 %vm155_vm1, %v2626_v34 }
  0x2a   :  { %2477 = vmatprep.mubr.msk.bf16.mxu1 %vm155_vm1, %v2627_v35 }
  0x2b   :  { %2492 = vmatpush3.bf16.msra.mxu0 %v2624_v32 }
  0x2c   :  { %2522 = vmatpush3.bf16.msra.mxu1 %v2625_v33  ;;  %2493 = vmatprep.subr.bf16.mxu0 %v2630_v37 }
  0x2d   :  { %2523 = vmatprep.subr.bf16.mxu1 %v2631_v38 }
  0x2e   :  { %2448 = vmatmul.mubr.msk.bf16.gmra.mxu0 %vm155_vm1, %v2628_v36 }
  0x2f   :  { %2478 = vmatmul.mubr.msk.bf16.gmra.mxu1 %vm155_vm1, %v2629_v39  ;;  %2494 = vmatpush3.bf16.msra.mxu0 %v2630_v37 }
  0x30   :  { %2524 = vmatpush3.bf16.msra.mxu1 %v2631_v38  ;;  %2451 = vmatprep.mubr.msk.bf16.mxu0 %vm155_vm1, %v2632_v40 }
  0x31   :  { %2481 = vmatprep.mubr.msk.bf16.mxu1 %vm155_vm1, %v2633_v41  ;;  %2495 = vmatprep.subr.bf16.mxu0 %v2634_v42 }
  0x32   :  { %2525 = vmatprep.subr.bf16.mxu1 %v2635_v43 }
  0x33   :  { %2496 = vmatpush3.bf16.msra.mxu0 %v2634_v42 }
  0x34   :  { %2526 = vmatpush3.bf16.msra.mxu1 %v2635_v43  ;;  %2497 = vmatprep.subr.bf16.mxu0 %v2638_v44 }
  0x35   :  { %2527 = vmatprep.subr.bf16.mxu1 %v2639_v45 }
  0x36   :  { %2452 = vmatmul.mubr.msk.bf16.gmra.mxu0 %vm155_vm1, %v2636_v46 }
  0x37   :  { %2482 = vmatmul.mubr.msk.bf16.gmra.mxu1 %vm155_vm1, %v2637_v47  ;;  %2498 = vmatpush3.bf16.msra.mxu0 %v2638_v44 }
  0x38   :  { %2528 = vmatpush3.bf16.msra.mxu1 %v2639_v45  ;;  %2499 = vmatprep.mubr.msk.bf16.mxu0 %vm155_vm1, %v2640_v49 }
  0x39   :  { %2529 = vmatprep.mubr.msk.bf16.mxu1 %vm155_vm1, %v2641_v50  ;;  %2593 = vmatprep.subr.msk.bf16.mxu0 %vm180_vm0, %v2644_v48 }
  0x3a   :  { %2594 = vmatprep.subr.msk.bf16.mxu1 %vm180_vm0, %v2644_v48 }
  0x3e   :  { %2500 = vmatmul.mubr.msk.bf16.vlgmr.msra.gmra.mxu0 %vm155_vm1, %v2642_v51 }
  0x3f   :  { %2530 = vmatmul.mubr.msk.bf16.vlgmr.msra.gmra.mxu1 %vm155_vm1, %v2643_v52  ;;  %2546 = vmatpush3.bf16.msra.mxu0 %v1119_v53 }
  0x40   :  { %2582 = vmatpush3.bf16.msra.mxu1 %v1119_v53  ;;  %2547 = vmatprep.subr.bf16.mxu0 %v2645_v54 }
  0x41   :  { %2576 = vmatprep.subr.bf16.mxu1 %v2645_v54  ;;  %2503 = vmatprep.mubr.msk.bf16.mxu0 %vm155_vm1, %v2646_v55 }
  0x42   :  { %2533 = vmatprep.mubr.msk.bf16.mxu1 %vm155_vm1, %v2647_v56 }
  0x43   :  { %2548 = vmatpush3.bf16.msra.mxu0 %v2645_v54 }
  0x44   :  { %2583 = vmatpush3.bf16.msra.mxu1 %v2645_v54  ;;  %2549 = vmatprep.subr.bf16.mxu0 %v2650_v57 }
  0x45   :  { %2577 = vmatprep.subr.bf16.mxu1 %v2650_v57 }
  0x46   :  { %2504 = vmatmul.mubr.msk.bf16.gmra.mxu0 %vm155_vm1, %v2648_v58 }
  0x47   :  { %2534 = vmatmul.mubr.msk.bf16.gmra.mxu1 %vm155_vm1, %v2649_v59  ;;  %2550 = vmatpush3.bf16.msra.mxu0 %v2650_v57 }
  0x48   :  { %2584 = vmatpush3.bf16.msra.mxu1 %v2650_v57  ;;  %2551 = vmatprep.subr.bf16.mxu0 %v2651_v60 }
  0x49   :  { %2578 = vmatprep.subr.bf16.mxu1 %v2651_v60  ;;  %2507 = vmatprep.mubr.msk.bf16.mxu0 %vm155_vm1, %v2652_v61 }
  0x4a   :  { %2537 = vmatprep.mubr.msk.bf16.mxu1 %vm155_vm1, %v2653_v62 }
  0x4b   :  { %2552 = vmatpush3.bf16.msra.mxu0 %v2651_v60 }
  0x4c   :  { %2585 = vmatpush3.bf16.msra.mxu1 %v2651_v60  ;;  %2553 = vmatprep.subr.bf16.mxu0 %v2656_v63 }
  0x4d   :  { %2579 = vmatprep.subr.bf16.mxu1 %v2656_v63 }
  0x4e   :  { %2508 = vmatmul.mubr.msk.bf16.gmra.mxu0 %vm155_vm1, %v2654_v0 }
  0x4f   :  { %2538 = vmatmul.mubr.msk.bf16.gmra.mxu1 %vm155_vm1, %v2655_v1  ;;  %2554 = vmatpush3.bf16.msra.mxu0 %v2656_v63 }
  0x50   :  { %2586 = vmatpush3.bf16.msra.mxu1 %v2656_v63  ;;  %2511 = vmatprep.mubr.msk.bf16.mxu0 %vm155_vm1, %v2657_v2 }
  0x51   :  { %2541 = vmatprep.mubr.msk.bf16.mxu1 %vm155_vm1, %v2658_v3  ;;  %2555 = vmatprep.subr.bf16.mxu0 %v2659_v4 }
  0x52   :  { %2580 = vmatprep.subr.bf16.mxu1 %v2659_v4 }
  0x53   :  { %2556 = vmatpush3.bf16.msra.mxu0 %v2659_v4 }
  0x54   :  { %2587 = vmatpush3.bf16.msra.mxu1 %v2659_v4  ;;  %2557 = vmatprep.subr.bf16.mxu0 %v2662_v5 }
  0x55   :  { %2581 = vmatprep.subr.bf16.mxu1 %v2662_v5 }
  0x56   :  { %2512 = vmatmul.mubr.msk.bf16.gmra.mxu0 %vm155_vm1, %v2660_v6 }
  0x57   :  { %2542 = vmatmul.mubr.msk.bf16.gmra.mxu1 %vm155_vm1, %v2661_v7  ;;  %2558 = vmatpush3.bf16.msra.mxu0 %v2662_v5 }
  0x58   :  { %2588 = vmatpush3.bf16.msra.mxu1 %v2662_v5  ;;  %2559 = vmatprep.mubr.msk.bf16.mxu0 %vm155_vm1, %v2663_v8 }
  0x59   :  { %2567 = vmatprep.mubr.msk.bf16.mxu1 %vm155_vm1, %v2664_v9 }
  0x5e   :  { %2560 = vmatmul.mubr.msk.bf16.vlgmr.msra.gmra.mxu0 %vm155_vm1, %v2665_v10 }
  0x5f   :  { %2568 = vmatmul.mubr.msk.bf16.vlgmr.msra.gmra.mxu1 %vm155_vm1, %v2666_v11  ;;  %2563 = vmatprep.mubr.msk.bf16.mxu0 %vm155_vm1, %v2667_v12 }
  0x60   :  { %2571 = vmatprep.mubr.msk.bf16.mxu1 %vm155_vm1, %v2668_v13 }
  0x66   :  { %2564 = vmatmul.mubr.msk.bf16.gmra.mxu0 %vm155_vm1, %v2669_v14 }
  0x67   :  { %2572 = vmatmul.mubr.msk.bf16.gmra.mxu1 %vm155_vm1, %v2670_v15 }
  0xde   :  { %v2968_v16 = vpop.f32.mrf.mxu0 }
  0xdf   :  { %v2970_v17 = vpop.f32.mrf.mxu1 }
  0xe0   :  { %v2972_v18 = vpop.f32.mrf.mxu0 }
  0xe1   :  { %v2974_v19 = vpop.f32.mrf.mxu1 }
  0xe2   :  { %v2976_v20 = vpop.f32.mrf.mxu0 }
  0xe3   :  { %v2978_v21 = vpop.f32.mrf.mxu1 }
  0xe4   :  { %v2980_v22 = vpop.f32.mrf.mxu0 }
  0xe5   :  { %v2982_v23 = vpop.f32.mrf.mxu1 }
  0xe6   :  { %v2445_v24 = vpop.f32.mrf.mxu0 }
  0xe7   :  { %v2475_v25 = vpop.f32.mrf.mxu1 }
  0xe8   :  { %v446_v26 = vadd.f32 %v2475_v25, %v2445_v24  ;;  %v234_v27 = vpop.f32.mrf.mxu0 }
  0xe9   :  { %v437_v28 = vpop.f32.mrf.mxu1 }
  0xea   :  { %v438_v29 = vadd.f32 %v437_v28, %v234_v27  ;;  %v2446_v30 = vpop.f32.mrf.mxu0 }
  0xeb   :  { %v2476_v31 = vpop.f32.mrf.mxu1 }
  0xec   :  { %v449_v32 = vadd.f32 %v2476_v31, %v2446_v30  ;;  %v237_v33 = vpop.f32.mrf.mxu0 }
  0xed   :  { %v440_v34 = vpop.f32.mrf.mxu1 }
  0xee   :  { %v441_v35 = vadd.f32 %v440_v34, %v237_v33  ;;  %v2449_v36 = vpop.f32.mrf.mxu0 }
  0xef   :  { %v2479_v37 = vpop.f32.mrf.mxu1 }
  0xf0   :  { %v250_v38 = vpop.f32.mrf.mxu0 }
  0xf1   :  { %v453_v39 = vpop.f32.mrf.mxu1 }
  0xf2   :  { %v2984_v40 = vpop.f32.mrf.mxu0 }
  0xf3   :  { %v2986_v41 = vpop.f32.mrf.mxu1 }
  0xf4   :  { %v2988_v42 = vpop.f32.mrf.mxu0 }
  0xf5   :  { %v2990_v43 = vpop.f32.mrf.mxu1 }
  0xf6   :  { %v2453_v44 = vpop.f32.mrf.mxu0 }
  0xf7   :  { %v2483_v45 = vpop.f32.mrf.mxu1 }
  0xf8   :  { %v478_v46 = vadd.f32 %v2483_v45, %v2453_v44  ;;  %v266_v47 = vpop.f32.mrf.mxu0  ;;  %v462_v45 = vadd.f32 %v2479_v37, %v2449_v36  ;;  %v425_v37 = vadd.f32 %v2982_v23, %v2980_v22 }
  0xf9   :  { %v469_v48 = vpop.f32.mrf.mxu1 }
  0xfa   :  { %v470_v49 = vadd.f32 %v469_v48, %v266_v47  ;;  %v2454_v50 = vpop.f32.mrf.mxu0 }
  0xfb   :  { %v2484_v51 = vpop.f32.mrf.mxu1 }
  0xfc   :  { %v481_v52 = vadd.f32 %v2484_v51, %v2454_v50  ;;  %v269_v53 = vpop.f32.mrf.mxu0 }
  0xfd   :  { %v472_v54 = vpop.f32.mrf.mxu1 }
  0xfe   :  { %v473_v55 = vadd.f32 %v472_v54, %v269_v53  ;;  %v2501_v56 = vpop.f32.mrf.mxu0  ;;  %v454_v54 = vadd.f32 %v453_v39, %v250_v38 }
  0xff   :  { %v2531_v57 = vpop.f32.mrf.mxu1 }
 0x100   :  { %v655_v58 = vpop.f32.mrf.mxu0 }
 0x101   :  { %v905_v59 = vpop.f32.mrf.mxu1 }
 0x102   :  { %v2502_v60 = vpop.f32.mrf.mxu0 }
 0x103   :  { %v2992_v61 = vpop.f32.mrf.mxu1 }
 0x104   :  { %v658_v62 = vpop.f32.mrf.mxu0 }
 0x105   :  { %v2994_v63 = vpop.f32.mrf.mxu1 }
 0x106   :  { %v2505_v0 = vpop.f32.mrf.mxu0 }
 0x107   :  { %v724_v1 = vadd.f32 %v2505_v0, %v446_v26  ;;  %v2535_v2 = vpop.f32.mrf.mxu1 }
 0x108   :  { %v671_v3 = vpop.f32.mrf.mxu0 }
 0x109   :  { %v2996_v4 = vadd.f32 %v2535_v2, %v724_v1  ;;  %v722_v5 = vadd.f32 %v671_v3, %v438_v29  ;;  %v921_v6 = vpop.f32.mrf.mxu1  ;;  %v433_v2 = vadd.f32 %v2978_v21, %v2976_v20  ;;  %v457_v20 = vadd.f32 %v2990_v43, %v2988_v42 }
 0x10a   :  { %v2506_v7 = vpop.f32.mrf.mxu0 }
 0x10b   :  { %v2998_v8 = vadd.f32 %v921_v6, %v722_v5  ;;  %v725_v9 = vadd.f32 %v2506_v7, %v449_v32  ;;  %v2536_v10 = vpop.f32.mrf.mxu1  ;;  %v430_v32 = vadd.f32 %v2970_v17, %v2968_v16  ;;  %v721_v38 = vadd.f32 %v2502_v60, %v433_v2 }
 0x10c   :  { %v674_v11 = vpop.f32.mrf.mxu0  ;;  %v719_v7 = vadd.f32 %v658_v62, %v425_v37  ;;  %v1300_v62 = vlaneseq }
 0x10d   :  { %v3000_v12 = vadd.f32 %v2536_v10, %v725_v9  ;;  %v723_v13 = vadd.f32 %v674_v11, %v441_v35  ;;  %v924_v14 = vpop.f32.mrf.mxu1  ;;  %v422_v35 = vadd.f32 %v2974_v19, %v2972_v18  ;;  %v720_v48 = vadd.f32 %v2501_v56, %v430_v32 }
 0x10e   :  { %v2509_v15 = vpop.f32.mrf.mxu0  ;;  %v465_v18 = vadd.f32 %v2986_v41, %v2984_v40  ;;  %v2671_v10 = vmov 1966171168   ;;  %v971_v43 = vadd.f32 %v2992_v61, %v721_v38 }
 0x10f   :  { %v3002_v24 = vadd.f32 %v924_v14, %v723_v13  ;;  %v2539_v25 = vpop.f32.mrf.mxu1  ;;  %v728_v0 = vadd.f32 %v2509_v15, %v462_v45  ;;  %v718_v3 = vadd.f32 %v655_v58, %v422_v35  ;;  %v1298_v42 = vunpack.c.l.s4 %v2671_v10 }
 0x110   :  { %v687_v26 = vpop.f32.mrf.mxu0 }
 0x111   :  { %v937_v27 = vpop.f32.mrf.mxu1  ;;  %v726_v19 = vadd.f32 %v687_v26, %v454_v54  ;;  %v978_v21 = vadd.f32 %v2539_v25, %v728_v0  ;;  %v968_v6 = vadd.f32 %v905_v59, %v718_v3  ;;  %v969_v25 = vadd.f32 %v2994_v63, %v719_v7 }
 0x112   :  { %v2510_v28 = vpop.f32.mrf.mxu0  ;;  %v1299_v32 = vunpack.c.0.s8 %v1298_v42 }
 0x113   :  { %v2540_v30 = vpop.f32.mrf.mxu1  ;;  %v976_v41 = vadd.f32 %v937_v27, %v726_v19 }
 0x114   :  { %v690_v29 = vpop.f32.mrf.mxu0 }
 0x115   :  { %v940_v31 = vpop.f32.mrf.mxu1  ;;  %v727_v9 = vadd.f32 %v690_v29, %v457_v20 }
 0x116   :  { %v2513_v33 = vpop.f32.mrf.mxu0 }
 0x117   :  { %v732_v34 = vadd.f32 %v2513_v33, %v478_v46  ;;  %v2543_v44 = vpop.f32.mrf.mxu1  ;;  %v977_v29 = vadd.f32 %v940_v31, %v727_v9 }
 0x118   :  { %v703_v47 = vpop.f32.mrf.mxu0 }
 0x119   :  { %v3008_v50 = vadd.f32 %v2543_v44, %v732_v34  ;;  %v730_v51 = vadd.f32 %v703_v47, %v470_v49  ;;  %v953_v53 = vpop.f32.mrf.mxu1  ;;  %v970_v49 = vadd.f32 %v2531_v57, %v720_v48  ;;  %v3027_v57 = vld [vmem:[%s3263_s2] ss:$0 sm:$0xff]  ;;  %v1301_v47 = vshrl.u32 %v1300_v62, 7 }
 0x11a   :  { %v2514_v1 = vpop.f32.mrf.mxu0 }
 0x11b   :  { %v3012_v16 = vadd.f32 %v953_v53, %v730_v51  ;;  %v733_v17 = vadd.f32 %v2514_v1, %v481_v52  ;;  %v2544_v36 = vpop.f32.mrf.mxu1  ;;  %v729_v52 = vadd.f32 %v2510_v28, %v465_v18  ;;  %v3040_v19 = vsub.s32 %v1299_v32, %v1301_v47 }
 0x11c   :  { %v706_v46 = vpop.f32.mrf.mxu0 }
 0x11d   :  { %v3018_v39 = vadd.f32 %v2544_v36, %v733_v17  ;;  %v731_v56 = vadd.f32 %v706_v46, %v473_v55  ;;  %v956_v5 = vpop.f32.mrf.mxu1  ;;  %v979_v13 = vadd.f32 %v2540_v30, %v729_v52 }
 0x11e   :  { %v2561_v58 = vpop.f32.mrf.mxu0 }
 0x11f   :  { %v3022_v22 = vadd.f32 %v956_v5, %v731_v56  ;;  %v1220_v23 = vadd.f32 %v2561_v58, %v970_v49  ;;  %v2569_v40 = vpop.f32.mrf.mxu1 }
 0x120   :  { %v1228_v55 = vadd.f32 %v2569_v40, %v978_v21  ;;  %v1155_v60 = vpop.f32.mrf.mxu0 }
 0x121   :  { %v1218_v11 = vadd.f32 %v1155_v60, %v968_v6  ;;  %v1187_v59 = vpop.f32.mrf.mxu1  ;;  %v1243_v26 = vadd.f32 %v3027_v57, %v1220_v23 }
 0x122   :  { %v1226_v14 = vadd.f32 %v1187_v59, %v976_v41  ;;  %v2562_v15 = vpop.f32.mrf.mxu0  ;;  %v1251_v33 = vadd.f32 %v3027_v57, %v1228_v55 }
 0x123   :  { %v1221_v27 = vadd.f32 %v2562_v15, %v971_v43  ;;  %v2570_v28 = vpop.f32.mrf.mxu1  ;;  %v1241_v61 = vadd.f32 %v3027_v57, %v1218_v11  ;;  %v1259_v54 = vmax.f32 %v1243_v26, 0.0 }
 0x124   :  { %v1229_v34 = vadd.f32 %v2570_v28, %v979_v13  ;;  %v1158_v44 = vpop.f32.mrf.mxu0  ;;  %v1249_v48 = vadd.f32 %v3027_v57, %v1226_v14  ;;  %v1267_v2 = vmax.f32 %v1251_v33, 0.0 }
 0x125   :  { %v1244_v45 = vadd.f32 %v3027_v57, %v1221_v27  ;;  %v1219_v30 = vadd.f32 %v1158_v44, %v969_v25  ;;  %v1190_v35 = vpop.f32.mrf.mxu1  ;;  %v1257_v37 = vmax.f32 %v1241_v61, 0.0 }
 0x126   :  { %v1252_v63 = vadd.f32 %v3027_v57, %v1229_v34  ;;  %v1227_v51 = vadd.f32 %v1190_v35, %v977_v29  ;;  %v2565_v53 = vpop.f32.mrf.mxu0  ;;  %v1265_v38 = vmax.f32 %v1249_v48, 0.0 }
 0x127   :  { %v1260_v31 = vmax.f32 %v1244_v45, 0.0  ;;  %v1242_v0 = vadd.f32 %v3027_v57, %v1219_v30  ;;  %v1224_v1 = vadd.f32 %v2565_v53, %v2996_v4  ;;  %v2573_v36 = vpop.f32.mrf.mxu1 }
 0x128   :  { %v1268_v3 = vmax.f32 %v1252_v63, 0.0  ;;  %v1250_v17 = vadd.f32 %v3027_v57, %v1227_v51  ;;  %v3042_v49 = vpop.f32.mrf.mxu0  ;;  %v1232_v4 = vadd.f32 %v2573_v36, %v3008_v50 }
 0x129   :  { %v1274_v18 = vmax.f32 %v1259_v54, %v1260_v31  ;;  %v1258_v46 = vmax.f32 %v1242_v0, 0.0  ;;  %v3045_v52 = vadd.f32 %v3027_v57, %v1224_v1 }
 0x12a   :  { %v1278_v56 = vmax.f32 %v1267_v2, %v1268_v3  ;;  %v1266_v5 = vmax.f32 %v1250_v17, 0.0  ;;  %v2566_v40 = vpop.f32.mrf.mxu0  ;;  %v3055_v10 = vadd.f32 %v3027_v57, %v1232_v4 }
 0x12b   :  { %v1282_v20 = vpack.c.bf16 %v1274_v18, %v1274_v18  ;;  %v1273_v21 = vmax.f32 %v1257_v37, %v1258_v46  ;;  %v1263_v60 = vmax.f32 %v3045_v52, 0.0  ;;  %v3061_v11 = vadd.f32 %v2566_v40, %v3000_v12 }
 0x12c   :  { %v1286_v58 = vpack.c.bf16 %v1278_v56, %v1278_v56  ;;  %v3048_v6 = vmax.f32 %v1265_v38, %v1266_v5 }
 0x12d   :  { %v1327_v7 = vrot.slane %v1282_v20, %v3040_v19  ;;  %v1281_v23 = vpack.c.bf16 %v1273_v21, %v1273_v21 }
 0x12e   :  { %v1423_v41 = vrot.slane %v1286_v58, %v3040_v19  ;;  %v1285_v43 = vpack.c.bf16 %v3048_v6, %v3048_v6 }
 0x12f   :  { %v1328_v9 = vcombine.high %v1327_v7, %v1327_v7  ;;  %v1335_v55 = vrot.slane %v1327_v7, %v3040_v19  ;;  %v3066_v14 = vrot.slane %v1281_v23, %v3040_v19 }
 0x130   :  { %v1424_v42 = vcombine.high %v1423_v41, %v1423_v41  ;;  %v1431_v50 = vrot.slane %v1423_v41, %v3040_v19 }
 0x131   :  { %v1342_v59 = vrot.slane %v1328_v9, %v3040_v19  ;;  %v1343_v62 = vcombine.high %v1335_v55, %v1335_v55  ;;  %v1544_v13 = vsel %vm1489_vm2, %v1335_v55, 4286644096 }
 0x132   :  { %v1546_v15 = vunpack.i.l.bf16 %v1544_v13  ;;  %v1547_v25 = vunpack.i.h.bf16 %v1544_v13  ;;  %v1438_v26 = vrot.slane %v1424_v42, %v3040_v19  ;;  %v1439_v27 = vcombine.high %v1431_v50, %v1431_v50  ;;  %v3076_v13 = vpop.f32.mrf.mxu1 }
 0x133   :  { %v1344_v28 = vcombine.high %v1342_v59, %v1342_v59  ;;  %v1557_v29 = vsel %vm1489_vm2, %v1342_v59, 4286644096  ;;  %v1570_v33 = vsel %vm1489_vm2, %v1343_v62, 4286644096  ;;  %v1752_v12 = vsel %vm1489_vm2, %v1431_v50, 4286644096 }
 0x134   :  { %v1548_v32 = vmax.f32 %v1546_v15, %v1547_v25  ;;  %v1559_v34 = vunpack.i.l.bf16 %v1557_v29  ;;  %v1560_v44 = vunpack.i.h.bf16 %v1557_v29  ;;  %v1572_v61 = vunpack.i.l.bf16 %v1570_v33 }
 0x135   :  { %v1573_v45 = vunpack.i.h.bf16 %v1570_v33  ;;  %v1583_v47 = vsel %vm1489_vm2, %v1344_v28, 4286644096  ;;  %v1440_v30 = vcombine.high %v1438_v26, %v1438_v26  ;;  %v1754_v35 = vunpack.i.l.bf16 %v1752_v12 }
 0x136   :  { %v1549_v48 = vrot.slane %v1548_v32, 4  ;;  %v1561_v63 = vmax.f32 %v1559_v34, %v1560_v44  ;;  %v1585_v51 = vunpack.i.l.bf16 %v1583_v47  ;;  %v1586_v53 = vunpack.i.h.bf16 %v1583_v47 }
 0x137   :  { %v1574_v54 = vmax.f32 %v1572_v61, %v1573_v45  ;;  %v1755_v31 = vunpack.i.h.bf16 %v1752_v12  ;;  %v1765_v0 = vsel %vm1489_vm2, %v1438_v26, 4286644096  ;;  %v1778_v1 = vsel %vm1489_vm2, %v1439_v27, 4286644096 }
 0x138   :  { %v1550_v2 = vmax.f32 %v1548_v32, %v1549_v48  ;;  %v1562_v3 = vrot.slane %v1561_v63, 4  ;;  %v1587_v17 = vmax.f32 %v1585_v51, %v1586_v53  ;;  %v1767_v36 = vunpack.i.l.bf16 %v1765_v0  ;;  %v2574_v48 = vpop.f32.mrf.mxu1 }
 0x139   :  { %v1575_v37 = vrot.slane %v1574_v54, 4  ;;  %v1756_v18 = vmax.f32 %v1754_v35, %v1755_v31  ;;  %v1768_v46 = vunpack.i.h.bf16 %v1765_v0  ;;  %v1780_v38 = vunpack.i.l.bf16 %v1778_v1 }
 0x13a   :  { %v1551_v56 = vrot.slane %v1550_v2, 2  ;;  %v1563_v5 = vmax.f32 %v1561_v63, %v1562_v3  ;;  %v1588_v20 = vrot.slane %v1587_v17, 4  ;;  %v1781_v21 = vunpack.i.h.bf16 %v1778_v1 }
 0x13b   :  { %v1576_v4 = vmax.f32 %v1574_v54, %v1575_v37  ;;  %v1757_v58 = vrot.slane %v1756_v18, 4  ;;  %v1769_v7 = vmax.f32 %v1767_v36, %v1768_v46  ;;  %v1791_v23 = vsel %vm1489_vm2, %v1440_v30, 4286644096 }
 0x13c   :  { %v1552_v40 = vmax.f32 %v1550_v2, %v1551_v56  ;;  %v1564_v41 = vrot.slane %v1563_v5, 2  ;;  %v1589_v9 = vmax.f32 %v1587_v17, %v1588_v20  ;;  %v1782_v55 = vmax.f32 %v1780_v38, %v1781_v21 }
 0x13d   :  { %v1577_v42 = vrot.slane %v1576_v4, 2  ;;  %v1758_v50 = vmax.f32 %v1756_v18, %v1757_v58  ;;  %v1770_v59 = vrot.slane %v1769_v7, 4  ;;  %v1793_v62 = vunpack.i.l.bf16 %v1791_v23 }
 0x13e   :  { %v1553_v15 = vrot.slane %v1552_v40, 1  ;;  %v1565_v25 = vmax.f32 %v1563_v5, %v1564_v41  ;;  %v1590_v26 = vrot.slane %v1589_v9, 2  ;;  %v1783_v27 = vrot.slane %v1782_v55, 4 }
 0x13f   :  { %v1578_v28 = vmax.f32 %v1576_v4, %v1577_v42  ;;  %v1759_v29 = vrot.slane %v1758_v50, 2  ;;  %v1771_v33 = vmax.f32 %v1769_v7, %v1770_v59  ;;  %v1794_v12 = vunpack.i.h.bf16 %v1791_v23 }
 0x140   :  { %v1554_v32 = vmax.f32 %v1552_v40, %v1553_v15  ;;  %v1566_v34 = vrot.slane %v1565_v25, 1  ;;  %v1591_v44 = vmax.f32 %v1589_v9, %v1590_v26  ;;  %v1784_v61 = vmax.f32 %v1782_v55, %v1783_v27 }
 0x141   :  { %v1579_v45 = vrot.slane %v1578_v28, 1  ;;  %v1760_v47 = vmax.f32 %v1758_v50, %v1759_v29  ;;  %v1772_v30 = vrot.slane %v1771_v33, 2  ;;  %v1795_v35 = vmax.f32 %v1793_v62, %v1794_v12 }
 0x142   :  { %v1555_v63 = vpack.i.bf16 %v1554_v32, %v1554_v32  ;;  %v1567_v51 = vmax.f32 %v1565_v25, %v1566_v34  ;;  %v1592_v53 = vrot.slane %v1591_v44, 1  ;;  %v1785_v54 = vrot.slane %v1784_v61, 2 }
 0x143   :  { %v1580_v31 = vmax.f32 %v1578_v28, %v1579_v45  ;;  %v1761_v0 = vrot.slane %v1760_v47, 1  ;;  %v1773_v1 = vmax.f32 %v1771_v33, %v1772_v30  ;;  %v1796_v2 = vrot.slane %v1795_v35, 4 }
 0x144   :  { %v1568_v3 = vpack.i.bf16 %v1567_v51, %v1567_v51  ;;  %v1593_v17 = vmax.f32 %v1591_v44, %v1592_v53  ;;  %v1786_v36 = vmax.f32 %v1784_v61, %v1785_v54  ;;  %v1233_v37 = vadd.f32 %v2574_v48, %v3018_v39 }
 0x145   :  { %v1581_v18 = vpack.i.bf16 %v1580_v31, %v1580_v31  ;;  %v1762_v46 = vmax.f32 %v1760_v47, %v1761_v0  ;;  %v1774_v38 = vrot.slane %v1773_v1, 1  ;;  %v1797_v56 = vmax.f32 %v1795_v35, %v1796_v2 }
 0x146   :  { %v1594_v5 = vpack.i.bf16 %v1593_v17, %v1593_v17  ;;  %v2322_v20 = vcombine.low %v1555_v63, %v1555_v63  ;;  %v2323_v21 = vcombine.low %v1568_v3, %v1568_v3  ;;  %v1304_v4 = vcombine.high %v3066_v14, %v3066_v14 }
 0x147   :  { %v2324_v58 = vcombine.low %v1581_v18, %v1581_v18  ;;  %v1787_v7 = vrot.slane %v1786_v36, 1  ;;  %v1798_v23 = vrot.slane %v1797_v56, 2  ;;  %v1271_v40 = vmax.f32 %v3055_v10, 0.0 }
 0x148   :  { %v1775_v41 = vmax.f32 %v1773_v1, %v1774_v38  ;;  %v1311_v9 = vrot.slane %v3066_v14, %v3040_v19  ;;  %v1399_v39 = vrot.slane %v1285_v43, %v3040_v19  ;;  %v3090_v55 = vadd.f32 %v3027_v57, %v3061_v11 }
 0x149   :  { %v2325_v42 = vcombine.low %v1594_v5, %v1594_v5  ;;  %v3092_v50 = vpack.i.bf16 %v1762_v46, %v1762_v46  ;;  %v1799_v59 = vmax.f32 %v1797_v56, %v1798_v23  ;;  %v3095_v62 = vadd.f32 %v3027_v57, %v1233_v37 }
 0x14a   :  { %v3097_v15 = vunpack.c.l.b16 %v2322_v20  ;;  %v3099_v25 = vunpack.c.l.b16 %v2323_v21  ;;  %v1318_v14 = vrot.slane %v1304_v4, %v3040_v19  ;;  %v1319_v26 = vcombine.high %v1311_v9, %v1311_v9 }
 0x14b   :  { %v3102_v6 = vunpack.c.l.b16 %v2324_v58  ;;  %v1788_v43 = vmax.f32 %v1786_v36, %v1787_v7  ;;  %v1800_v27 = vrot.slane %v1799_v59, 1  ;;  %v1492_v11 = vsel %vm1489_vm2, %v1311_v9, 4286644096 }
 0x14c   :  { %v3105_v28 = vpack.i.bf16 %v1775_v41, %v1775_v41  ;;  %v1320_v29 = vcombine.high %v1318_v14, %v1318_v14  ;;  %v1494_v33 = vunpack.i.l.bf16 %v1492_v11  ;;  %v1495_v12 = vunpack.i.h.bf16 %v1492_v11 }
 0x14d   :  { %v3107_v32 = vunpack.c.l.b16 %v2325_v42  ;;  %v2338_v34 = vcombine.low %v3092_v50, %v3092_v50  ;;  %v1505_v44 = vsel %vm1489_vm2, %v1318_v14, 4286644096  ;;  %v1518_v61 = vsel %vm1489_vm2, %v1319_v26, 4286644096 }
 0x14e   :  { %v1801_v45 = vmax.f32 %v1799_v59, %v1800_v27  ;;  %v1496_v47 = vmax.f32 %v1494_v33, %v1495_v12  ;;  %v1507_v30 = vunpack.i.l.bf16 %v1505_v44  ;;  %v1508_v35 = vunpack.i.h.bf16 %v1505_v44 }
 0x14f   :  { %v3113_v48 = vpack.i.bf16 %v1788_v43, %v1788_v43  ;;  %v1520_v63 = vunpack.i.l.bf16 %v1518_v61  ;;  %v1521_v51 = vunpack.i.h.bf16 %v1518_v61  ;;  %v1531_v53 = vsel %vm1489_vm2, %v1320_v29, 4286644096 }
 0x150   :  { %v1497_v54 = vrot.slane %v1496_v47, 4  ;;  %v1509_v31 = vmax.f32 %v1507_v30, %v1508_v35  ;;  %v1533_v0 = vunpack.i.l.bf16 %v1531_v53  ;;  %v1534_v1 = vunpack.i.h.bf16 %v1531_v53 }
 0x151   :  { %v2339_v2 = vcombine.low %v3105_v28, %v3105_v28  ;;  %v1522_v3 = vmax.f32 %v1520_v63, %v1521_v51  ;;  %v1400_v17 = vcombine.high %v1399_v39, %v1399_v39  ;;  %v1407_v36 = vrot.slane %v1399_v39, %v3040_v19 }
 0x152   :  { %v3119_v37 = vpack.i.bf16 %v1801_v45, %v1801_v45  ;;  %v1498_v18 = vmax.f32 %v1496_v47, %v1497_v54  ;;  %v1510_v46 = vrot.slane %v1509_v31, 4  ;;  %v1535_v38 = vmax.f32 %v1533_v0, %v1534_v1 }
 0x153   :  { %v1523_v56 = vrot.slane %v1522_v3, 4  ;;  %v1414_v5 = vrot.slane %v1400_v17, %v3040_v19  ;;  %v1415_v20 = vcombine.high %v1407_v36, %v1407_v36  ;;  %v1264_v21 = vmax.f32 %v3090_v55, 0.0 }
 0x154   :  { %v1499_v4 = vrot.slane %v1498_v18, 2  ;;  %v1511_v58 = vmax.f32 %v1509_v31, %v1510_v46  ;;  %v1536_v7 = vrot.slane %v1535_v38, 4  ;;  %v1700_v23 = vsel %vm1489_vm2, %v1407_v36, 4286644096 }
 0x155   :  { %v1524_v41 = vmax.f32 %v1522_v3, %v1523_v56  ;;  %v1416_v9 = vcombine.high %v1414_v5, %v1414_v5  ;;  %v1702_v42 = vunpack.i.l.bf16 %v1700_v23  ;;  %v1703_v39 = vunpack.i.h.bf16 %v1700_v23 }
 0x156   :  { %v1500_v59 = vmax.f32 %v1498_v18, %v1499_v4  ;;  %v1512_v14 = vrot.slane %v1511_v58, 2  ;;  %v1537_v26 = vmax.f32 %v1535_v38, %v1536_v7  ;;  %v1713_v43 = vsel %vm1489_vm2, %v1414_v5, 4286644096 }
 0x157   :  { %v1525_v27 = vrot.slane %v1524_v41, 2  ;;  %v1704_v11 = vmax.f32 %v1702_v42, %v1703_v39  ;;  %v1715_v29 = vunpack.i.l.bf16 %v1713_v43  ;;  %v1716_v33 = vunpack.i.h.bf16 %v1713_v43 }
 0x158   :  { %v1501_v12 = vrot.slane %v1500_v59, 1  ;;  %v1513_v44 = vmax.f32 %v1511_v58, %v1512_v14  ;;  %v1538_v61 = vrot.slane %v1537_v26, 2  ;;  %v1726_v45 = vsel %vm1489_vm2, %v1415_v20, 4286644096 }
 0x159   :  { %v1526_v47 = vmax.f32 %v1524_v41, %v1525_v27  ;;  %v1705_v30 = vrot.slane %v1704_v11, 4  ;;  %v1717_v35 = vmax.f32 %v1715_v29, %v1716_v33  ;;  %v1728_v63 = vunpack.i.l.bf16 %v1726_v45 }
 0x15a   :  { %v1502_v51 = vmax.f32 %v1500_v59, %v1501_v12  ;;  %v1514_v53 = vrot.slane %v1513_v44, 1  ;;  %v1539_v54 = vmax.f32 %v1537_v26, %v1538_v61  ;;  %v1729_v31 = vunpack.i.h.bf16 %v1726_v45 }
 0x15b   :  { %v1527_v0 = vrot.slane %v1526_v47, 1  ;;  %v1706_v1 = vmax.f32 %v1704_v11, %v1705_v30  ;;  %v1718_v3 = vrot.slane %v1717_v35, 4  ;;  %v1739_v17 = vsel %vm1489_vm2, %v1416_v9, 4286644096 }
 0x15c   :  { %v1503_v36 = vpack.i.bf16 %v1502_v51, %v1502_v51  ;;  %v1515_v18 = vmax.f32 %v1513_v44, %v1514_v53  ;;  %v1540_v46 = vrot.slane %v1539_v54, 1  ;;  %v1730_v38 = vmax.f32 %v1728_v63, %v1729_v31 }
 0x15d   :  { %v1528_v56 = vmax.f32 %v1526_v47, %v1527_v0  ;;  %v1707_v5 = vrot.slane %v1706_v1, 2  ;;  %v1719_v20 = vmax.f32 %v1717_v35, %v1718_v3  ;;  %v1741_v4 = vunpack.i.l.bf16 %v1739_v17 }
 0x15e   :  { %v1516_v58 = vpack.i.bf16 %v1515_v18, %v1515_v18  ;;  %v1541_v7 = vmax.f32 %v1539_v54, %v1540_v46  ;;  %v2318_v23 = vcombine.low %v1503_v36, %v1503_v36  ;;  %v1731_v41 = vrot.slane %v1730_v38, 4 }
 0x15f   :  { %v1529_v42 = vpack.i.bf16 %v1528_v56, %v1528_v56  ;;  %v1708_v39 = vmax.f32 %v1706_v1, %v1707_v5  ;;  %v1720_v59 = vrot.slane %v1719_v20, 2  ;;  %v1742_v9 = vunpack.i.h.bf16 %v1739_v17 }
 0x160   :  { %v1542_v14 = vpack.i.bf16 %v1541_v7, %v1541_v7  ;;  %v2319_v26 = vcombine.low %v1516_v58, %v1516_v58  ;;  %v2003_v43 = vunpack.c.l.b16 %v2318_v23  ;;  %v1732_v27 = vmax.f32 %v1730_v38, %v1731_v41 }
 0x161   :  { %v2320_v11 = vcombine.low %v1529_v42, %v1529_v42  ;;  %v1709_v29 = vrot.slane %v1708_v39, 1  ;;  %v1721_v33 = vmax.f32 %v1719_v20, %v1720_v59  ;;  %v1743_v12 = vmax.f32 %v1741_v4, %v1742_v9 }
 0x162   :  { %v2321_v44 = vcombine.low %v1542_v14, %v1542_v14  ;;  %v2004_v61 = vunpack.c.l.b16 %v2319_v26  ;;  %v1733_v45 = vrot.slane %v1732_v27, 2  ;;  %v1276_v47 = vmax.f32 %v1263_v60, %v1264_v21 }
 0x163   :  { %v2005_v30 = vunpack.c.l.b16 %v2320_v11  ;;  %v1710_v35 = vmax.f32 %v1708_v39, %v1709_v29  ;;  %v1722_v63 = vrot.slane %v1721_v33, 1  ;;  %v1744_v51 = vrot.slane %v1743_v12, 4 }
 0x164   :  { %v2006_v53 = vunpack.c.l.b16 %v2321_v44  ;;  %v2036_v54 = vsel %vm2035_vm3, %v2004_v61, %v2003_v43  ;;  %v1734_v31 = vmax.f32 %v1732_v27, %v1733_v45  ;;  %v1284_v0 = vpack.c.bf16 %v1276_v47, %v1276_v47 }
 0x165   :  { %v2038_v1 = vsel %vm2037_vm4, %v2005_v30, %v2036_v54  ;;  %v1711_v3 = vpack.i.bf16 %v1710_v35, %v1710_v35  ;;  %v1723_v17 = vmax.f32 %v1721_v33, %v1722_v63  ;;  %v1745_v36 = vmax.f32 %v1743_v12, %v1744_v51 }
 0x166   :  { %v2040_v18 = vsel %vm2039_vm5, %v2006_v53, %v2038_v1  ;;  %v1735_v55 = vrot.slane %v1734_v31, 1  ;;  %v1375_v52 = vrot.slane %v1284_v0, %v3040_v19  ;;  %v1272_v60 = vmax.f32 %v3095_v62, 0.0 }
 0x167   :  { %v2042_v21 = vsel %vm2041_vm6, %v3097_v15, %v2040_v18  ;;  %v1724_v46 = vpack.i.bf16 %v1723_v17, %v1723_v17  ;;  %v1746_v38 = vrot.slane %v1745_v36, 2  ;;  %v2334_v56 = vcombine.low %v1711_v3, %v1711_v3 }
 0x168   :  { %v2044_v5 = vsel %vm2043_vm7, %v3099_v25, %v2042_v21  ;;  %v1736_v20 = vmax.f32 %v1734_v31, %v1735_v55  ;;  %v1376_v4 = vcombine.high %v1375_v52, %v1375_v52  ;;  %v1383_v58 = vrot.slane %v1375_v52, %v3040_v19 }
 0x169   :  { %v2046_v7 = vsel %vm2045_vm8, %v3102_v6, %v2044_v5  ;;  %v1747_v23 = vmax.f32 %v1745_v36, %v1746_v38  ;;  %v2335_v41 = vcombine.low %v1724_v46, %v1724_v46  ;;  %v2019_v42 = vunpack.c.l.b16 %v2334_v56 }
 0x16a   :  { %v2048_v62 = vsel %vm2047_vm9, %v3107_v32, %v2046_v7  ;;  %v1737_v15 = vpack.i.bf16 %v1736_v20, %v1736_v20  ;;  %v1390_v39 = vrot.slane %v1376_v4, %v3040_v19  ;;  %v1391_v59 = vcombine.high %v1383_v58, %v1383_v58 }
 0x16b   :  { %v2070_v9 = vpack.c.b16 %v2048_v62, %v2048_v62  ;;  %v1748_v14 = vrot.slane %v1747_v23, 1  ;;  %v2020_v25 = vunpack.c.l.b16 %v2335_v41  ;;  %v1648_v26 = vsel %vm1489_vm2, %v1383_v58, 4286644096 }
 0x16c   :  { %v2336_v43 = vcombine.low %v1737_v15, %v1737_v15  ;;  %v1392_v27 = vcombine.high %v1390_v39, %v1390_v39  ;;  %v1650_v11 = vunpack.i.l.bf16 %v1648_v26  ;;  %v1651_v29 = vunpack.i.h.bf16 %v1648_v26 }
 0x16d   :  { %2078 = vst [vmem:[%s3264_s3] sm:$0xf] %v2070_v9  ;;  %v1749_v6 = vmax.f32 %v1747_v23, %v1748_v14  ;;  %v2056_v32 = vsel %vm2035_vm3, %v2020_v25, %v2019_v42  ;;  %v1661_v33 = vsel %vm1489_vm2, %v1390_v39, 4286644096  ;;  %v1674_v12 = vsel %vm1489_vm2, %v1391_v59, 4286644096  ;;  %v1206_v59 = vpop.f32.mrf.mxu1 }
 0x16e   :  { %v2021_v44 = vunpack.c.l.b16 %v2336_v43  ;;  %v1652_v61 = vmax.f32 %v1650_v11, %v1651_v29  ;;  %v1663_v45 = vunpack.i.l.bf16 %v1661_v33  ;;  %v1664_v47 = vunpack.i.h.bf16 %v1661_v33 }
 0x16f   :  { %v1750_v30 = vpack.i.bf16 %v1749_v6, %v1749_v6  ;;  %v1676_v35 = vunpack.i.l.bf16 %v1674_v12  ;;  %v1677_v63 = vunpack.i.h.bf16 %v1674_v12  ;;  %v1687_v51 = vsel %vm1489_vm2, %v1392_v27, 4286644096 }
 0x170   :  { %v2340_v53 = vcombine.low %v3113_v48, %v3113_v48  ;;  %v1653_v54 = vrot.slane %v1652_v61, 4  ;;  %v1665_v31 = vmax.f32 %v1663_v45, %v1664_v47  ;;  %v1689_v0 = vunpack.i.l.bf16 %v1687_v51 }
 0x171   :  { %v2337_v1 = vcombine.low %v1750_v30, %v1750_v30  ;;  %v1678_v3 = vmax.f32 %v1676_v35, %v1677_v63  ;;  %v1690_v17 = vunpack.i.h.bf16 %v1687_v51  ;;  %v1280_v36 = vmax.f32 %v1271_v40, %v1272_v60  ;;  %v1174_v60 = vpop.f32.mrf.mxu0 }
 0x172   :  { %v2341_v18 = vcombine.low %v3119_v37, %v3119_v37  ;;  %v2057_v55 = vsel %vm2037_vm4, %v2021_v44, %v2056_v32  ;;  %v1654_v52 = vmax.f32 %v1652_v61, %v1653_v54  ;;  %v1666_v21 = vrot.slane %v1665_v31, 4 }
 0x173   :  { %v2022_v46 = vunpack.c.l.b16 %v2337_v1  ;;  %v1679_v38 = vrot.slane %v1678_v3, 4  ;;  %v1691_v56 = vmax.f32 %v1689_v0, %v1690_v17  ;;  %v1288_v48 = vpack.c.bf16 %v1280_v36, %v1280_v36 }
 0x174   :  { %v2023_v5 = vunpack.c.l.b16 %v2338_v34  ;;  %v1655_v20 = vrot.slane %v1654_v52, 2  ;;  %v1667_v4 = vmax.f32 %v1665_v31, %v1666_v21  ;;  %v2024_v10 = vunpack.c.l.b16 %v2339_v2 }
 0x175   :  { %v2058_v40 = vsel %vm2039_vm5, %v2022_v46, %v2057_v55  ;;  %v1471_v37 = vrot.slane %v1288_v48, %v3040_v19  ;;  %v2025_v58 = vunpack.c.l.b16 %v2340_v53  ;;  %v2026_v7 = vunpack.c.l.b16 %v2341_v18 }
 0x176   :  { %v2059_v23 = vsel %vm2041_vm6, %v2023_v5, %v2058_v40  ;;  %v1692_v41 = vrot.slane %v1691_v56, 4  ;;  %v1668_v50 = vrot.slane %v1667_v4, 2  ;;  %v1680_v34 = vmax.f32 %v1678_v3, %v1679_v38 }
 0x177   :  { %v2060_v42 = vsel %vm2043_vm7, %v2024_v10, %v2059_v23  ;;  %v1472_v62 = vcombine.high %v1471_v37, %v1471_v37  ;;  %v1656_v39 = vmax.f32 %v1654_v52, %v1655_v20  ;;  %v1479_v28 = vrot.slane %v1471_v37, %v3040_v19 }
 0x178   :  { %v2061_v15 = vsel %vm2045_vm8, %v2025_v58, %v2060_v42  ;;  %v1223_v2 = vadd.f32 %v1174_v60, %v3002_v24  ;;  %v1222_v14 = vadd.f32 %v3042_v49, %v2998_v8  ;;  %v1230_v25 = vadd.f32 %v3076_v13, %v3012_v16 }
 0x179   :  { %v2062_v9 = vsel %vm2047_vm9, %v2026_v7, %v2061_v15  ;;  %v1693_v43 = vmax.f32 %v1691_v56, %v1692_v41  ;;  %v1486_v27 = vrot.slane %v1472_v62, %v3040_v19  ;;  %v1487_v11 = vcombine.high %v1479_v28, %v1479_v28 }
 0x17a   :  { %v2072_v26 = vpack.c.b16 %v2062_v9, %v2062_v9  ;;  %v1669_v29 = vmax.f32 %v1667_v4, %v1668_v50  ;;  %v1681_v6 = vrot.slane %v1680_v34, 2  ;;  %v1856_v32 = vsel %vm1489_vm2, %v1479_v28, 4286644096 }
 0x17b   :  { %v1231_v24 = vadd.f32 %v1206_v59, %v3022_v22  ;;  %v1657_v33 = vrot.slane %v1656_v39, 1  ;;  %v1858_v8 = vunpack.i.l.bf16 %v1856_v32  ;;  %v1859_v49 = vunpack.i.h.bf16 %v1856_v32 }
 0x17c   :  { %2080 = vst [vmem:[%s3264_s3 + $0x8] sm:$0xf] %v2072_v26  ;;  %v1246_v16 = vadd.f32 %v3027_v57, %v1223_v2  ;;  %v1245_v13 = vadd.f32 %v3027_v57, %v1222_v14  ;;  %v1694_v12 = vrot.slane %v1693_v43, 2  ;;  %v1869_v44 = vsel %vm1489_vm2, %v1486_v27, 4286644096 }
 0x17d   :  { %v1882_v61 = vsel %vm1489_vm2, %v1487_v11, 4286644096  ;;  %v1253_v45 = vadd.f32 %v3027_v57, %v1230_v25  ;;  %v1670_v47 = vrot.slane %v1669_v29, 1  ;;  %v1682_v22 = vmax.f32 %v1680_v34, %v1681_v6 }
 0x17e   :  { %v1254_v30 = vadd.f32 %v3027_v57, %v1231_v24  ;;  %v1658_v35 = vmax.f32 %v1656_v39, %v1657_v33  ;;  %v1488_v63 = vcombine.high %v1486_v27, %v1486_v27  ;;  %v1860_v51 = vmax.f32 %v1858_v8, %v1859_v49 }
 0x17f   :  { %v1262_v53 = vmax.f32 %v1246_v16, 0.0  ;;  %v1871_v54 = vunpack.i.l.bf16 %v1869_v44  ;;  %v1872_v31 = vunpack.i.h.bf16 %v1869_v44  ;;  %v1884_v0 = vunpack.i.l.bf16 %v1882_v61 }
 0x180   :  { %v1885_v1 = vunpack.i.h.bf16 %v1882_v61  ;;  %v1261_v3 = vmax.f32 %v1245_v13, 0.0  ;;  %v1695_v17 = vmax.f32 %v1693_v43, %v1694_v12  ;;  %v1269_v36 = vmax.f32 %v1253_v45, 0.0 }
 0x181   :  { %v1671_v18 = vmax.f32 %v1669_v29, %v1670_v47  ;;  %v1683_v55 = vrot.slane %v1682_v22, 1  ;;  %v1861_v52 = vrot.slane %v1860_v51, 4  ;;  %v1895_v21 = vsel %vm1489_vm2, %v1488_v63, 4286644096 }
 0x182   :  { %v1275_v46 = vmax.f32 %v1261_v3, %v1262_v53  ;;  %v1270_v38 = vmax.f32 %v1254_v30, 0.0  ;;  %v1659_v56 = vpack.i.bf16 %v1658_v35, %v1658_v35  ;;  %v1873_v57 = vmax.f32 %v1871_v54, %v1872_v31 }
 0x183   :  { %v1886_v48 = vmax.f32 %v1884_v0, %v1885_v1  ;;  %v1696_v5 = vrot.slane %v1695_v17, 1  ;;  %v1897_v10 = vunpack.i.l.bf16 %v1895_v21  ;;  %v1898_v40 = vunpack.i.h.bf16 %v1895_v21 }
 0x184   :  { %v1283_v20 = vpack.c.bf16 %v1275_v46, %v1275_v46  ;;  %v1279_v4 = vmax.f32 %v1269_v36, %v1270_v38  ;;  %v1672_v37 = vpack.i.bf16 %v1671_v18, %v1671_v18  ;;  %v1684_v60 = vmax.f32 %v1682_v22, %v1683_v55 }
 0x185   :  { %v1862_v58 = vmax.f32 %v1860_v51, %v1861_v52  ;;  %v2330_v23 = vcombine.low %v1659_v56, %v1659_v56  ;;  %v1874_v41 = vrot.slane %v1873_v57, 4  ;;  %v1887_v42 = vrot.slane %v1886_v48, 4 }
 0x186   :  { %v1351_v7 = vrot.slane %v1283_v20, %v3040_v19  ;;  %v1697_v50 = vmax.f32 %v1695_v17, %v1696_v5  ;;  %v1287_v15 = vpack.c.bf16 %v1279_v4, %v1279_v4  ;;  %v1899_v39 = vmax.f32 %v1897_v10, %v1898_v40 }
 0x187   :  { %v3194_v28 = vpack.i.bf16 %v1684_v60, %v1684_v60  ;;  %v2331_v2 = vcombine.low %v1672_v37, %v1672_v37  ;;  %v1863_v59 = vrot.slane %v1862_v58, 2  ;;  %v1875_v14 = vmax.f32 %v1873_v57, %v1874_v41 }
 0x188   :  { %v1352_v34 = vcombine.high %v1351_v7, %v1351_v7  ;;  %v1359_v62 = vrot.slane %v1351_v7, %v3040_v19  ;;  %v1888_v25 = vmax.f32 %v1886_v48, %v1887_v42  ;;  %v3198_v27 = vpack.i.bf16 %v1697_v50, %v1697_v50 }
 0x189   :  { %v3200_v11 = vunpack.c.l.b16 %v2330_v23  ;;  %v1447_v6 = vrot.slane %v1287_v15, %v3040_v19  ;;  %v1900_v32 = vrot.slane %v1899_v39, 4  ;;  %v2332_v49 = vcombine.low %v3194_v28, %v3194_v28 }
 0x18a   :  { %v1366_v9 = vrot.slane %v1352_v34, %v3040_v19  ;;  %v1367_v26 = vcombine.high %v1359_v62, %v1359_v62  ;;  %v1596_v43 = vsel %vm1489_vm2, %v1359_v62, 4286644096  ;;  %v3206_v16 = vmax.f32 %v1862_v58, %v1863_v59 }
 0x18b   :  { %v1598_v29 = vunpack.i.l.bf16 %v1596_v43  ;;  %v1599_v33 = vunpack.i.h.bf16 %v1596_v43  ;;  %v1876_v44 = vrot.slane %v1875_v14, 2  ;;  %v1889_v61 = vrot.slane %v1888_v25, 2 }
 0x18c   :  { %v1368_v24 = vcombine.high %v1366_v9, %v1366_v9  ;;  %v1609_v8 = vsel %vm1489_vm2, %v1366_v9, 4286644096  ;;  %v1622_v47 = vsel %vm1489_vm2, %v1367_v26, 4286644096  ;;  %v1448_v63 = vcombine.high %v1447_v6, %v1447_v6 }
 0x18d   :  { %v1611_v13 = vunpack.i.l.bf16 %v1609_v8  ;;  %v1612_v12 = vunpack.i.h.bf16 %v1609_v8  ;;  %v1600_v45 = vmax.f32 %v1598_v29, %v1599_v33  ;;  %v1624_v30 = vunpack.i.l.bf16 %v1622_v47 }
 0x18e   :  { %v1625_v35 = vunpack.i.h.bf16 %v1622_v47  ;;  %v3209_v51 = vunpack.c.l.b16 %v2331_v2  ;;  %v3211_v53 = vmax.f32 %v1899_v39, %v1900_v32  ;;  %v1635_v31 = vsel %vm1489_vm2, %v1368_v24, 4286644096 }
 0x18f   :  { %v1613_v22 = vmax.f32 %v1611_v13, %v1612_v12  ;;  %v1601_v54 = vrot.slane %v1600_v45, 4  ;;  %v1865_v0 = vrot.slane %v3206_v16, 1  ;;  %v1637_v17 = vunpack.i.l.bf16 %v1635_v31 }
 0x190   :  { %v1626_v3 = vmax.f32 %v1624_v30, %v1625_v35  ;;  %v3215_v36 = vmax.f32 %v1875_v14, %v1876_v44  ;;  %v1638_v55 = vunpack.i.h.bf16 %v1635_v31  ;;  %v1455_v52 = vrot.slane %v1447_v6, %v3040_v19 }
 0x191   :  { %v1614_v1 = vrot.slane %v1613_v22, 4  ;;  %v1602_v18 = vmax.f32 %v1600_v45, %v1601_v54  ;;  %v3218_v21 = vmax.f32 %v1888_v25, %v1889_v61  ;;  %v1462_v56 = vrot.slane %v1448_v63, %v3040_v19 }
 0x192   :  { %v1627_v38 = vrot.slane %v1626_v3, 4  ;;  %v1902_v57 = vrot.slane %v3211_v53, 2  ;;  %v1639_v5 = vmax.f32 %v1637_v17, %v1638_v55  ;;  %v1463_v20 = vcombine.high %v1455_v52, %v1455_v52 }
 0x193   :  { %v1615_v46 = vmax.f32 %v1613_v22, %v1614_v1  ;;  %v1603_v48 = vrot.slane %v1602_v18, 2  ;;  %v1464_v40 = vcombine.high %v1462_v56, %v1462_v56  ;;  %v1804_v37 = vsel %vm1489_vm2, %v1455_v52, 4286644096 }
 0x194   :  { %v1628_v10 = vmax.f32 %v1626_v3, %v1627_v38  ;;  %v1640_v58 = vrot.slane %v1639_v5, 4  ;;  %v1806_v7 = vunpack.i.l.bf16 %v1804_v37  ;;  %v1807_v23 = vunpack.i.h.bf16 %v1804_v37 }
 0x195   :  { %v1616_v4 = vrot.slane %v1615_v46, 2  ;;  %v1604_v60 = vmax.f32 %v1602_v18, %v1603_v48  ;;  %v1817_v50 = vsel %vm1489_vm2, %v1462_v56, 4286644096  ;;  %v1830_v19 = vsel %vm1489_vm2, %v1463_v20, 4286644096 }
 0x196   :  { %v1629_v42 = vrot.slane %v1628_v10, 2  ;;  %v1641_v62 = vmax.f32 %v1639_v5, %v1640_v58  ;;  %v1808_v15 = vmax.f32 %v1806_v7, %v1807_v23  ;;  %v1819_v39 = vunpack.i.l.bf16 %v1817_v50 }
 0x197   :  { %v1617_v41 = vmax.f32 %v1615_v46, %v1616_v4  ;;  %v1605_v34 = vrot.slane %v1604_v60, 1  ;;  %v1820_v9 = vunpack.i.h.bf16 %v1817_v50  ;;  %v1832_v14 = vunpack.i.l.bf16 %v1830_v19 }
 0x198   :  { %v1630_v59 = vmax.f32 %v1628_v10, %v1629_v42  ;;  %v1642_v26 = vrot.slane %v1641_v62, 2  ;;  %v1809_v43 = vrot.slane %v1808_v15, 4  ;;  %v1833_v29 = vunpack.i.h.bf16 %v1830_v19 }
 0x199   :  { %v1618_v2 = vrot.slane %v1617_v41, 1  ;;  %v1606_v25 = vmax.f32 %v1604_v60, %v1605_v34  ;;  %v1821_v24 = vmax.f32 %v1819_v39, %v1820_v9  ;;  %v1843_v33 = vsel %vm1489_vm2, %v1464_v40, 4286644096 }
 0x19a   :  { %v1631_v32 = vrot.slane %v1630_v59, 1  ;;  %v1643_v13 = vmax.f32 %v1641_v62, %v1642_v26  ;;  %v1810_v12 = vmax.f32 %v1808_v15, %v1809_v43  ;;  %v1834_v44 = vmax.f32 %v1832_v14, %v1833_v29 }
 0x19b   :  { %v1619_v6 = vmax.f32 %v1617_v41, %v1618_v2  ;;  %v1607_v8 = vpack.i.bf16 %v1606_v25, %v1606_v25  ;;  %v1822_v47 = vrot.slane %v1821_v24, 4  ;;  %v1845_v22 = vunpack.i.l.bf16 %v1843_v33 }
 0x19c   :  { %v1632_v45 = vmax.f32 %v1630_v59, %v1631_v32  ;;  %v1644_v30 = vrot.slane %v1643_v13, 1  ;;  %v1811_v63 = vrot.slane %v1810_v12, 2  ;;  %v1835_v54 = vrot.slane %v1834_v44, 4 }
 0x19d   :  { %v1620_v61 = vpack.i.bf16 %v1619_v6, %v1619_v6  ;;  %v2326_v35 = vcombine.low %v1607_v8, %v1607_v8  ;;  %v1823_v3 = vmax.f32 %v1821_v24, %v1822_v47  ;;  %v1846_v17 = vunpack.i.h.bf16 %v1843_v33 }
 0x19e   :  { %v1633_v31 = vpack.i.bf16 %v1632_v45, %v1632_v45  ;;  %v1645_v18 = vmax.f32 %v1643_v13, %v1644_v30  ;;  %v1812_v52 = vmax.f32 %v1810_v12, %v1811_v63  ;;  %v1836_v46 = vmax.f32 %v1834_v44, %v1835_v54 }
 0x19f   :  { %v2327_v1 = vcombine.low %v1620_v61, %v1620_v61  ;;  %v2011_v55 = vunpack.c.l.b16 %v2326_v35  ;;  %v1824_v48 = vrot.slane %v1823_v3, 2  ;;  %v1847_v5 = vmax.f32 %v1845_v22, %v1846_v17 }
 0x1a0   :  { %v2328_v38 = vcombine.low %v1633_v31, %v1633_v31  ;;  %v1903_v20 = vmax.f32 %v3211_v53, %v1902_v57  ;;  %v1646_v4 = vpack.i.bf16 %v1645_v18, %v1645_v18  ;;  %v1813_v10 = vrot.slane %v1812_v52, 1 }
 0x1a1   :  { %v2012_v56 = vunpack.c.l.b16 %v2327_v1  ;;  %v1837_v40 = vrot.slane %v1836_v46, 2  ;;  %v1825_v58 = vmax.f32 %v1823_v3, %v1824_v48  ;;  %v1848_v7 = vrot.slane %v1847_v5, 4 }
 0x1a2   :  { %v2013_v37 = vunpack.c.l.b16 %v2328_v38  ;;  %v1878_v23 = vrot.slane %v3215_v36, 1  ;;  %v2329_v41 = vcombine.low %v1646_v4, %v1646_v4  ;;  %v1814_v42 = vmax.f32 %v1812_v52, %v1813_v10 }
 0x1a3   :  { %v2049_v60 = vsel %vm2035_vm3, %v2012_v56, %v2011_v55  ;;  %v1838_v50 = vmax.f32 %v1836_v46, %v1837_v40  ;;  %v2333_v19 = vcombine.low %v3198_v27, %v3198_v27  ;;  %v1826_v62 = vrot.slane %v1825_v58, 1 }
 0x1a4   :  { %v2050_v34 = vsel %vm2037_vm4, %v2013_v37, %v2049_v60  ;;  %v1849_v53 = vmax.f32 %v1847_v5, %v1848_v7  ;;  %v1891_v57 = vrot.slane %v3218_v21, 1  ;;  %v2014_v15 = vunpack.c.l.b16 %v2329_v41 }
 0x1a5   :  { %v1815_v39 = vpack.i.bf16 %v1814_v42, %v1814_v42  ;;  %v1839_v2 = vrot.slane %v1838_v50, 1  ;;  %v2017_v59 = vunpack.c.l.b16 %v2332_v49  ;;  %v1904_v9 = vrot.slane %v1903_v20, 1 }
 0x1a6   :  { %v1827_v14 = vmax.f32 %v1825_v58, %v1826_v62  ;;  %v1850_v25 = vrot.slane %v1849_v53, 2  ;;  %v1866_v27 = vmax.f32 %v3206_v16, %v1865_v0  ;;  %v1879_v26 = vmax.f32 %v3215_v36, %v1878_v23 }
 0x1a7   :  { %v2051_v43 = vsel %vm2039_vm5, %v2014_v15, %v2050_v34  ;;  %v1840_v29 = vmax.f32 %v1838_v50, %v1839_v2  ;;  %v2342_v33 = vcombine.low %v1815_v39, %v1815_v39  ;;  %v2018_v28 = vunpack.c.l.b16 %v2333_v19 }
 0x1a8   :  { %v2052_v6 = vsel %vm2041_vm6, %v3200_v11, %v2051_v43  ;;  %v1828_v32 = vpack.i.bf16 %v1827_v14, %v1827_v14  ;;  %v1851_v24 = vmax.f32 %v1849_v53, %v1850_v25  ;;  %v1892_v49 = vmax.f32 %v3218_v21, %v1891_v57 }
 0x1a9   :  { %v2053_v8 = vsel %vm2043_vm7, %v3209_v51, %v2052_v6  ;;  %v1841_v13 = vpack.i.bf16 %v1840_v29, %v1840_v29  ;;  %v1905_v12 = vmax.f32 %v1903_v20, %v1904_v9  ;;  %v1867_v44 = vpack.i.bf16 %v1866_v27, %v1866_v27 }
 0x1aa   :  { %v2054_v16 = vsel %vm2045_vm8, %v2017_v59, %v2053_v8  ;;  %v1852_v0 = vrot.slane %v1851_v24, 1  ;;  %v2343_v36 = vcombine.low %v1828_v32, %v1828_v32  ;;  %v1880_v61 = vpack.i.bf16 %v1879_v26, %v1879_v26 }
 0x1ab   :  { %v2055_v45 = vsel %vm2047_vm9, %v2018_v28, %v2054_v16  ;;  %v2344_v11 = vcombine.low %v1841_v13, %v1841_v13  ;;  %v2027_v30 = vunpack.c.l.b16 %v2342_v33  ;;  %v1893_v63 = vpack.i.bf16 %v1892_v49, %v1892_v49 }
 0x1ac   :  { %v2071_v47 = vpack.c.b16 %v2055_v45, %v2055_v45  ;;  %v1853_v22 = vmax.f32 %v1851_v24, %v1852_v0  ;;  %v2028_v35 = vunpack.c.l.b16 %v2343_v36  ;;  %v1906_v54 = vpack.i.bf16 %v1905_v12, %v1905_v12 }
 0x1ad   :  { %v2029_v21 = vunpack.c.l.b16 %v2344_v11  ;;  %v2346_v1 = vcombine.low %v1867_v44, %v1867_v44  ;;  %v2347_v3 = vcombine.low %v1880_v61, %v1880_v61  ;;  %v2348_v18 = vcombine.low %v1893_v63, %v1893_v63 }
 0x1ae   :  { %2079 = vst [vmem:[%s3264_s3 + $0x4] sm:$0xf] %v2071_v47  ;;  %v1854_v51 = vpack.i.bf16 %v1853_v22, %v1853_v22  ;;  %v2063_v31 = vsel %vm2035_vm3, %v2028_v35, %v2027_v30  ;;  %v2349_v52 = vcombine.low %v1906_v54, %v1906_v54 }
 0x1af   :  { %v2064_v55 = vsel %vm2037_vm4, %v2029_v21, %v2063_v31  ;;  %v2031_v38 = vunpack.c.l.b16 %v2346_v1  ;;  %v2032_v56 = vunpack.c.l.b16 %v2347_v3  ;;  %v2033_v5 = vunpack.c.l.b16 %v2348_v18 }
 0x1b0   :  { %v2345_v17 = vcombine.low %v1854_v51, %v1854_v51  ;;  %v2034_v4 = vunpack.c.l.b16 %v2349_v52 }
 0x1b2   :  { %v2030_v46 = vunpack.c.l.b16 %v2345_v17 }
 0x1b4   :  { %v2065_v48 = vsel %vm2039_vm5, %v2030_v46, %v2064_v55 }
 0x1b5   :  { %v2066_v20 = vsel %vm2041_vm6, %v2031_v38, %v2065_v48 }
 0x1b6   :  { %v2067_v10 = vsel %vm2043_vm7, %v2032_v56, %v2066_v20 }
 0x1b7   :  { %v2068_v40 = vsel %vm2045_vm8, %v2033_v5, %v2067_v10 }
 0x1b8   :  { %v2069_v37 = vsel %vm2047_vm9, %v2034_v4, %v2068_v40 }
 0x1b9   :  { %v2073_v60 = vpack.c.b16 %v2069_v37, %v2069_v37 }
 0x1bb   :  { %2081 = vst [vmem:[%s3264_s3 + $0xc] sm:$0xf] %v2073_v60 }

// kernel: net_forward.5
= control target key start
LH: loop header
LB: loop body
LE: loop exit
PB: predicated region body
PF: predicated region fallthrough
CT: control target
= control target key end

     0   :  { %v538_v36 = vlaneseq  ;;  %v5689_v37 = vmov 1966171168   ;;  %s7519_s0 = inlined_call_operand.vmem [shape: bf16[2,2048], index: 0, kind: input, shape index: {}]   ;;  %s7520_s1 = inlined_call_operand.vmem [shape: bf16[2048,512], index: 1, kind: input, shape index: {}]   ;;  %s7521_s2 = inlined_call_operand.vmem [shape: f32[1,512], index: 2, kind: input, shape index: {}]   ;;  %s7522_s3 = inlined_call_operand.vmem [shape: bf16[512,128], index: 3, kind: input, shape index: {}]   ;;  %s7523_s4 = inlined_call_operand.vmem [shape: f32[1,128], index: 4, kind: input, shape index: {}]   ;;  %s7524_s5 = inlined_call_operand.hbm [shape: f32[2,128], index: 5, kind: output, shape index: {}]  }
   0x1   :  { %v4860_v0 = vld [vmem:[%s7520_s1 + $0xe4] ss:$16 sps:$4 sm:$0xff]   ;;  %v4864_v2 = vld [vmem:[%s7520_s1 + $0xe0] ss:$16 sps:$4 sm:$0xff]   ;;  %v562_v38 = vunpack.c.l.s4 %v5689_v37 }
   0x2   :  { %v4862_v1 = vld [vmem:[%s7520_s1 + $0x2e4] ss:$16 sps:$4 sm:$0xff]   ;;  %3234 = vmatprep.subr.bf16.mxu0 %v4860_v0  ;;  %v4865_v3 = vld [vmem:[%s7520_s1 + $0x2e0] ss:$16 sps:$4 sm:$0xff]   ;;  %v5838_v42 = vshrl.u32 %v538_v36, 7 }
   0x3   :  { %3275 = vmatprep.subr.bf16.mxu1 %v4862_v1  ;;  %v4866_v4 = vld [vmem:[%s7520_s1 + $0xc4] ss:$16 sps:$4 sm:$0xff]   ;;  %3235 = vmatpush1.bf16.msra.mxu0 %v4864_v2  ;;  %v4870_v6 = vld [vmem:[%s7520_s1 + $0xc0] ss:$16 sps:$4 sm:$0xff]   ;;  %v563_v43 = vunpack.c.0.s8 %v562_v38 }
   0x4   :  { %3276 = vmatpush1.bf16.msra.mxu1 %v4865_v3  ;;  %v4868_v5 = vld [vmem:[%s7520_s1 + $0x2c4] ss:$16 sps:$4 sm:$0xff]   ;;  %3236 = vmatprep.subr.bf16.mxu0 %v4866_v4  ;;  %v4871_v7 = vld [vmem:[%s7520_s1 + $0x2c0] ss:$16 sps:$4 sm:$0xff]  }
   0x5   :  { %3277 = vmatprep.subr.bf16.mxu1 %v4868_v5  ;;  %v4872_v8 = vld [vmem:[%s7520_s1 + $0xa4] ss:$16 sps:$4 sm:$0xff]   ;;  %v4876_v10 = vld [vmem:[%s7520_s1 + $0xa0] ss:$16 sps:$4 sm:$0xff]   ;;  %v5856_v49 = vsub.s32 %v563_v43, %v5838_v42 }
   0x6   :  { %v4874_v9 = vld [vmem:[%s7520_s1 + $0x2a4] ss:$16 sps:$4 sm:$0xff]   ;;  %v4877_v11 = vld [vmem:[%s7520_s1 + $0x2a0] ss:$16 sps:$4 sm:$0xff]  }
   0x7   :  { %3237 = vmatpush1.bf16.msra.mxu0 %v4870_v6  ;;  %v4878_v12 = vld [vmem:[%s7520_s1 + $0x84] ss:$16 sps:$4 sm:$0xff]   ;;  %v4882_v14 = vld [vmem:[%s7520_s1 + $0x80] ss:$16 sps:$4 sm:$0xff]  }
   0x8   :  { %3278 = vmatpush1.bf16.msra.mxu1 %v4871_v7  ;;  %3238 = vmatprep.subr.bf16.mxu0 %v4872_v8  ;;  %v4880_v13 = vld [vmem:[%s7520_s1 + $0x284] ss:$16 sps:$4 sm:$0xff]   ;;  %v4883_v15 = vld [vmem:[%s7520_s1 + $0x280] ss:$16 sps:$4 sm:$0xff]  }
   0x9   :  { %3279 = vmatprep.subr.bf16.mxu1 %v4874_v9  ;;  %v4884_v16 = vld [vmem:[%s7520_s1 + $0x64] ss:$16 sps:$4 sm:$0xff]   ;;  %v4888_v18 = vld [vmem:[%s7520_s1 + $0x60] ss:$16 sps:$4 sm:$0xff]  }
   0xa   :  { %v4886_v17 = vld [vmem:[%s7520_s1 + $0x264] ss:$16 sps:$4 sm:$0xff]   ;;  %v4889_v19 = vld [vmem:[%s7520_s1 + $0x260] ss:$16 sps:$4 sm:$0xff]  }
   0xb   :  { %3239 = vmatpush1.bf16.msra.mxu0 %v4876_v10  ;;  %v4890_v20 = vld [vmem:[%s7520_s1 + $0x44] ss:$16 sps:$4 sm:$0xff]   ;;  %v4894_v22 = vld [vmem:[%s7520_s1 + $0x40] ss:$16 sps:$4 sm:$0xff]  }
   0xc   :  { %3280 = vmatpush1.bf16.msra.mxu1 %v4877_v11  ;;  %3240 = vmatprep.subr.bf16.mxu0 %v4878_v12  ;;  %v4892_v21 = vld [vmem:[%s7520_s1 + $0x244] ss:$16 sps:$4 sm:$0xff]   ;;  %v4895_v23 = vld [vmem:[%s7520_s1 + $0x240] ss:$16 sps:$4 sm:$0xff]  }
   0xd   :  { %3281 = vmatprep.subr.bf16.mxu1 %v4880_v13  ;;  %v4896_v24 = vld [vmem:[%s7520_s1 + $0x24] ss:$16 sps:$4 sm:$0xff]   ;;  %v4900_v26 = vld [vmem:[%s7520_s1 + $0x20] ss:$16 sps:$4 sm:$0xff]  }
   0xe   :  { %v4898_v25 = vld [vmem:[%s7520_s1 + $0x224] ss:$16 sps:$4 sm:$0xff]   ;;  %v4901_v27 = vld [vmem:[%s7520_s1 + $0x220] ss:$16 sps:$4 sm:$0xff]  }
   0xf   :  { %3241 = vmatpush1.bf16.msra.mxu0 %v4882_v14  ;;  %v4902_v28 = vld [vmem:[%s7520_s1 + $0x4] ss:$16 sps:$4 sm:$0xff]   ;;  %v4906_v30 = vld [vmem:[%s7520_s1] ss:$16 sps:$4 sm:$0xff]  }
  0x10   :  { %3282 = vmatpush1.bf16.msra.mxu1 %v4883_v15  ;;  %3242 = vmatprep.subr.bf16.mxu0 %v4884_v16  ;;  %v4904_v29 = vld [vmem:[%s7520_s1 + $0x204] ss:$16 sps:$4 sm:$0xff]   ;;  %v4907_v31 = vld [vmem:[%s7520_s1 + $0x200] ss:$16 sps:$4 sm:$0xff]  }
  0x11   :  { %3283 = vmatprep.subr.bf16.mxu1 %v4886_v17  ;;  %v4908_v32 = vld [vmem:[%s7520_s1 + $0x1e4] ss:$16 sps:$4 sm:$0xff]   ;;  %v4912_v34 = vld [vmem:[%s7520_s1 + $0x1e0] ss:$16 sps:$4 sm:$0xff]  }
  0x12   :  { %v4910_v33 = vld [vmem:[%s7520_s1 + $0x3e4] ss:$16 sps:$4 sm:$0xff]   ;;  %v4913_v35 = vld [vmem:[%s7520_s1 + $0x3e0] ss:$16 sps:$4 sm:$0xff]  }
  0x13   :  { %3243 = vmatpush1.bf16.msra.mxu0 %v4888_v18  ;;  %v4914_v39 = vld [vmem:[%s7520_s1 + $0x1c4] ss:$16 sps:$4 sm:$0xff]   ;;  %v4918_v41 = vld [vmem:[%s7520_s1 + $0x1c0] ss:$16 sps:$4 sm:$0xff]  }
  0x14   :  { %3284 = vmatpush1.bf16.msra.mxu1 %v4889_v19  ;;  %3244 = vmatprep.subr.bf16.mxu0 %v4890_v20  ;;  %v4916_v40 = vld [vmem:[%s7520_s1 + $0x3c4] ss:$16 sps:$4 sm:$0xff]   ;;  %v4919_v44 = vld [vmem:[%s7520_s1 + $0x3c0] ss:$16 sps:$4 sm:$0xff]  }
  0x15   :  { %3285 = vmatprep.subr.bf16.mxu1 %v4892_v21  ;;  %v4920_v45 = vld [vmem:[%s7520_s1 + $0x1a4] ss:$16 sps:$4 sm:$0xff]   ;;  %v4924_v47 = vld [vmem:[%s7520_s1 + $0x1a0] ss:$16 sps:$4 sm:$0xff]  }
  0x16   :  { %v4922_v46 = vld [vmem:[%s7520_s1 + $0x3a4] ss:$16 sps:$4 sm:$0xff]   ;;  %v4925_v48 = vld [vmem:[%s7520_s1 + $0x3a0] ss:$16 sps:$4 sm:$0xff]  }
  0x17   :  { %3245 = vmatpush1.bf16.msra.mxu0 %v4894_v22  ;;  %v4926_v50 = vld [vmem:[%s7520_s1 + $0x184] ss:$16 sps:$4 sm:$0xff]   ;;  %v4930_v53 = vld [vmem:[%s7520_s1 + $0x180] ss:$16 sps:$4 sm:$0xff]  }
  0x18   :  { %3286 = vmatpush1.bf16.msra.mxu1 %v4895_v23  ;;  %3246 = vmatprep.subr.bf16.mxu0 %v4896_v24  ;;  %v4928_v51 = vld [vmem:[%s7520_s1 + $0x384] ss:$16 sps:$4 sm:$0xff]   ;;  %v4931_v55 = vld [vmem:[%s7520_s1 + $0x380] ss:$16 sps:$4 sm:$0xff]  }
  0x19   :  { %3287 = vmatprep.subr.bf16.mxu1 %v4898_v25  ;;  %v22_v52 = vld [vmem:[%s7519_s0] sm:$0xff] }
  0x1a   :  { %v567_v54 = vrot.slane %v22_v52, %v5856_v49  ;;  %v4932_v56 = vld [vmem:[%s7520_s1 + $0x164] ss:$16 sps:$4 sm:$0xff]   ;;  %v4936_v59 = vld [vmem:[%s7520_s1 + $0x160] ss:$16 sps:$4 sm:$0xff]   ;;  %v560_v1 = vcombine.high %v22_v52, %v22_v52 }
  0x1b   :  { %3247 = vmatpush1.bf16.msra.mxu0 %v4900_v26  ;;  %v4934_v57 = vld [vmem:[%s7520_s1 + $0x364] ss:$16 sps:$4 sm:$0xff]   ;;  %v4937_v61 = vld [vmem:[%s7520_s1 + $0x360] ss:$16 sps:$4 sm:$0xff]  }
  0x1c   :  { %3288 = vmatpush1.bf16.msra.mxu1 %v4901_v27  ;;  %3248 = vmatprep.subr.bf16.mxu0 %v4902_v28  ;;  %v575_v58 = vcombine.high %v567_v54, %v567_v54  ;;  %v4938_v62 = vld [vmem:[%s7520_s1 + $0x144] ss:$16 sps:$4 sm:$0xff]   ;;  %v4942_v2 = vld [vmem:[%s7520_s1 + $0x140] ss:$16 sps:$4 sm:$0xff]   ;;  %v5914_v6 = vrot.slane %v560_v1, %v5856_v49  ;;  %v5934_v13 = vrot.slane %v567_v54, %v5856_v49 }
  0x1d   :  { %3289 = vmatprep.subr.bf16.mxu1 %v4904_v29  ;;  %v4940_v63 = vld [vmem:[%s7520_s1 + $0x344] ss:$16 sps:$4 sm:$0xff]   ;;  %v4943_v3 = vld [vmem:[%s7520_s1 + $0x340] ss:$16 sps:$4 sm:$0xff]  }
  0x1e   :  { %v5884_v60 = vrot.slane %v575_v58, %v5856_v49  ;;  %v4944_v4 = vld [vmem:[%s7520_s1 + $0x124] ss:$16 sps:$4 sm:$0xff]   ;;  %v4948_v7 = vld [vmem:[%s7520_s1 + $0x120] ss:$16 sps:$4 sm:$0xff]   ;;  %v576_v11 = vcombine.high %v5914_v6, %v5914_v6  ;;  %v5950_v18 = vcombine.high %v5934_v13, %v5934_v13 }
  0x1f   :  { %3249 = vmatpush1.bf16.msra.mxu0 %v4906_v30  ;;  %v4946_v5 = vld [vmem:[%s7520_s1 + $0x324] ss:$16 sps:$4 sm:$0xff]   ;;  %v4949_v8 = vld [vmem:[%s7520_s1 + $0x320] ss:$16 sps:$4 sm:$0xff]  }
  0x20   :  { %3290 = vmatpush1.bf16.msra.mxu1 %v4907_v31  ;;  %3250 = vmatprep.subr.bf16.mxu0 %v4908_v32  ;;  %v5897_v0 = vcombine.high %v5884_v60, %v5884_v60  ;;  %v4950_v9 = vld [vmem:[%s7520_s1 + $0x104] ss:$16 sps:$4 sm:$0xff]   ;;  %v4954_v12 = vld [vmem:[%s7520_s1 + $0x100] ss:$16 sps:$4 sm:$0xff]   ;;  %v5946_v17 = vrot.slane %v576_v11, %v5856_v49 }
  0x21   :  { %3291 = vmatprep.subr.bf16.mxu1 %v4910_v33  ;;  %3266 = vmatprep.mubr.bf16.mxu0 %v5884_v60  ;;  %v4952_v10 = vld [vmem:[%s7520_s1 + $0x304] ss:$16 sps:$4 sm:$0xff]   ;;  %v4955_v14 = vld [vmem:[%s7520_s1 + $0x300] ss:$16 sps:$4 sm:$0xff]  }
  0x22   :  { %3307 = vmatprep.mubr.bf16.mxu1 %v5897_v0  ;;  %v4958_v15 = vld [vmem:[%s7520_s1 + $0x4e4] ss:$16 sps:$4 sm:$0xff]   ;;  %v4956_v19 = vld [vmem:[%s7520_s1 + $0x4e0] ss:$16 sps:$4 sm:$0xff]   ;;  %v5966_v23 = vcombine.high %v5946_v17, %v5946_v17 }
  0x23   :  { %3251 = vmatpush2.bf16.msra.mxu0 %v4912_v34  ;;  %v4961_v16 = vld [vmem:[%s7520_s1 + $0x6e4] ss:$16 sps:$4 sm:$0xff]   ;;  %v4959_v20 = vld [vmem:[%s7520_s1 + $0x6e0] ss:$16 sps:$4 sm:$0xff]  }
  0x24   :  { %3292 = vmatpush2.bf16.msra.mxu1 %v4913_v35  ;;  %3252 = vmatprep.subr.bf16.mxu0 %v4914_v39  ;;  %v4964_v21 = vld [vmem:[%s7520_s1 + $0x4c4] ss:$16 sps:$4 sm:$0xff]   ;;  %v4962_v24 = vld [vmem:[%s7520_s1 + $0x4c0] ss:$16 sps:$4 sm:$0xff]  }
  0x25   :  { %3293 = vmatprep.subr.bf16.mxu1 %v4916_v40  ;;  %v4967_v22 = vld [vmem:[%s7520_s1 + $0x6c4] ss:$16 sps:$4 sm:$0xff]   ;;  %v4965_v25 = vld [vmem:[%s7520_s1 + $0x6c0] ss:$16 sps:$4 sm:$0xff]  }
  0x26   :  { %v4970_v26 = vld [vmem:[%s7520_s1 + $0x4a4] ss:$16 sps:$4 sm:$0xff]   ;;  %v4968_v28 = vld [vmem:[%s7520_s1 + $0x4a0] ss:$16 sps:$4 sm:$0xff]  }
  0x27   :  { %3253 = vmatpush2.bf16.msra.mxu0 %v4918_v41  ;;  %v4973_v27 = vld [vmem:[%s7520_s1 + $0x6a4] ss:$16 sps:$4 sm:$0xff]   ;;  %v4971_v29 = vld [vmem:[%s7520_s1 + $0x6a0] ss:$16 sps:$4 sm:$0xff]  }
  0x28   :  { %3294 = vmatpush2.bf16.msra.mxu1 %v4919_v44  ;;  %3254 = vmatprep.subr.bf16.mxu0 %v4920_v45  ;;  %v4976_v30 = vld [vmem:[%s7520_s1 + $0x484] ss:$16 sps:$4 sm:$0xff]   ;;  %v4974_v32 = vld [vmem:[%s7520_s1 + $0x480] ss:$16 sps:$4 sm:$0xff]  }
  0x29   :  { %3295 = vmatprep.subr.bf16.mxu1 %v4922_v46  ;;  %v4979_v31 = vld [vmem:[%s7520_s1 + $0x684] ss:$16 sps:$4 sm:$0xff]   ;;  %v4977_v33 = vld [vmem:[%s7520_s1 + $0x680] ss:$16 sps:$4 sm:$0xff]  }
  0x2a   :  { %v4982_v34 = vld [vmem:[%s7520_s1 + $0x464] ss:$16 sps:$4 sm:$0xff]   ;;  %v4980_v36 = vld [vmem:[%s7520_s1 + $0x460] ss:$16 sps:$4 sm:$0xff]  }
  0x2b   :  { %3255 = vmatpush2.bf16.msra.mxu0 %v4924_v47  ;;  %v4985_v35 = vld [vmem:[%s7520_s1 + $0x664] ss:$16 sps:$4 sm:$0xff]   ;;  %v4983_v37 = vld [vmem:[%s7520_s1 + $0x660] ss:$16 sps:$4 sm:$0xff]  }
  0x2c   :  { %3296 = vmatpush2.bf16.msra.mxu1 %v4925_v48  ;;  %3256 = vmatprep.subr.bf16.mxu0 %v4926_v50  ;;  %v4988_v38 = vld [vmem:[%s7520_s1 + $0x444] ss:$16 sps:$4 sm:$0xff]   ;;  %v4986_v40 = vld [vmem:[%s7520_s1 + $0x440] ss:$16 sps:$4 sm:$0xff]  }
  0x2d   :  { %3297 = vmatprep.subr.bf16.mxu1 %v4928_v51  ;;  %v4991_v39 = vld [vmem:[%s7520_s1 + $0x644] ss:$16 sps:$4 sm:$0xff]   ;;  %v4989_v41 = vld [vmem:[%s7520_s1 + $0x640] ss:$16 sps:$4 sm:$0xff]  }
  0x2e   :  { %v4994_v43 = vld [vmem:[%s7520_s1 + $0x424] ss:$16 sps:$4 sm:$0xff]   ;;  %v4992_v45 = vld [vmem:[%s7520_s1 + $0x420] ss:$16 sps:$4 sm:$0xff]  }
  0x2f   :  { %3257 = vmatpush2.bf16.msra.mxu0 %v4930_v53  ;;  %v4997_v44 = vld [vmem:[%s7520_s1 + $0x624] ss:$16 sps:$4 sm:$0xff]   ;;  %v4995_v46 = vld [vmem:[%s7520_s1 + $0x620] ss:$16 sps:$4 sm:$0xff]  }
  0x30   :  { %3298 = vmatpush2.bf16.msra.mxu1 %v4931_v55  ;;  %3258 = vmatprep.subr.bf16.mxu0 %v4932_v56  ;;  %v5000_v47 = vld [vmem:[%s7520_s1 + $0x404] ss:$16 sps:$4 sm:$0xff]   ;;  %v4998_v50 = vld [vmem:[%s7520_s1 + $0x400] ss:$16 sps:$4 sm:$0xff]  }
  0x31   :  { %3299 = vmatprep.subr.bf16.mxu1 %v4934_v57  ;;  %v5003_v48 = vld [vmem:[%s7520_s1 + $0x604] ss:$16 sps:$4 sm:$0xff]   ;;  %v5001_v51 = vld [vmem:[%s7520_s1 + $0x600] ss:$16 sps:$4 sm:$0xff]  }
  0x32   :  { %v5006_v52 = vld [vmem:[%s7520_s1 + $0x5e4] ss:$16 sps:$4 sm:$0xff]   ;;  %v5004_v54 = vld [vmem:[%s7520_s1 + $0x5e0] ss:$16 sps:$4 sm:$0xff]  }
  0x33   :  { %3259 = vmatpush2.bf16.msra.mxu0 %v4936_v59  ;;  %v5009_v53 = vld [vmem:[%s7520_s1 + $0x7e4] ss:$16 sps:$4 sm:$0xff]   ;;  %v5007_v55 = vld [vmem:[%s7520_s1 + $0x7e0] ss:$16 sps:$4 sm:$0xff]  }
  0x34   :  { %3300 = vmatpush2.bf16.msra.mxu1 %v4937_v61  ;;  %3260 = vmatprep.subr.bf16.mxu0 %v4938_v62  ;;  %v5012_v56 = vld [vmem:[%s7520_s1 + $0x5c4] ss:$16 sps:$4 sm:$0xff]   ;;  %v5010_v58 = vld [vmem:[%s7520_s1 + $0x5c0] ss:$16 sps:$4 sm:$0xff]  }
  0x35   :  { %3301 = vmatprep.subr.bf16.mxu1 %v4940_v63  ;;  %v5015_v57 = vld [vmem:[%s7520_s1 + $0x7c4] ss:$16 sps:$4 sm:$0xff]   ;;  %v5013_v59 = vld [vmem:[%s7520_s1 + $0x7c0] ss:$16 sps:$4 sm:$0xff]  }
  0x36   :  { %v5018_v61 = vld [vmem:[%s7520_s1 + $0x5a4] ss:$16 sps:$4 sm:$0xff]   ;;  %v5016_v63 = vld [vmem:[%s7520_s1 + $0x5a0] ss:$16 sps:$4 sm:$0xff]  }
  0x37   :  { %3261 = vmatpush2.bf16.msra.mxu0 %v4942_v2  ;;  %v5021_v62 = vld [vmem:[%s7520_s1 + $0x7a4] ss:$16 sps:$4 sm:$0xff]   ;;  %v5019_v1 = vld [vmem:[%s7520_s1 + $0x7a0] ss:$16 sps:$4 sm:$0xff]  }
  0x38   :  { %3302 = vmatpush2.bf16.msra.mxu1 %v4943_v3  ;;  %3262 = vmatprep.subr.bf16.mxu0 %v4944_v4  ;;  %v5024_v2 = vld [vmem:[%s7520_s1 + $0x584] ss:$16 sps:$4 sm:$0xff]   ;;  %v5022_v4 = vld [vmem:[%s7520_s1 + $0x580] ss:$16 sps:$4 sm:$0xff]  }
  0x39   :  { %3303 = vmatprep.subr.bf16.mxu1 %v4946_v5  ;;  %v5027_v3 = vld [vmem:[%s7520_s1 + $0x784] ss:$16 sps:$4 sm:$0xff]   ;;  %v5025_v5 = vld [vmem:[%s7520_s1 + $0x780] ss:$16 sps:$4 sm:$0xff]  }
  0x3a   :  { %v5036_v11 = vld [vmem:[%s7520_s1 + $0x544] ss:$16 sps:$4 sm:$0xff]  }
  0x3b   :  { %3263 = vmatpush2.bf16.msra.mxu0 %v4948_v7  ;;  %v5030_v7 = vld [vmem:[%s7520_s1 + $0x564] ss:$16 sps:$4 sm:$0xff]  }
  0x3c   :  { %3304 = vmatpush2.bf16.msra.mxu1 %v4949_v8  ;;  %3264 = vmatprep.subr.bf16.mxu0 %v4950_v9  ;;  %v5033_v8 = vld [vmem:[%s7520_s1 + $0x764] ss:$16 sps:$4 sm:$0xff]   ;;  %v5028_v9 = vld [vmem:[%s7520_s1 + $0x560] ss:$16 sps:$4 sm:$0xff]  }
  0x3d   :  { %3305 = vmatprep.subr.bf16.mxu1 %v4952_v10  ;;  %v5031_v10 = vld [vmem:[%s7520_s1 + $0x760] ss:$16 sps:$4 sm:$0xff]  }
  0x3f   :  { %3265 = vmatpush2.bf16.msra.mxu0 %v4954_v12  ;;  %v5039_v12 = vld [vmem:[%s7520_s1 + $0x744] ss:$16 sps:$4 sm:$0xff]  }
  0x40   :  { %3306 = vmatpush2.bf16.msra.mxu1 %v4955_v14  ;;  %3316 = vmatprep.subr.bf16.mxu0 %v4958_v15  ;;  %v5034_v14 = vld [vmem:[%s7520_s1 + $0x540] ss:$16 sps:$4 sm:$0xff]  }
  0x41   :  { %3357 = vmatprep.subr.bf16.mxu1 %v4961_v16  ;;  %v5037_v15 = vld [vmem:[%s7520_s1 + $0x740] ss:$16 sps:$4 sm:$0xff]   ;;  %v5042_v16 = vld [vmem:[%s7520_s1 + $0x524] ss:$16 sps:$4 sm:$0xff]  }
  0x42   :  { %3267 = vmatmul.mubr.bf16.vlgmr.msra.gmra.mxu0 %v5934_v13 }
  0x43   :  { %3308 = vmatmul.mubr.bf16.vlgmr.msra.gmra.mxu1 %v5950_v18  ;;  %3317 = vmatpush1.bf16.msra.mxu0 %v4956_v19  ;;  %v5045_v19 = vld [vmem:[%s7520_s1 + $0x724] ss:$16 sps:$4 sm:$0xff]  }
  0x44   :  { %3358 = vmatpush1.bf16.msra.mxu1 %v4959_v20  ;;  %3318 = vmatprep.subr.bf16.mxu0 %v4964_v21  ;;  %v5040_v20 = vld [vmem:[%s7520_s1 + $0x520] ss:$16 sps:$4 sm:$0xff]  }
  0x45   :  { %3359 = vmatprep.subr.bf16.mxu1 %v4967_v22  ;;  %3348 = vmatprep.mubr.bf16.mxu0 %v5946_v17  ;;  %v5043_v21 = vld [vmem:[%s7520_s1 + $0x720] ss:$16 sps:$4 sm:$0xff]   ;;  %v5048_v22 = vld [vmem:[%s7520_s1 + $0x504] ss:$16 sps:$4 sm:$0xff]  }
  0x46   :  { %3389 = vmatprep.mubr.bf16.mxu1 %v5966_v23 }
  0x47   :  { %3319 = vmatpush1.bf16.msra.mxu0 %v4962_v24  ;;  %v5051_v24 = vld [vmem:[%s7520_s1 + $0x704] ss:$16 sps:$4 sm:$0xff]  }
  0x48   :  { %3360 = vmatpush1.bf16.msra.mxu1 %v4965_v25  ;;  %3320 = vmatprep.subr.bf16.mxu0 %v4970_v26  ;;  %v5046_v25 = vld [vmem:[%s7520_s1 + $0x500] ss:$16 sps:$4 sm:$0xff]   ;;  %v6145_v26 = vrot.slane %v5914_v6, %v5856_v49 }
  0x49   :  { %3361 = vmatprep.subr.bf16.mxu1 %v4973_v27  ;;  %v5049_v27 = vld [vmem:[%s7520_s1 + $0x700] ss:$16 sps:$4 sm:$0xff]  }
  0x4a   :  { %v6158_v6 = vcombine.high %v6145_v26, %v6145_v26 }
  0x4b   :  { %3321 = vmatpush1.bf16.msra.mxu0 %v4968_v28  ;;  %v5055_v28 = vld [vmem:[%s7520_s1 + $0x8e4] ss:$16 sps:$4 sm:$0xff]  }
  0x4c   :  { %3362 = vmatpush1.bf16.msra.mxu1 %v4971_v29  ;;  %3322 = vmatprep.subr.bf16.mxu0 %v4976_v30  ;;  %v5058_v29 = vld [vmem:[%s7520_s1 + $0xae4] ss:$16 sps:$4 sm:$0xff]   ;;  %v5053_v30 = vld [vmem:[%s7520_s1 + $0x8e0] ss:$16 sps:$4 sm:$0xff]  }
  0x4d   :  { %3363 = vmatprep.subr.bf16.mxu1 %v4979_v31  ;;  %v5056_v31 = vld [vmem:[%s7520_s1 + $0xae0] ss:$16 sps:$4 sm:$0xff]  }
  0x4f   :  { %3323 = vmatpush1.bf16.msra.mxu0 %v4974_v32  ;;  %v6169_v32 = vld [vmem:[%s7519_s0 + $0x8] sm:$0xff] }
  0x50   :  { %3364 = vmatpush1.bf16.msra.mxu1 %v4977_v33  ;;  %3324 = vmatprep.subr.bf16.mxu0 %v4982_v34  ;;  %v5061_v33 = vld [vmem:[%s7520_s1 + $0x8c4] ss:$16 sps:$4 sm:$0xff]  }
  0x51   :  { %3365 = vmatprep.subr.bf16.mxu1 %v4985_v35  ;;  %v5064_v34 = vld [vmem:[%s7520_s1 + $0xac4] ss:$16 sps:$4 sm:$0xff]   ;;  %v6179_v35 = vrot.slane %v6169_v32, %v5856_v49 }
  0x53   :  { %3325 = vmatpush1.bf16.msra.mxu0 %v4980_v36  ;;  %v624_v36 = vcombine.high %v6179_v35, %v6179_v35 }
  0x54   :  { %3366 = vmatpush1.bf16.msra.mxu1 %v4983_v37  ;;  %3326 = vmatprep.subr.bf16.mxu0 %v4988_v38  ;;  %v5059_v37 = vld [vmem:[%s7520_s1 + $0x8c0] ss:$16 sps:$4 sm:$0xff]  }
  0x55   :  { %3367 = vmatprep.subr.bf16.mxu1 %v4991_v39  ;;  %v5062_v38 = vld [vmem:[%s7520_s1 + $0xac0] ss:$16 sps:$4 sm:$0xff]   ;;  %v5067_v39 = vld [vmem:[%s7520_s1 + $0x8a4] ss:$16 sps:$4 sm:$0xff]  }
  0x57   :  { %3327 = vmatpush1.bf16.msra.mxu0 %v4986_v40  ;;  %v5070_v40 = vld [vmem:[%s7520_s1 + $0xaa4] ss:$16 sps:$4 sm:$0xff]  }
  0x58   :  { %3368 = vmatpush1.bf16.msra.mxu1 %v4989_v41  ;;  %3328 = vmatprep.subr.bf16.mxu0 %v4994_v43  ;;  %v6198_v41 = vrot.slane %v624_v36, %v5856_v49  ;;  %v5131_v36 = vld [vmem:[%s7520_s1 + $0x940] ss:$16 sps:$4 sm:$0xff]  }
  0x59   :  { %3369 = vmatprep.subr.bf16.mxu1 %v4997_v44  ;;  %v5065_v44 = vld [vmem:[%s7520_s1 + $0x8a0] ss:$16 sps:$4 sm:$0xff]  }
  0x5a   :  { %v6203_v43 = vcombine.high %v6198_v41, %v6198_v41 }
  0x5b   :  { %3329 = vmatpush1.bf16.msra.mxu0 %v4992_v45  ;;  %v5068_v45 = vld [vmem:[%s7520_s1 + $0xaa0] ss:$16 sps:$4 sm:$0xff]  }
  0x5c   :  { %3370 = vmatpush1.bf16.msra.mxu1 %v4995_v46  ;;  %3330 = vmatprep.subr.bf16.mxu0 %v5000_v47  ;;  %v5073_v46 = vld [vmem:[%s7520_s1 + $0x884] ss:$16 sps:$4 sm:$0xff]  }
  0x5d   :  { %3371 = vmatprep.subr.bf16.mxu1 %v5003_v48  ;;  %v5076_v47 = vld [vmem:[%s7520_s1 + $0xa84] ss:$16 sps:$4 sm:$0xff]   ;;  %v5071_v48 = vld [vmem:[%s7520_s1 + $0x880] ss:$16 sps:$4 sm:$0xff]  }
  0x5f   :  { %3331 = vmatpush1.bf16.msra.mxu0 %v4998_v50  ;;  %v5074_v50 = vld [vmem:[%s7520_s1 + $0xa80] ss:$16 sps:$4 sm:$0xff]  }
  0x60   :  { %3372 = vmatpush1.bf16.msra.mxu1 %v5001_v51  ;;  %3332 = vmatprep.subr.bf16.mxu0 %v5006_v52  ;;  %v5079_v51 = vld [vmem:[%s7520_s1 + $0x864] ss:$16 sps:$4 sm:$0xff]  }
  0x61   :  { %3373 = vmatprep.subr.bf16.mxu1 %v5009_v53  ;;  %v5082_v52 = vld [vmem:[%s7520_s1 + $0xa64] ss:$16 sps:$4 sm:$0xff]   ;;  %v5077_v53 = vld [vmem:[%s7520_s1 + $0x860] ss:$16 sps:$4 sm:$0xff]  }
  0x63   :  { %3333 = vmatpush2.bf16.msra.mxu0 %v5004_v54  ;;  %v5080_v54 = vld [vmem:[%s7520_s1 + $0xa60] ss:$16 sps:$4 sm:$0xff]  }
  0x64   :  { %3374 = vmatpush2.bf16.msra.mxu1 %v5007_v55  ;;  %3334 = vmatprep.subr.bf16.mxu0 %v5012_v56  ;;  %v5085_v55 = vld [vmem:[%s7520_s1 + $0x844] ss:$16 sps:$4 sm:$0xff]  }
  0x65   :  { %3375 = vmatprep.subr.bf16.mxu1 %v5015_v57  ;;  %v5088_v56 = vld [vmem:[%s7520_s1 + $0xa44] ss:$16 sps:$4 sm:$0xff]   ;;  %v5083_v57 = vld [vmem:[%s7520_s1 + $0x840] ss:$16 sps:$4 sm:$0xff]  }
  0x67   :  { %3335 = vmatpush2.bf16.msra.mxu0 %v5010_v58  ;;  %v5086_v58 = vld [vmem:[%s7520_s1 + $0xa40] ss:$16 sps:$4 sm:$0xff]  }
  0x68   :  { %3376 = vmatpush2.bf16.msra.mxu1 %v5013_v59  ;;  %3336 = vmatprep.subr.bf16.mxu0 %v5018_v61  ;;  %v5091_v59 = vld [vmem:[%s7520_s1 + $0x824] ss:$16 sps:$4 sm:$0xff]  }
  0x69   :  { %3377 = vmatprep.subr.bf16.mxu1 %v5021_v62  ;;  %v5094_v61 = vld [vmem:[%s7520_s1 + $0xa24] ss:$16 sps:$4 sm:$0xff]   ;;  %v5089_v62 = vld [vmem:[%s7520_s1 + $0x820] ss:$16 sps:$4 sm:$0xff]  }
  0x6b   :  { %3337 = vmatpush2.bf16.msra.mxu0 %v5016_v63  ;;  %v5092_v63 = vld [vmem:[%s7520_s1 + $0xa20] ss:$16 sps:$4 sm:$0xff]  }
  0x6c   :  { %3378 = vmatpush2.bf16.msra.mxu1 %v5019_v1  ;;  %3338 = vmatprep.subr.bf16.mxu0 %v5024_v2  ;;  %v5097_v1 = vld [vmem:[%s7520_s1 + $0x804] ss:$16 sps:$4 sm:$0xff]  }
  0x6d   :  { %3379 = vmatprep.subr.bf16.mxu1 %v5027_v3  ;;  %v5100_v2 = vld [vmem:[%s7520_s1 + $0xa04] ss:$16 sps:$4 sm:$0xff]   ;;  %v5095_v3 = vld [vmem:[%s7520_s1 + $0x800] ss:$16 sps:$4 sm:$0xff]  }
  0x6f   :  { %3339 = vmatpush2.bf16.msra.mxu0 %v5022_v4  ;;  %v5098_v4 = vld [vmem:[%s7520_s1 + $0xa00] ss:$16 sps:$4 sm:$0xff]  }
  0x70   :  { %3380 = vmatpush2.bf16.msra.mxu1 %v5025_v5  ;;  %3340 = vmatprep.subr.bf16.mxu0 %v5030_v7  ;;  %v5103_v5 = vld [vmem:[%s7520_s1 + $0x9e4] ss:$16 sps:$4 sm:$0xff]  }
  0x71   :  { %3381 = vmatprep.subr.bf16.mxu1 %v5033_v8  ;;  %v5106_v7 = vld [vmem:[%s7520_s1 + $0xbe4] ss:$16 sps:$4 sm:$0xff]   ;;  %v5101_v8 = vld [vmem:[%s7520_s1 + $0x9e0] ss:$16 sps:$4 sm:$0xff]  }
  0x73   :  { %3341 = vmatpush2.bf16.msra.mxu0 %v5028_v9  ;;  %v5104_v9 = vld [vmem:[%s7520_s1 + $0xbe0] ss:$16 sps:$4 sm:$0xff]  }
  0x74   :  { %3382 = vmatpush2.bf16.msra.mxu1 %v5031_v10  ;;  %3342 = vmatprep.subr.bf16.mxu0 %v5036_v11  ;;  %v5109_v10 = vld [vmem:[%s7520_s1 + $0x9c4] ss:$16 sps:$4 sm:$0xff]  }
  0x75   :  { %3383 = vmatprep.subr.bf16.mxu1 %v5039_v12  ;;  %v5112_v11 = vld [vmem:[%s7520_s1 + $0xbc4] ss:$16 sps:$4 sm:$0xff]   ;;  %v5107_v12 = vld [vmem:[%s7520_s1 + $0x9c0] ss:$16 sps:$4 sm:$0xff]  }
  0x77   :  { %3343 = vmatpush2.bf16.msra.mxu0 %v5034_v14  ;;  %v5110_v14 = vld [vmem:[%s7520_s1 + $0xbc0] ss:$16 sps:$4 sm:$0xff]  }
  0x78   :  { %3384 = vmatpush2.bf16.msra.mxu1 %v5037_v15  ;;  %3344 = vmatprep.subr.bf16.mxu0 %v5042_v16  ;;  %v5115_v15 = vld [vmem:[%s7520_s1 + $0x9a4] ss:$16 sps:$4 sm:$0xff]  }
  0x79   :  { %3385 = vmatprep.subr.bf16.mxu1 %v5045_v19  ;;  %v5118_v16 = vld [vmem:[%s7520_s1 + $0xba4] ss:$16 sps:$4 sm:$0xff]   ;;  %v5113_v19 = vld [vmem:[%s7520_s1 + $0x9a0] ss:$16 sps:$4 sm:$0xff]  }
  0x7b   :  { %3345 = vmatpush2.bf16.msra.mxu0 %v5040_v20  ;;  %v5116_v20 = vld [vmem:[%s7520_s1 + $0xba0] ss:$16 sps:$4 sm:$0xff]  }
  0x7c   :  { %3386 = vmatpush2.bf16.msra.mxu1 %v5043_v21  ;;  %3346 = vmatprep.subr.bf16.mxu0 %v5048_v22  ;;  %v5121_v21 = vld [vmem:[%s7520_s1 + $0x984] ss:$16 sps:$4 sm:$0xff]  }
  0x7d   :  { %3387 = vmatprep.subr.bf16.mxu1 %v5051_v24  ;;  %v5124_v22 = vld [vmem:[%s7520_s1 + $0xb84] ss:$16 sps:$4 sm:$0xff]   ;;  %v5119_v24 = vld [vmem:[%s7520_s1 + $0x980] ss:$16 sps:$4 sm:$0xff]  }
  0x7f   :  { %3347 = vmatpush2.bf16.msra.mxu0 %v5046_v25  ;;  %v5122_v25 = vld [vmem:[%s7520_s1 + $0xb80] ss:$16 sps:$4 sm:$0xff]  }
  0x80   :  { %3388 = vmatpush2.bf16.msra.mxu1 %v5049_v27  ;;  %3398 = vmatprep.subr.bf16.mxu0 %v5055_v28  ;;  %v5127_v27 = vld [vmem:[%s7520_s1 + $0x964] ss:$16 sps:$4 sm:$0xff]  }
  0x81   :  { %3439 = vmatprep.subr.bf16.mxu1 %v5058_v29  ;;  %v5130_v28 = vld [vmem:[%s7520_s1 + $0xb64] ss:$16 sps:$4 sm:$0xff]   ;;  %v5125_v29 = vld [vmem:[%s7520_s1 + $0x960] ss:$16 sps:$4 sm:$0xff]  }
  0x82   :  { %3349 = vmatmul.mubr.bf16.vlgmr.msra.gmra.mxu0 %v6145_v26 }
  0x83   :  { %3390 = vmatmul.mubr.bf16.vlgmr.msra.gmra.mxu1 %v6158_v6  ;;  %3399 = vmatpush1.bf16.msra.mxu0 %v5053_v30  ;;  %v5128_v30 = vld [vmem:[%s7520_s1 + $0xb60] ss:$16 sps:$4 sm:$0xff]  }
  0x84   :  { %3440 = vmatpush1.bf16.msra.mxu1 %v5056_v31  ;;  %3400 = vmatprep.subr.bf16.mxu0 %v5061_v33  ;;  %v5133_v31 = vld [vmem:[%s7520_s1 + $0x944] ss:$16 sps:$4 sm:$0xff]  }
  0x85   :  { %3441 = vmatprep.subr.bf16.mxu1 %v5064_v34  ;;  %3430 = vmatprep.mubr.bf16.mxu0 %v6198_v41  ;;  %v5136_v33 = vld [vmem:[%s7520_s1 + $0xb44] ss:$16 sps:$4 sm:$0xff]   ;;  %v609_v34 = vcombine.high %v6169_v32, %v6169_v32 }
  0x86   :  { %3471 = vmatprep.mubr.bf16.mxu1 %v6203_v43  ;;  %v5142_v32 = vld [vmem:[%s7520_s1 + $0xb24] ss:$16 sps:$4 sm:$0xff]  }
  0x87   :  { %3401 = vmatpush1.bf16.msra.mxu0 %v5059_v37  ;;  %v5134_v37 = vld [vmem:[%s7520_s1 + $0xb40] ss:$16 sps:$4 sm:$0xff]  }
  0x88   :  { %3442 = vmatpush1.bf16.msra.mxu1 %v5062_v38  ;;  %3402 = vmatprep.subr.bf16.mxu0 %v5067_v39  ;;  %v5139_v38 = vld [vmem:[%s7520_s1 + $0x924] ss:$16 sps:$4 sm:$0xff]   ;;  %v6353_v39 = vrot.slane %v609_v34, %v5856_v49  ;;  %v5200_v34 = vld [vmem:[%s7520_s1 + $0xfe0] ss:$16 sps:$4 sm:$0xff]  }
  0x89   :  { %3443 = vmatprep.subr.bf16.mxu1 %v5070_v40  ;;  %v5137_v40 = vld [vmem:[%s7520_s1 + $0x920] ss:$16 sps:$4 sm:$0xff]  }
  0x8b   :  { %3403 = vmatpush1.bf16.msra.mxu0 %v5065_v44  ;;  %v5140_v44 = vld [vmem:[%s7520_s1 + $0xb20] ss:$16 sps:$4 sm:$0xff]  }
  0x8c   :  { %3444 = vmatpush1.bf16.msra.mxu1 %v5068_v45  ;;  %3404 = vmatprep.subr.bf16.mxu0 %v5073_v46  ;;  %v5145_v45 = vld [vmem:[%s7520_s1 + $0x904] ss:$16 sps:$4 sm:$0xff]  }
  0x8d   :  { %3445 = vmatprep.subr.bf16.mxu1 %v5076_v47  ;;  %v5148_v46 = vld [vmem:[%s7520_s1 + $0xb04] ss:$16 sps:$4 sm:$0xff]   ;;  %v625_v47 = vcombine.high %v6353_v39, %v6353_v39 }
  0x8f   :  { %3405 = vmatpush1.bf16.msra.mxu0 %v5071_v48  ;;  %v5143_v48 = vld [vmem:[%s7520_s1 + $0x900] ss:$16 sps:$4 sm:$0xff]  }
  0x90   :  { %3446 = vmatpush1.bf16.msra.mxu1 %v5074_v50  ;;  %3406 = vmatprep.subr.bf16.mxu0 %v5079_v51  ;;  %v6374_v50 = vrot.slane %v6179_v35, %v5856_v49  ;;  %v5146_v51 = vld [vmem:[%s7520_s1 + $0xb00] ss:$16 sps:$4 sm:$0xff]  }
  0x91   :  { %3447 = vmatprep.subr.bf16.mxu1 %v5082_v52  ;;  %v5151_v52 = vld [vmem:[%s7520_s1 + $0xce4] ss:$16 sps:$4 sm:$0xff]  }
  0x92   :  { %v6390_v35 = vcombine.high %v6374_v50, %v6374_v50 }
  0x93   :  { %3407 = vmatpush1.bf16.msra.mxu0 %v5077_v53  ;;  %v5154_v53 = vld [vmem:[%s7520_s1 + $0xee4] ss:$16 sps:$4 sm:$0xff]  }
  0x94   :  { %3448 = vmatpush1.bf16.msra.mxu1 %v5080_v54  ;;  %3408 = vmatprep.subr.bf16.mxu0 %v5085_v55  ;;  %v6386_v54 = vrot.slane %v625_v47, %v5856_v49  ;;  %v5149_v55 = vld [vmem:[%s7520_s1 + $0xce0] ss:$16 sps:$4 sm:$0xff]   ;;  %v5217_v47 = vld [vmem:[%s7520_s1 + $0xd84] ss:$16 sps:$4 sm:$0xff]  }
  0x95   :  { %3449 = vmatprep.subr.bf16.mxu1 %v5088_v56  ;;  %v5152_v56 = vld [vmem:[%s7520_s1 + $0xee0] ss:$16 sps:$4 sm:$0xff]  }
  0x97   :  { %3409 = vmatpush1.bf16.msra.mxu0 %v5083_v57  ;;  %v5157_v57 = vld [vmem:[%s7520_s1 + $0xcc4] ss:$16 sps:$4 sm:$0xff]  }
  0x98   :  { %3450 = vmatpush1.bf16.msra.mxu1 %v5086_v58  ;;  %3410 = vmatprep.subr.bf16.mxu0 %v5091_v59  ;;  %v5160_v58 = vld [vmem:[%s7520_s1 + $0xec4] ss:$16 sps:$4 sm:$0xff]   ;;  %v6406_v59 = vcombine.high %v6386_v54, %v6386_v54 }
  0x99   :  { %3451 = vmatprep.subr.bf16.mxu1 %v5094_v61  ;;  %v5155_v61 = vld [vmem:[%s7520_s1 + $0xcc0] ss:$16 sps:$4 sm:$0xff]  }
  0x9b   :  { %3411 = vmatpush1.bf16.msra.mxu0 %v5089_v62  ;;  %v5158_v62 = vld [vmem:[%s7520_s1 + $0xec0] ss:$16 sps:$4 sm:$0xff]  }
  0x9c   :  { %3452 = vmatpush1.bf16.msra.mxu1 %v5092_v63  ;;  %3412 = vmatprep.subr.bf16.mxu0 %v5097_v1  ;;  %v5163_v63 = vld [vmem:[%s7520_s1 + $0xca4] ss:$16 sps:$4 sm:$0xff]  }
  0x9d   :  { %3453 = vmatprep.subr.bf16.mxu1 %v5100_v2  ;;  %v5166_v1 = vld [vmem:[%s7520_s1 + $0xea4] ss:$16 sps:$4 sm:$0xff]   ;;  %v5161_v2 = vld [vmem:[%s7520_s1 + $0xca0] ss:$16 sps:$4 sm:$0xff]  }
  0x9f   :  { %3413 = vmatpush1.bf16.msra.mxu0 %v5095_v3  ;;  %v5164_v3 = vld [vmem:[%s7520_s1 + $0xea0] ss:$16 sps:$4 sm:$0xff]  }
  0xa0   :  { %3454 = vmatpush1.bf16.msra.mxu1 %v5098_v4  ;;  %3414 = vmatprep.subr.bf16.mxu0 %v5103_v5  ;;  %v5169_v4 = vld [vmem:[%s7520_s1 + $0xc84] ss:$16 sps:$4 sm:$0xff]  }
  0xa1   :  { %3455 = vmatprep.subr.bf16.mxu1 %v5106_v7  ;;  %v5172_v5 = vld [vmem:[%s7520_s1 + $0xe84] ss:$16 sps:$4 sm:$0xff]   ;;  %v5167_v7 = vld [vmem:[%s7520_s1 + $0xc80] ss:$16 sps:$4 sm:$0xff]  }
  0xa3   :  { %3415 = vmatpush2.bf16.msra.mxu0 %v5101_v8  ;;  %v5170_v8 = vld [vmem:[%s7520_s1 + $0xe80] ss:$16 sps:$4 sm:$0xff]  }
  0xa4   :  { %3456 = vmatpush2.bf16.msra.mxu1 %v5104_v9  ;;  %3416 = vmatprep.subr.bf16.mxu0 %v5109_v10  ;;  %v5175_v9 = vld [vmem:[%s7520_s1 + $0xc64] ss:$16 sps:$4 sm:$0xff]  }
  0xa5   :  { %3457 = vmatprep.subr.bf16.mxu1 %v5112_v11  ;;  %v5178_v10 = vld [vmem:[%s7520_s1 + $0xe64] ss:$16 sps:$4 sm:$0xff]   ;;  %v5173_v11 = vld [vmem:[%s7520_s1 + $0xc60] ss:$16 sps:$4 sm:$0xff]  }
  0xa7   :  { %3417 = vmatpush2.bf16.msra.mxu0 %v5107_v12  ;;  %v5176_v12 = vld [vmem:[%s7520_s1 + $0xe60] ss:$16 sps:$4 sm:$0xff]  }
  0xa8   :  { %3458 = vmatpush2.bf16.msra.mxu1 %v5110_v14  ;;  %3418 = vmatprep.subr.bf16.mxu0 %v5115_v15  ;;  %v5181_v14 = vld [vmem:[%s7520_s1 + $0xc44] ss:$16 sps:$4 sm:$0xff]  }
  0xa9   :  { %3459 = vmatprep.subr.bf16.mxu1 %v5118_v16  ;;  %v5184_v15 = vld [vmem:[%s7520_s1 + $0xe44] ss:$16 sps:$4 sm:$0xff]   ;;  %v5179_v16 = vld [vmem:[%s7520_s1 + $0xc40] ss:$16 sps:$4 sm:$0xff]  }
  0xab   :  { %3419 = vmatpush2.bf16.msra.mxu0 %v5113_v19  ;;  %v5182_v19 = vld [vmem:[%s7520_s1 + $0xe40] ss:$16 sps:$4 sm:$0xff]  }
  0xac   :  { %3460 = vmatpush2.bf16.msra.mxu1 %v5116_v20  ;;  %3420 = vmatprep.subr.bf16.mxu0 %v5121_v21  ;;  %v5187_v20 = vld [vmem:[%s7520_s1 + $0xc24] ss:$16 sps:$4 sm:$0xff]  }
  0xad   :  { %3461 = vmatprep.subr.bf16.mxu1 %v5124_v22  ;;  %v5190_v21 = vld [vmem:[%s7520_s1 + $0xe24] ss:$16 sps:$4 sm:$0xff]   ;;  %v5185_v22 = vld [vmem:[%s7520_s1 + $0xc20] ss:$16 sps:$4 sm:$0xff]  }
  0xaf   :  { %3421 = vmatpush2.bf16.msra.mxu0 %v5119_v24  ;;  %v5188_v24 = vld [vmem:[%s7520_s1 + $0xe20] ss:$16 sps:$4 sm:$0xff]  }
  0xb0   :  { %3462 = vmatpush2.bf16.msra.mxu1 %v5122_v25  ;;  %3422 = vmatprep.subr.bf16.mxu0 %v5127_v27  ;;  %v5193_v25 = vld [vmem:[%s7520_s1 + $0xc04] ss:$16 sps:$4 sm:$0xff]  }
  0xb1   :  { %3463 = vmatprep.subr.bf16.mxu1 %v5130_v28  ;;  %v5196_v27 = vld [vmem:[%s7520_s1 + $0xe04] ss:$16 sps:$4 sm:$0xff]   ;;  %v5191_v28 = vld [vmem:[%s7520_s1 + $0xc00] ss:$16 sps:$4 sm:$0xff]  }
  0xb3   :  { %3423 = vmatpush2.bf16.msra.mxu0 %v5125_v29  ;;  %v5194_v29 = vld [vmem:[%s7520_s1 + $0xe00] ss:$16 sps:$4 sm:$0xff]  }
  0xb4   :  { %3464 = vmatpush2.bf16.msra.mxu1 %v5128_v30  ;;  %3424 = vmatprep.subr.bf16.mxu0 %v5133_v31  ;;  %v5199_v30 = vld [vmem:[%s7520_s1 + $0xde4] ss:$16 sps:$4 sm:$0xff]  }
  0xb5   :  { %3465 = vmatprep.subr.bf16.mxu1 %v5136_v33  ;;  %v5202_v31 = vld [vmem:[%s7520_s1 + $0xfe4] ss:$16 sps:$4 sm:$0xff]   ;;  %v5197_v33 = vld [vmem:[%s7520_s1 + $0xde0] ss:$16 sps:$4 sm:$0xff]  }
  0xb7   :  { %3425 = vmatpush2.bf16.msra.mxu0 %v5131_v36  ;;  %v5205_v36 = vld [vmem:[%s7520_s1 + $0xdc4] ss:$16 sps:$4 sm:$0xff]  }
  0xb8   :  { %3466 = vmatpush2.bf16.msra.mxu1 %v5134_v37  ;;  %3426 = vmatprep.subr.bf16.mxu0 %v5139_v38  ;;  %v5208_v37 = vld [vmem:[%s7520_s1 + $0xfc4] ss:$16 sps:$4 sm:$0xff]   ;;  %v5203_v38 = vld [vmem:[%s7520_s1 + $0xdc0] ss:$16 sps:$4 sm:$0xff]  }
  0xb9   :  { %3467 = vmatprep.subr.bf16.mxu1 %v5142_v32  ;;  %v5206_v32 = vld [vmem:[%s7520_s1 + $0xfc0] ss:$16 sps:$4 sm:$0xff]  }
  0xbb   :  { %3427 = vmatpush2.bf16.msra.mxu0 %v5137_v40  ;;  %v5211_v40 = vld [vmem:[%s7520_s1 + $0xda4] ss:$16 sps:$4 sm:$0xff]  }
  0xbc   :  { %3468 = vmatpush2.bf16.msra.mxu1 %v5140_v44  ;;  %3428 = vmatprep.subr.bf16.mxu0 %v5145_v45  ;;  %v5214_v44 = vld [vmem:[%s7520_s1 + $0xfa4] ss:$16 sps:$4 sm:$0xff]   ;;  %v5209_v45 = vld [vmem:[%s7520_s1 + $0xda0] ss:$16 sps:$4 sm:$0xff]  }
  0xbd   :  { %3469 = vmatprep.subr.bf16.mxu1 %v5148_v46  ;;  %v5212_v46 = vld [vmem:[%s7520_s1 + $0xfa0] ss:$16 sps:$4 sm:$0xff]  }
  0xbf   :  { %3429 = vmatpush2.bf16.msra.mxu0 %v5143_v48  ;;  %v5220_v48 = vld [vmem:[%s7520_s1 + $0xf84] ss:$16 sps:$4 sm:$0xff]  }
  0xc0   :  { %3470 = vmatpush2.bf16.msra.mxu1 %v5146_v51  ;;  %3480 = vmatprep.subr.bf16.mxu0 %v5151_v52  ;;  %v5215_v51 = vld [vmem:[%s7520_s1 + $0xd80] ss:$16 sps:$4 sm:$0xff]  }
  0xc1   :  { %3521 = vmatprep.subr.bf16.mxu1 %v5154_v53  ;;  %v5218_v52 = vld [vmem:[%s7520_s1 + $0xf80] ss:$16 sps:$4 sm:$0xff]   ;;  %v5223_v53 = vld [vmem:[%s7520_s1 + $0xd64] ss:$16 sps:$4 sm:$0xff]  }
  0xc2   :  { %3431 = vmatmul.mubr.bf16.vlgmr.msra.gmra.mxu0 %v6374_v50 }
  0xc3   :  { %3472 = vmatmul.mubr.bf16.vlgmr.msra.gmra.mxu1 %v6390_v35  ;;  %3481 = vmatpush1.bf16.msra.mxu0 %v5149_v55  ;;  %v5226_v55 = vld [vmem:[%s7520_s1 + $0xf64] ss:$16 sps:$4 sm:$0xff]  }
  0xc4   :  { %3522 = vmatpush1.bf16.msra.mxu1 %v5152_v56  ;;  %3482 = vmatprep.subr.bf16.mxu0 %v5157_v57  ;;  %v5221_v56 = vld [vmem:[%s7520_s1 + $0xd60] ss:$16 sps:$4 sm:$0xff]  }
  0xc5   :  { %3523 = vmatprep.subr.bf16.mxu1 %v5160_v58  ;;  %3512 = vmatprep.mubr.bf16.mxu0 %v6386_v54  ;;  %v5224_v57 = vld [vmem:[%s7520_s1 + $0xf60] ss:$16 sps:$4 sm:$0xff]   ;;  %v5229_v58 = vld [vmem:[%s7520_s1 + $0xd44] ss:$16 sps:$4 sm:$0xff]  }
  0xc6   :  { %3553 = vmatprep.mubr.bf16.mxu1 %v6406_v59 }
  0xc7   :  { %3483 = vmatpush1.bf16.msra.mxu0 %v5155_v61  ;;  %v5232_v61 = vld [vmem:[%s7520_s1 + $0xf44] ss:$16 sps:$4 sm:$0xff]  }
  0xc8   :  { %3524 = vmatpush1.bf16.msra.mxu1 %v5158_v62  ;;  %3484 = vmatprep.subr.bf16.mxu0 %v5163_v63  ;;  %v5227_v62 = vld [vmem:[%s7520_s1 + $0xd40] ss:$16 sps:$4 sm:$0xff]  }
  0xc9   :  { %3525 = vmatprep.subr.bf16.mxu1 %v5166_v1  ;;  %v5230_v63 = vld [vmem:[%s7520_s1 + $0xf40] ss:$16 sps:$4 sm:$0xff]   ;;  %v5235_v1 = vld [vmem:[%s7520_s1 + $0xd24] ss:$16 sps:$4 sm:$0xff]  }
  0xcb   :  { %3485 = vmatpush1.bf16.msra.mxu0 %v5161_v2  ;;  %v5238_v2 = vld [vmem:[%s7520_s1 + $0xf24] ss:$16 sps:$4 sm:$0xff]  }
  0xcc   :  { %3526 = vmatpush1.bf16.msra.mxu1 %v5164_v3  ;;  %3486 = vmatprep.subr.bf16.mxu0 %v5169_v4  ;;  %v5233_v3 = vld [vmem:[%s7520_s1 + $0xd20] ss:$16 sps:$4 sm:$0xff]  }
  0xcd   :  { %3527 = vmatprep.subr.bf16.mxu1 %v5172_v5  ;;  %v5236_v4 = vld [vmem:[%s7520_s1 + $0xf20] ss:$16 sps:$4 sm:$0xff]   ;;  %v5241_v5 = vld [vmem:[%s7520_s1 + $0xd04] ss:$16 sps:$4 sm:$0xff]  }
  0xcf   :  { %3487 = vmatpush1.bf16.msra.mxu0 %v5167_v7  ;;  %v5244_v7 = vld [vmem:[%s7520_s1 + $0xf04] ss:$16 sps:$4 sm:$0xff]  }
  0xd0   :  { %3528 = vmatpush1.bf16.msra.mxu1 %v5170_v8  ;;  %3488 = vmatprep.subr.bf16.mxu0 %v5175_v9  ;;  %v5239_v8 = vld [vmem:[%s7520_s1 + $0xd00] ss:$16 sps:$4 sm:$0xff]  }
  0xd1   :  { %3529 = vmatprep.subr.bf16.mxu1 %v5178_v10  ;;  %v5242_v9 = vld [vmem:[%s7520_s1 + $0xf00] ss:$16 sps:$4 sm:$0xff]   ;;  %v6588_v10 = vrot.slane %v6353_v39, %v5856_v49  ;;  %v544_v49 = vsub.s32 1, %v5838_v42 }
  0xd3   :  { %3489 = vmatpush1.bf16.msra.mxu0 %v5173_v11  ;;  %v536_v11 = vld [vmem:[%s7521_s2] sm:$0xf]  ;;  %v6603_v39 = vcombine.high %v6588_v10, %v6588_v10 }
  0xd4   :  { %3530 = vmatpush1.bf16.msra.mxu1 %v5176_v12  ;;  %3490 = vmatprep.subr.bf16.mxu0 %v5181_v14  ;;  %v540_v12 = vsub.s32 0, %v5838_v42  ;;  %v5248_v14 = vld [vmem:[%s7520_s1 + $0xec] ss:$16 sps:$4 sm:$0xff]  }
  0xd5   :  { %3531 = vmatprep.subr.bf16.mxu1 %v5184_v15  ;;  %v5251_v15 = vld [vmem:[%s7520_s1 + $0x2ec] ss:$16 sps:$4 sm:$0xff]  }
  0xd7   :  { %3491 = vmatpush1.bf16.msra.mxu0 %v5179_v16  ;;  %v5246_v16 = vld [vmem:[%s7520_s1 + $0xe8] ss:$16 sps:$4 sm:$0xff]  }
  0xd8   :  { %3532 = vmatpush1.bf16.msra.mxu1 %v5182_v19  ;;  %3492 = vmatprep.subr.bf16.mxu0 %v5187_v20  ;;  %v541_v19 = vrot.slane %v536_v11, %v540_v12  ;;  %v5249_v20 = vld [vmem:[%s7520_s1 + $0x2e8] ss:$16 sps:$4 sm:$0xff]   ;;  %v5299_v12 = vld [vmem:[%s7520_s1 + $0x3ec] ss:$16 sps:$4 sm:$0xff]  }
  0xd9   :  { %3533 = vmatprep.subr.bf16.mxu1 %v5190_v21  ;;  %v5254_v21 = vld [vmem:[%s7520_s1 + $0xcc] ss:$16 sps:$4 sm:$0xff]  }
  0xdb   :  { %3493 = vmatpush1.bf16.msra.mxu0 %v5185_v22  ;;  %v5257_v22 = vld [vmem:[%s7520_s1 + $0x2cc] ss:$16 sps:$4 sm:$0xff]  }
  0xdc   :  { %3534 = vmatpush1.bf16.msra.mxu1 %v5188_v24  ;;  %3494 = vmatprep.subr.bf16.mxu0 %v5193_v25  ;;  %v545_v24 = vrot.slane %v536_v11, %v544_v49  ;;  %v5296_v11 = vld [vmem:[%s7520_s1 + $0x1ec] ss:$16 sps:$4 sm:$0xff]  }
  0xdd   :  { %3535 = vmatprep.subr.bf16.mxu1 %v5196_v27  ;;  %v5302_v49 = vld [vmem:[%s7520_s1 + $0x1cc] ss:$16 sps:$4 sm:$0xff]  }
  0xdf   :  { %3495 = vmatpush1.bf16.msra.mxu0 %v5191_v28  ;;  %v5252_v28 = vld [vmem:[%s7520_s1 + $0xc8] ss:$16 sps:$4 sm:$0xff]  }
  0xe0   :  { %3536 = vmatpush1.bf16.msra.mxu1 %v5194_v29  ;;  %3496 = vmatprep.subr.bf16.mxu0 %v5199_v30  ;;  %v5255_v29 = vld [vmem:[%s7520_s1 + $0x2c8] ss:$16 sps:$4 sm:$0xff]  }
  0xe1   :  { %3537 = vmatprep.subr.bf16.mxu1 %v5202_v31 }
  0xe3   :  { %3497 = vmatpush2.bf16.msra.mxu0 %v5197_v33 }
  0xe4   :  { %3538 = vmatpush2.bf16.msra.mxu1 %v5200_v34  ;;  %3498 = vmatprep.subr.bf16.mxu0 %v5205_v36  ;;  %v5260_v34 = vld [vmem:[%s7520_s1 + $0xac] ss:$16 sps:$4 sm:$0xff]  }
  0xe5   :  { %3539 = vmatprep.subr.bf16.mxu1 %v5208_v37  ;;  %v5263_v36 = vld [vmem:[%s7520_s1 + $0x2ac] ss:$16 sps:$4 sm:$0xff]  }
  0xe7   :  { %3499 = vmatpush2.bf16.msra.mxu0 %v5203_v38 }
  0xe8   :  { %3540 = vmatpush2.bf16.msra.mxu1 %v5206_v32  ;;  %3500 = vmatprep.subr.bf16.mxu0 %v5211_v40  ;;  %v5258_v32 = vld [vmem:[%s7520_s1 + $0xa8] ss:$16 sps:$4 sm:$0xff]  }
  0xe9   :  { %3541 = vmatprep.subr.bf16.mxu1 %v5214_v44  ;;  %v5261_v40 = vld [vmem:[%s7520_s1 + $0x2a8] ss:$16 sps:$4 sm:$0xff]  }
  0xeb   :  { %3501 = vmatpush2.bf16.msra.mxu0 %v5209_v45 }
  0xec   :  { %3542 = vmatpush2.bf16.msra.mxu1 %v5212_v46  ;;  %3502 = vmatprep.subr.bf16.mxu0 %v5217_v47 }
  0xed   :  { %3543 = vmatprep.subr.bf16.mxu1 %v5220_v48 }
  0xef   :  { %3503 = vmatpush2.bf16.msra.mxu0 %v5215_v51  ;;  %v5266_v51 = vld [vmem:[%s7520_s1 + $0x8c] ss:$16 sps:$4 sm:$0xff]  }
  0xf0   :  { %3544 = vmatpush2.bf16.msra.mxu1 %v5218_v52  ;;  %3504 = vmatprep.subr.bf16.mxu0 %v5223_v53  ;;  %v5267_v52 = vld [vmem:[%s7520_s1 + $0x288] ss:$16 sps:$4 sm:$0xff]   ;;  %v5272_v53 = vld [vmem:[%s7520_s1 + $0x6c] ss:$16 sps:$4 sm:$0xff]  }
  0xf1   :  { %3545 = vmatprep.subr.bf16.mxu1 %v5226_v55  ;;  %v5275_v55 = vld [vmem:[%s7520_s1 + $0x26c] ss:$16 sps:$4 sm:$0xff]  }
  0xf3   :  { %3505 = vmatpush2.bf16.msra.mxu0 %v5221_v56  ;;  %v5270_v56 = vld [vmem:[%s7520_s1 + $0x68] ss:$16 sps:$4 sm:$0xff]  }
  0xf4   :  { %3546 = vmatpush2.bf16.msra.mxu1 %v5224_v57  ;;  %3506 = vmatprep.subr.bf16.mxu0 %v5229_v58  ;;  %v5273_v57 = vld [vmem:[%s7520_s1 + $0x268] ss:$16 sps:$4 sm:$0xff]   ;;  %v5278_v58 = vld [vmem:[%s7520_s1 + $0x4c] ss:$16 sps:$4 sm:$0xff]  }
  0xf5   :  { %3547 = vmatprep.subr.bf16.mxu1 %v5232_v61  ;;  %v5281_v61 = vld [vmem:[%s7520_s1 + $0x24c] ss:$16 sps:$4 sm:$0xff]  }
  0xf7   :  { %3507 = vmatpush2.bf16.msra.mxu0 %v5227_v62  ;;  %v5276_v62 = vld [vmem:[%s7520_s1 + $0x48] ss:$16 sps:$4 sm:$0xff]  }
  0xf8   :  { %3548 = vmatpush2.bf16.msra.mxu1 %v5230_v63  ;;  %3508 = vmatprep.subr.bf16.mxu0 %v5235_v1  ;;  %v5279_v63 = vld [vmem:[%s7520_s1 + $0x248] ss:$16 sps:$4 sm:$0xff]   ;;  %v5284_v1 = vld [vmem:[%s7520_s1 + $0x2c] ss:$16 sps:$4 sm:$0xff]  }
  0xf9   :  { %3549 = vmatprep.subr.bf16.mxu1 %v5238_v2  ;;  %v5287_v2 = vld [vmem:[%s7520_s1 + $0x22c] ss:$16 sps:$4 sm:$0xff]  }
  0xfb   :  { %3509 = vmatpush2.bf16.msra.mxu0 %v5233_v3  ;;  %v5282_v3 = vld [vmem:[%s7520_s1 + $0x28] ss:$16 sps:$4 sm:$0xff]  }
  0xfc   :  { %3550 = vmatpush2.bf16.msra.mxu1 %v5236_v4  ;;  %3510 = vmatprep.subr.bf16.mxu0 %v5241_v5  ;;  %v5285_v4 = vld [vmem:[%s7520_s1 + $0x228] ss:$16 sps:$4 sm:$0xff]   ;;  %v5290_v5 = vld [vmem:[%s7520_s1 + $0xc] ss:$16 sps:$4 sm:$0xff]  }
  0xfd   :  { %3551 = vmatprep.subr.bf16.mxu1 %v5244_v7  ;;  %v5293_v7 = vld [vmem:[%s7520_s1 + $0x20c] ss:$16 sps:$4 sm:$0xff]  }
  0xff   :  { %3511 = vmatpush2.bf16.msra.mxu0 %v5239_v8  ;;  %v5288_v8 = vld [vmem:[%s7520_s1 + $0x8] ss:$16 sps:$4 sm:$0xff]  }
 0x100   :  { %3552 = vmatpush2.bf16.msra.mxu1 %v5242_v9  ;;  %3562 = vmatprep.subr.bf16.mxu0 %v5248_v14  ;;  %v5291_v9 = vld [vmem:[%s7520_s1 + $0x208] ss:$16 sps:$4 sm:$0xff]  }
 0x101   :  { %3603 = vmatprep.subr.bf16.mxu1 %v5251_v15  ;;  %v5294_v14 = vld [vmem:[%s7520_s1 + $0x1e8] ss:$16 sps:$4 sm:$0xff]  }
 0x102   :  { %v3268_v25 = vpop.f32.mrf.mxu0  ;;  %3513 = vmatmul.mubr.bf16.vlgmr.msra.gmra.mxu0 %v6588_v10  ;;  %v5297_v15 = vld [vmem:[%s7520_s1 + $0x3e8] ss:$16 sps:$4 sm:$0xff]  }
 0x103   :  { %v3309_v27 = vpop.f32.mrf.mxu1  ;;  %3554 = vmatmul.mubr.bf16.vlgmr.msra.gmra.mxu1 %v6603_v39  ;;  %v3269_v30 = vadd.f32 %v3268_v25, %v541_v19  ;;  %3563 = vmatpush1.bf16.msra.mxu0 %v5246_v16  ;;  %v5305_v16 = vld [vmem:[%s7520_s1 + $0x3cc] ss:$16 sps:$4 sm:$0xff]   ;;  %v5300_v19 = vld [vmem:[%s7520_s1 + $0x1c8] ss:$16 sps:$4 sm:$0xff]  }
 0x104   :  { %3604 = vmatpush1.bf16.msra.mxu1 %v5249_v20  ;;  %v3270_v31 = vpop.f32.mrf.mxu0  ;;  %3564 = vmatprep.subr.bf16.mxu0 %v5254_v21  ;;  %v5303_v20 = vld [vmem:[%s7520_s1 + $0x3c8] ss:$16 sps:$4 sm:$0xff]   ;;  %v5308_v21 = vld [vmem:[%s7520_s1 + $0x1ac] ss:$16 sps:$4 sm:$0xff]  }
 0x105   :  { %v3311_v33 = vpop.f32.mrf.mxu1  ;;  %3605 = vmatprep.subr.bf16.mxu1 %v5257_v22  ;;  %v6631_v37 = vadd.f32 %v3309_v27, %v3269_v30  ;;  %v3271_v38 = vadd.f32 %v3270_v31, %v545_v24  ;;  %3594 = vmatprep.mubr.bf16.mxu0 %v5884_v60  ;;  %v5269_v60 = vld [vmem:[%s7520_s1 + $0x28c] ss:$16 sps:$4 sm:$0xff]   ;;  %v5306_v24 = vld [vmem:[%s7520_s1 + $0x1a8] ss:$16 sps:$4 sm:$0xff]  }
 0x106   :  { %3635 = vmatprep.mubr.bf16.mxu1 %v5897_v0  ;;  %v3272_v44 = vpop.f32.mrf.mxu0  ;;  %v5264_v0 = vld [vmem:[%s7520_s1 + $0x88] ss:$16 sps:$4 sm:$0xff]   ;;  %v5311_v22 = vld [vmem:[%s7520_s1 + $0x3ac] ss:$16 sps:$4 sm:$0xff]  }
 0x107   :  { %v3313_v45 = vpop.f32.mrf.mxu1  ;;  %v6641_v46 = vadd.f32 %v3311_v33, %v3271_v38  ;;  %3565 = vmatpush1.bf16.msra.mxu0 %v5252_v28  ;;  %v5309_v25 = vld [vmem:[%s7520_s1 + $0x3a8] ss:$16 sps:$4 sm:$0xff]   ;;  %v5314_v27 = vld [vmem:[%s7520_s1 + $0x18c] ss:$16 sps:$4 sm:$0xff]  }
 0x108   :  { %3606 = vmatpush1.bf16.msra.mxu1 %v5255_v29  ;;  %v3273_v47 = vpop.f32.mrf.mxu0  ;;  %3566 = vmatprep.subr.bf16.mxu0 %v5260_v34  ;;  %v5317_v28 = vld [vmem:[%s7520_s1 + $0x38c] ss:$16 sps:$4 sm:$0xff]   ;;  %v5312_v29 = vld [vmem:[%s7520_s1 + $0x188] ss:$16 sps:$4 sm:$0xff]  }
 0x109   :  { %v3314_v48 = vpop.f32.mrf.mxu1  ;;  %3607 = vmatprep.subr.bf16.mxu1 %v5263_v36  ;;  %v5315_v30 = vld [vmem:[%s7520_s1 + $0x388] ss:$16 sps:$4 sm:$0xff]   ;;  %v5320_v31 = vld [vmem:[%s7520_s1 + $0x16c] ss:$16 sps:$4 sm:$0xff]  }
 0x10a   :  { %v5323_v33 = vld [vmem:[%s7520_s1 + $0x36c] ss:$16 sps:$4 sm:$0xff]   ;;  %v5318_v34 = vld [vmem:[%s7520_s1 + $0x168] ss:$16 sps:$4 sm:$0xff]  }
 0x10b   :  { %3567 = vmatpush1.bf16.msra.mxu0 %v5258_v32  ;;  %v5321_v36 = vld [vmem:[%s7520_s1 + $0x368] ss:$16 sps:$4 sm:$0xff]   ;;  %v5326_v38 = vld [vmem:[%s7520_s1 + $0x14c] ss:$16 sps:$4 sm:$0xff]  }
 0x10c   :  { %3608 = vmatpush1.bf16.msra.mxu1 %v5261_v40  ;;  %3568 = vmatprep.subr.bf16.mxu0 %v5266_v51  ;;  %v5329_v32 = vld [vmem:[%s7520_s1 + $0x34c] ss:$16 sps:$4 sm:$0xff]   ;;  %v5324_v40 = vld [vmem:[%s7520_s1 + $0x148] ss:$16 sps:$4 sm:$0xff]  }
 0x10d   :  { %3609 = vmatprep.subr.bf16.mxu1 %v5269_v60  ;;  %v5327_v44 = vld [vmem:[%s7520_s1 + $0x348] ss:$16 sps:$4 sm:$0xff]   ;;  %v5332_v45 = vld [vmem:[%s7520_s1 + $0x12c] ss:$16 sps:$4 sm:$0xff]  }
 0x10e   :  { %v5335_v47 = vld [vmem:[%s7520_s1 + $0x32c] ss:$16 sps:$4 sm:$0xff]   ;;  %v5330_v48 = vld [vmem:[%s7520_s1 + $0x128] ss:$16 sps:$4 sm:$0xff]  }
 0x10f   :  { %3569 = vmatpush1.bf16.msra.mxu0 %v5264_v0  ;;  %v5333_v51 = vld [vmem:[%s7520_s1 + $0x328] ss:$16 sps:$4 sm:$0xff]   ;;  %v5338_v60 = vld [vmem:[%s7520_s1 + $0x10c] ss:$16 sps:$4 sm:$0xff]  }
 0x110   :  { %3610 = vmatpush1.bf16.msra.mxu1 %v5267_v52  ;;  %3570 = vmatprep.subr.bf16.mxu0 %v5272_v53  ;;  %v5341_v0 = vld [vmem:[%s7520_s1 + $0x30c] ss:$16 sps:$4 sm:$0xff]   ;;  %v5336_v52 = vld [vmem:[%s7520_s1 + $0x108] ss:$16 sps:$4 sm:$0xff]  }
 0x111   :  { %3611 = vmatprep.subr.bf16.mxu1 %v5275_v55  ;;  %v5339_v53 = vld [vmem:[%s7520_s1 + $0x308] ss:$16 sps:$4 sm:$0xff]   ;;  %v5344_v55 = vld [vmem:[%s7520_s1 + $0x4ec] ss:$16 sps:$4 sm:$0xff]  }
 0x113   :  { %3571 = vmatpush1.bf16.msra.mxu0 %v5270_v56  ;;  %v5347_v56 = vld [vmem:[%s7520_s1 + $0x6ec] ss:$16 sps:$4 sm:$0xff]  }
 0x114   :  { %3612 = vmatpush1.bf16.msra.mxu1 %v5273_v57  ;;  %3572 = vmatprep.subr.bf16.mxu0 %v5278_v58  ;;  %v5342_v57 = vld [vmem:[%s7520_s1 + $0x4e8] ss:$16 sps:$4 sm:$0xff]  }
 0x115   :  { %3613 = vmatprep.subr.bf16.mxu1 %v5281_v61  ;;  %v5345_v58 = vld [vmem:[%s7520_s1 + $0x6e8] ss:$16 sps:$4 sm:$0xff]   ;;  %v5350_v61 = vld [vmem:[%s7520_s1 + $0x4cc] ss:$16 sps:$4 sm:$0xff]  }
 0x117   :  { %3573 = vmatpush1.bf16.msra.mxu0 %v5276_v62  ;;  %v5353_v62 = vld [vmem:[%s7520_s1 + $0x6cc] ss:$16 sps:$4 sm:$0xff]  }
 0x118   :  { %3614 = vmatpush1.bf16.msra.mxu1 %v5279_v63  ;;  %3574 = vmatprep.subr.bf16.mxu0 %v5284_v1  ;;  %v5348_v63 = vld [vmem:[%s7520_s1 + $0x4c8] ss:$16 sps:$4 sm:$0xff]  }
 0x119   :  { %3615 = vmatprep.subr.bf16.mxu1 %v5287_v2  ;;  %v5351_v1 = vld [vmem:[%s7520_s1 + $0x6c8] ss:$16 sps:$4 sm:$0xff]  }
 0x11b   :  { %3575 = vmatpush1.bf16.msra.mxu0 %v5282_v3 }
 0x11c   :  { %3616 = vmatpush1.bf16.msra.mxu1 %v5285_v4  ;;  %3576 = vmatprep.subr.bf16.mxu0 %v5290_v5 }
 0x11d   :  { %3617 = vmatprep.subr.bf16.mxu1 %v5293_v7 }
 0x11f   :  { %3577 = vmatpush1.bf16.msra.mxu0 %v5288_v8  ;;  %v5356_v8 = vld [vmem:[%s7520_s1 + $0x4ac] ss:$16 sps:$4 sm:$0xff]  }
 0x120   :  { %3618 = vmatpush1.bf16.msra.mxu1 %v5291_v9  ;;  %3578 = vmatprep.subr.bf16.mxu0 %v5296_v11  ;;  %v5359_v9 = vld [vmem:[%s7520_s1 + $0x6ac] ss:$16 sps:$4 sm:$0xff]  }
 0x121   :  { %3619 = vmatprep.subr.bf16.mxu1 %v5299_v12 }
 0x123   :  { %3579 = vmatpush2.bf16.msra.mxu0 %v5294_v14 }
 0x124   :  { %3620 = vmatpush2.bf16.msra.mxu1 %v5297_v15  ;;  %3580 = vmatprep.subr.bf16.mxu0 %v5302_v49 }
 0x125   :  { %3621 = vmatprep.subr.bf16.mxu1 %v5305_v16  ;;  %v5362_v16 = vld [vmem:[%s7520_s1 + $0x48c] ss:$16 sps:$4 sm:$0xff]  }
 0x127   :  { %3581 = vmatpush2.bf16.msra.mxu0 %v5300_v19  ;;  %v5363_v19 = vld [vmem:[%s7520_s1 + $0x688] ss:$16 sps:$4 sm:$0xff]  }
 0x128   :  { %3622 = vmatpush2.bf16.msra.mxu1 %v5303_v20  ;;  %3582 = vmatprep.subr.bf16.mxu0 %v5308_v21  ;;  %v5368_v20 = vld [vmem:[%s7520_s1 + $0x46c] ss:$16 sps:$4 sm:$0xff]  }
 0x129   :  { %3623 = vmatprep.subr.bf16.mxu1 %v5311_v22  ;;  %v5371_v21 = vld [vmem:[%s7520_s1 + $0x66c] ss:$16 sps:$4 sm:$0xff]   ;;  %v5366_v22 = vld [vmem:[%s7520_s1 + $0x468] ss:$16 sps:$4 sm:$0xff]  }
 0x12b   :  { %3583 = vmatpush2.bf16.msra.mxu0 %v5306_v24  ;;  %v5369_v24 = vld [vmem:[%s7520_s1 + $0x668] ss:$16 sps:$4 sm:$0xff]  }
 0x12c   :  { %3624 = vmatpush2.bf16.msra.mxu1 %v5309_v25  ;;  %3584 = vmatprep.subr.bf16.mxu0 %v5314_v27  ;;  %v5374_v25 = vld [vmem:[%s7520_s1 + $0x44c] ss:$16 sps:$4 sm:$0xff]  }
 0x12d   :  { %3625 = vmatprep.subr.bf16.mxu1 %v5317_v28  ;;  %v5377_v27 = vld [vmem:[%s7520_s1 + $0x64c] ss:$16 sps:$4 sm:$0xff]   ;;  %v5372_v28 = vld [vmem:[%s7520_s1 + $0x448] ss:$16 sps:$4 sm:$0xff]  }
 0x12f   :  { %3585 = vmatpush2.bf16.msra.mxu0 %v5312_v29  ;;  %v5375_v29 = vld [vmem:[%s7520_s1 + $0x648] ss:$16 sps:$4 sm:$0xff]  }
 0x130   :  { %3626 = vmatpush2.bf16.msra.mxu1 %v5315_v30  ;;  %3586 = vmatprep.subr.bf16.mxu0 %v5320_v31  ;;  %v5380_v30 = vld [vmem:[%s7520_s1 + $0x42c] ss:$16 sps:$4 sm:$0xff]  }
 0x131   :  { %3627 = vmatprep.subr.bf16.mxu1 %v5323_v33  ;;  %v5383_v31 = vld [vmem:[%s7520_s1 + $0x62c] ss:$16 sps:$4 sm:$0xff]   ;;  %v5378_v33 = vld [vmem:[%s7520_s1 + $0x428] ss:$16 sps:$4 sm:$0xff]  }
 0x133   :  { %3587 = vmatpush2.bf16.msra.mxu0 %v5318_v34  ;;  %v5381_v34 = vld [vmem:[%s7520_s1 + $0x628] ss:$16 sps:$4 sm:$0xff]  }
 0x134   :  { %3628 = vmatpush2.bf16.msra.mxu1 %v5321_v36  ;;  %3588 = vmatprep.subr.bf16.mxu0 %v5326_v38  ;;  %v5386_v36 = vld [vmem:[%s7520_s1 + $0x40c] ss:$16 sps:$4 sm:$0xff]  }
 0x135   :  { %3629 = vmatprep.subr.bf16.mxu1 %v5329_v32  ;;  %v5389_v38 = vld [vmem:[%s7520_s1 + $0x60c] ss:$16 sps:$4 sm:$0xff]   ;;  %v5384_v32 = vld [vmem:[%s7520_s1 + $0x408] ss:$16 sps:$4 sm:$0xff]  }
 0x137   :  { %3589 = vmatpush2.bf16.msra.mxu0 %v5324_v40  ;;  %v5387_v40 = vld [vmem:[%s7520_s1 + $0x608] ss:$16 sps:$4 sm:$0xff]  }
 0x138   :  { %3630 = vmatpush2.bf16.msra.mxu1 %v5327_v44  ;;  %3590 = vmatprep.subr.bf16.mxu0 %v5332_v45  ;;  %v5392_v44 = vld [vmem:[%s7520_s1 + $0x5ec] ss:$16 sps:$4 sm:$0xff]  }
 0x139   :  { %3631 = vmatprep.subr.bf16.mxu1 %v5335_v47  ;;  %v5395_v45 = vld [vmem:[%s7520_s1 + $0x7ec] ss:$16 sps:$4 sm:$0xff]   ;;  %v5390_v47 = vld [vmem:[%s7520_s1 + $0x5e8] ss:$16 sps:$4 sm:$0xff]  }
 0x13b   :  { %3591 = vmatpush2.bf16.msra.mxu0 %v5330_v48  ;;  %v5393_v48 = vld [vmem:[%s7520_s1 + $0x7e8] ss:$16 sps:$4 sm:$0xff]  }
 0x13c   :  { %3632 = vmatpush2.bf16.msra.mxu1 %v5333_v51  ;;  %3592 = vmatprep.subr.bf16.mxu0 %v5338_v60  ;;  %v5398_v51 = vld [vmem:[%s7520_s1 + $0x5cc] ss:$16 sps:$4 sm:$0xff]  }
 0x13d   :  { %3633 = vmatprep.subr.bf16.mxu1 %v5341_v0  ;;  %v5401_v60 = vld [vmem:[%s7520_s1 + $0x7cc] ss:$16 sps:$4 sm:$0xff]  }
 0x13f   :  { %3593 = vmatpush2.bf16.msra.mxu0 %v5336_v52 }
 0x140   :  { %3634 = vmatpush2.bf16.msra.mxu1 %v5339_v53  ;;  %3644 = vmatprep.subr.bf16.mxu0 %v5344_v55 }
 0x141   :  { %3685 = vmatprep.subr.bf16.mxu1 %v5347_v56 }
 0x142   :  { %v3350_v2 = vpop.f32.mrf.mxu0  ;;  %3595 = vmatmul.mubr.bf16.vlgmr.msra.gmra.mxu0 %v5934_v13 }
 0x143   :  { %v3391_v3 = vpop.f32.mrf.mxu1  ;;  %3636 = vmatmul.mubr.bf16.vlgmr.msra.gmra.mxu1 %v5950_v18  ;;  %v3351_v4 = vadd.f32 %v3350_v2, %v6631_v37  ;;  %3645 = vmatpush1.bf16.msra.mxu0 %v5342_v57  ;;  %v5354_v18 = vld [vmem:[%s7520_s1 + $0x4a8] ss:$16 sps:$4 sm:$0xff]  }
 0x144   :  { %3686 = vmatpush1.bf16.msra.mxu1 %v5345_v58  ;;  %v3352_v5 = vpop.f32.mrf.mxu0  ;;  %3646 = vmatprep.subr.bf16.mxu0 %v5350_v61  ;;  %v5357_v37 = vld [vmem:[%s7520_s1 + $0x6a8] ss:$16 sps:$4 sm:$0xff]  }
 0x145   :  { %v3393_v7 = vpop.f32.mrf.mxu1  ;;  %3687 = vmatprep.subr.bf16.mxu1 %v5353_v62  ;;  %v6832_v11 = vadd.f32 %v3391_v3, %v3351_v4  ;;  %v3353_v13 = vadd.f32 %v3352_v5, %v6641_v46  ;;  %3676 = vmatprep.mubr.bf16.mxu0 %v5946_v17  ;;  %v5365_v17 = vld [vmem:[%s7520_s1 + $0x68c] ss:$16 sps:$4 sm:$0xff]  }
 0x146   :  { %3717 = vmatprep.mubr.bf16.mxu1 %v5966_v23  ;;  %v3354_v12 = vpop.f32.mrf.mxu0  ;;  %v5360_v23 = vld [vmem:[%s7520_s1 + $0x488] ss:$16 sps:$4 sm:$0xff]  }
 0x147   :  { %v3395_v14 = vpop.f32.mrf.mxu1  ;;  %v6843_v15 = vadd.f32 %v3393_v7, %v3353_v13  ;;  %3647 = vmatpush1.bf16.msra.mxu0 %v5348_v63 }
 0x148   :  { %3688 = vmatpush1.bf16.msra.mxu1 %v5351_v1  ;;  %v3355_v49 = vpop.f32.mrf.mxu0  ;;  %3648 = vmatprep.subr.bf16.mxu0 %v5356_v8 }
 0x149   :  { %v3396_v46 = vpop.f32.mrf.mxu1  ;;  %3689 = vmatprep.subr.bf16.mxu1 %v5359_v9 }
 0x14b   :  { %3649 = vmatpush1.bf16.msra.mxu0 %v5354_v18 }
 0x14c   :  { %3690 = vmatpush1.bf16.msra.mxu1 %v5357_v37  ;;  %3650 = vmatprep.subr.bf16.mxu0 %v5362_v16 }
 0x14d   :  { %3691 = vmatprep.subr.bf16.mxu1 %v5365_v17 }
 0x14f   :  { %3651 = vmatpush1.bf16.msra.mxu0 %v5360_v23 }
 0x150   :  { %3692 = vmatpush1.bf16.msra.mxu1 %v5363_v19  ;;  %3652 = vmatprep.subr.bf16.mxu0 %v5368_v20 }
 0x151   :  { %3693 = vmatprep.subr.bf16.mxu1 %v5371_v21 }
 0x153   :  { %3653 = vmatpush1.bf16.msra.mxu0 %v5366_v22 }
 0x154   :  { %3694 = vmatpush1.bf16.msra.mxu1 %v5369_v24  ;;  %3654 = vmatprep.subr.bf16.mxu0 %v5374_v25 }
 0x155   :  { %3695 = vmatprep.subr.bf16.mxu1 %v5377_v27 }
 0x157   :  { %3655 = vmatpush1.bf16.msra.mxu0 %v5372_v28 }
 0x158   :  { %3696 = vmatpush1.bf16.msra.mxu1 %v5375_v29  ;;  %3656 = vmatprep.subr.bf16.mxu0 %v5380_v30 }
 0x159   :  { %3697 = vmatprep.subr.bf16.mxu1 %v5383_v31 }
 0x15b   :  { %3657 = vmatpush1.bf16.msra.mxu0 %v5378_v33 }
 0x15c   :  { %3698 = vmatpush1.bf16.msra.mxu1 %v5381_v34  ;;  %3658 = vmatprep.subr.bf16.mxu0 %v5386_v36 }
 0x15d   :  { %3699 = vmatprep.subr.bf16.mxu1 %v5389_v38 }
 0x15f   :  { %3659 = vmatpush1.bf16.msra.mxu0 %v5384_v32 }
 0x160   :  { %3700 = vmatpush1.bf16.msra.mxu1 %v5387_v40  ;;  %3660 = vmatprep.subr.bf16.mxu0 %v5392_v44 }
 0x161   :  { %3701 = vmatprep.subr.bf16.mxu1 %v5395_v45 }
 0x162   :  { %10 = vsyncpa [#allocation3], 0  ;;  %v5396_v0 = vld [vmem:[%s7520_s1 + $0x5c8] ss:$16 sps:$4 sm:$0xff]   ;;  %v5404_v53 = vld [vmem:[%s7520_s1 + $0x5ac] ss:$16 sps:$4 sm:$0xff]  }
 0x163   :  { %3661 = vmatpush2.bf16.msra.mxu0 %v5390_v47  ;;  %v5399_v52 = vld [vmem:[%s7520_s1 + $0x7c8] ss:$16 sps:$4 sm:$0xff]   ;;  %v5407_v55 = vld [vmem:[%s7520_s1 + $0x7ac] ss:$16 sps:$4 sm:$0xff]   ;;  %vm4241_vm0 = vcmask 1041408  }
 0x164   :  { %3702 = vmatpush2.bf16.msra.mxu1 %v5393_v48  ;;  %3662 = vmatprep.subr.bf16.mxu0 %v5398_v51  ;;  %v5402_v56 = vld [vmem:[%s7520_s1 + $0x5a8] ss:$16 sps:$4 sm:$0xff]   ;;  %v5410_v58 = vld [vmem:[%s7520_s1 + $0x58c] ss:$16 sps:$4 sm:$0xff]  }
 0x165   :  { %3703 = vmatprep.subr.bf16.mxu1 %v5401_v60  ;;  %v5405_v57 = vld [vmem:[%s7520_s1 + $0x7a8] ss:$16 sps:$4 sm:$0xff]   ;;  %v5413_v61 = vld [vmem:[%s7520_s1 + $0x78c] ss:$16 sps:$4 sm:$0xff]  }
 0x166   :  { %v5408_v62 = vld [vmem:[%s7520_s1 + $0x588] ss:$16 sps:$4 sm:$0xff]   ;;  %v5416_v1 = vld [vmem:[%s7520_s1 + $0x56c] ss:$16 sps:$4 sm:$0xff]  }
 0x167   :  { %3663 = vmatpush2.bf16.msra.mxu0 %v5396_v0  ;;  %v5411_v63 = vld [vmem:[%s7520_s1 + $0x788] ss:$16 sps:$4 sm:$0xff]   ;;  %v5419_v2 = vld [vmem:[%s7520_s1 + $0x76c] ss:$16 sps:$4 sm:$0xff]  }
 0x168   :  { %3704 = vmatpush2.bf16.msra.mxu1 %v5399_v52  ;;  %3664 = vmatprep.subr.bf16.mxu0 %v5404_v53  ;;  %v5414_v3 = vld [vmem:[%s7520_s1 + $0x568] ss:$16 sps:$4 sm:$0xff]   ;;  %v5422_v5 = vld [vmem:[%s7520_s1 + $0x54c] ss:$16 sps:$4 sm:$0xff]  }
 0x169   :  { %3705 = vmatprep.subr.bf16.mxu1 %v5407_v55  ;;  %v5417_v4 = vld [vmem:[%s7520_s1 + $0x768] ss:$16 sps:$4 sm:$0xff]   ;;  %v5425_v7 = vld [vmem:[%s7520_s1 + $0x74c] ss:$16 sps:$4 sm:$0xff]  }
 0x16a   :  { %v5420_v8 = vld [vmem:[%s7520_s1 + $0x548] ss:$16 sps:$4 sm:$0xff]   ;;  %v5428_v13 = vld [vmem:[%s7520_s1 + $0x52c] ss:$16 sps:$4 sm:$0xff]  }
 0x16b   :  { %3665 = vmatpush2.bf16.msra.mxu0 %v5402_v56  ;;  %v5423_v9 = vld [vmem:[%s7520_s1 + $0x748] ss:$16 sps:$4 sm:$0xff]   ;;  %v5431_v18 = vld [vmem:[%s7520_s1 + $0x72c] ss:$16 sps:$4 sm:$0xff]  }
 0x16c   :  { %3706 = vmatpush2.bf16.msra.mxu1 %v5405_v57  ;;  %3666 = vmatprep.subr.bf16.mxu0 %v5410_v58  ;;  %v5426_v37 = vld [vmem:[%s7520_s1 + $0x528] ss:$16 sps:$4 sm:$0xff]   ;;  %v5434_v14 = vld [vmem:[%s7520_s1 + $0x50c] ss:$16 sps:$4 sm:$0xff]  }
 0x16d   :  { %3707 = vmatprep.subr.bf16.mxu1 %v5413_v61  ;;  %v5429_v12 = vld [vmem:[%s7520_s1 + $0x728] ss:$16 sps:$4 sm:$0xff]   ;;  %v5437_v49 = vld [vmem:[%s7520_s1 + $0x70c] ss:$16 sps:$4 sm:$0xff]  }
 0x16e   :  { %v5432_v46 = vld [vmem:[%s7520_s1 + $0x508] ss:$16 sps:$4 sm:$0xff]   ;;  %v5440_v17 = vld [vmem:[%s7520_s1 + $0x8ec] ss:$16 sps:$4 sm:$0xff]  }
 0x16f   :  { %3667 = vmatpush2.bf16.msra.mxu0 %v5408_v62  ;;  %v5435_v16 = vld [vmem:[%s7520_s1 + $0x708] ss:$16 sps:$4 sm:$0xff]   ;;  %v5443_v23 = vld [vmem:[%s7520_s1 + $0xaec] ss:$16 sps:$4 sm:$0xff]  }
 0x170   :  { %3708 = vmatpush2.bf16.msra.mxu1 %v5411_v63  ;;  %3668 = vmatprep.subr.bf16.mxu0 %v5416_v1  ;;  %v5438_v19 = vld [vmem:[%s7520_s1 + $0x8e8] ss:$16 sps:$4 sm:$0xff]   ;;  %v5446_v21 = vld [vmem:[%s7520_s1 + $0x8cc] ss:$16 sps:$4 sm:$0xff]  }
 0x171   :  { %3709 = vmatprep.subr.bf16.mxu1 %v5419_v2  ;;  %v5441_v20 = vld [vmem:[%s7520_s1 + $0xae8] ss:$16 sps:$4 sm:$0xff]   ;;  %v5449_v22 = vld [vmem:[%s7520_s1 + $0xacc] ss:$16 sps:$4 sm:$0xff]  }
 0x172   :  { %v5444_v28 = vld [vmem:[%s7520_s1 + $0x8c8] ss:$16 sps:$4 sm:$0xff]   ;;  %v5464_v48 = vld [vmem:[%s7520_s1 + $0x86c] ss:$16 sps:$4 sm:$0xff]  }
 0x173   :  { %3669 = vmatpush2.bf16.msra.mxu0 %v5414_v3  ;;  %v5447_v29 = vld [vmem:[%s7520_s1 + $0xac8] ss:$16 sps:$4 sm:$0xff]   ;;  %v5467_v51 = vld [vmem:[%s7520_s1 + $0xa6c] ss:$16 sps:$4 sm:$0xff]  }
 0x174   :  { %3710 = vmatpush2.bf16.msra.mxu1 %v5417_v4  ;;  %3670 = vmatprep.subr.bf16.mxu0 %v5422_v5  ;;  %v5450_v32 = vld [vmem:[%s7520_s1 + $0x8a8] ss:$16 sps:$4 sm:$0xff]   ;;  %v5470_v52 = vld [vmem:[%s7520_s1 + $0x84c] ss:$16 sps:$4 sm:$0xff]  }
 0x175   :  { %3711 = vmatprep.subr.bf16.mxu1 %v5425_v7  ;;  %v5453_v40 = vld [vmem:[%s7520_s1 + $0xaa8] ss:$16 sps:$4 sm:$0xff]   ;;  %v5473_v53 = vld [vmem:[%s7520_s1 + $0xa4c] ss:$16 sps:$4 sm:$0xff]  }
 0x176   :  { %v5456_v45 = vld [vmem:[%s7520_s1 + $0x888] ss:$16 sps:$4 sm:$0xff]   ;;  %v5476_v57 = vld [vmem:[%s7520_s1 + $0x82c] ss:$16 sps:$4 sm:$0xff]  }
 0x177   :  { %3671 = vmatpush2.bf16.msra.mxu0 %v5420_v8  ;;  %v5459_v47 = vld [vmem:[%s7520_s1 + $0xa88] ss:$16 sps:$4 sm:$0xff]   ;;  %v5479_v58 = vld [vmem:[%s7520_s1 + $0xa2c] ss:$16 sps:$4 sm:$0xff]  }
 0x178   :  { %3712 = vmatpush2.bf16.msra.mxu1 %v5423_v9  ;;  %3672 = vmatprep.subr.bf16.mxu0 %v5428_v13  ;;  %v5462_v60 = vld [vmem:[%s7520_s1 + $0x868] ss:$16 sps:$4 sm:$0xff]   ;;  %v5482_v63 = vld [vmem:[%s7520_s1 + $0x80c] ss:$16 sps:$4 sm:$0xff]  }
 0x179   :  { %3713 = vmatprep.subr.bf16.mxu1 %v5431_v18  ;;  %v5465_v0 = vld [vmem:[%s7520_s1 + $0xa68] ss:$16 sps:$4 sm:$0xff]   ;;  %v5485_v1 = vld [vmem:[%s7520_s1 + $0xa0c] ss:$16 sps:$4 sm:$0xff]  }
 0x17a   :  { %v5468_v55 = vld [vmem:[%s7520_s1 + $0x848] ss:$16 sps:$4 sm:$0xff]   ;;  %v5488_v4 = vld [vmem:[%s7520_s1 + $0x9ec] ss:$16 sps:$4 sm:$0xff]  }
 0x17b   :  { %3673 = vmatpush2.bf16.msra.mxu0 %v5426_v37  ;;  %v5471_v56 = vld [vmem:[%s7520_s1 + $0xa48] ss:$16 sps:$4 sm:$0xff]   ;;  %v5491_v5 = vld [vmem:[%s7520_s1 + $0xbec] ss:$16 sps:$4 sm:$0xff]  }
 0x17c   :  { %3714 = vmatpush2.bf16.msra.mxu1 %v5429_v12  ;;  %3674 = vmatprep.subr.bf16.mxu0 %v5434_v14  ;;  %v5474_v61 = vld [vmem:[%s7520_s1 + $0x828] ss:$16 sps:$4 sm:$0xff]   ;;  %v5494_v9 = vld [vmem:[%s7520_s1 + $0x9cc] ss:$16 sps:$4 sm:$0xff]  }
 0x17d   :  { %3715 = vmatprep.subr.bf16.mxu1 %v5437_v49  ;;  %v5477_v62 = vld [vmem:[%s7520_s1 + $0xa28] ss:$16 sps:$4 sm:$0xff]   ;;  %v5497_v13 = vld [vmem:[%s7520_s1 + $0xbcc] ss:$16 sps:$4 sm:$0xff]  }
 0x17e   :  { %v5480_v2 = vld [vmem:[%s7520_s1 + $0x808] ss:$16 sps:$4 sm:$0xff]   ;;  %v5500_v12 = vld [vmem:[%s7520_s1 + $0x9ac] ss:$16 sps:$4 sm:$0xff]  }
 0x17f   :  { %3675 = vmatpush2.bf16.msra.mxu0 %v5432_v46  ;;  %v5483_v3 = vld [vmem:[%s7520_s1 + $0xa08] ss:$16 sps:$4 sm:$0xff]   ;;  %v5503_v14 = vld [vmem:[%s7520_s1 + $0xbac] ss:$16 sps:$4 sm:$0xff]  }
 0x180   :  { %3716 = vmatpush2.bf16.msra.mxu1 %v5435_v16  ;;  %3726 = vmatprep.subr.bf16.mxu0 %v5440_v17  ;;  %v5486_v7 = vld [vmem:[%s7520_s1 + $0x9e8] ss:$16 sps:$4 sm:$0xff]   ;;  %v5506_v16 = vld [vmem:[%s7520_s1 + $0x98c] ss:$16 sps:$4 sm:$0xff]  }
 0x181   :  { %3767 = vmatprep.subr.bf16.mxu1 %v5443_v23  ;;  %v5489_v8 = vld [vmem:[%s7520_s1 + $0xbe8] ss:$16 sps:$4 sm:$0xff]   ;;  %v5509_v17 = vld [vmem:[%s7520_s1 + $0xb8c] ss:$16 sps:$4 sm:$0xff]  }
 0x182   :  { %v3432_v24 = vpop.f32.mrf.mxu0  ;;  %3677 = vmatmul.mubr.bf16.vlgmr.msra.gmra.mxu0 %v6145_v26  ;;  %v5452_v26 = vld [vmem:[%s7520_s1 + $0x8ac] ss:$16 sps:$4 sm:$0xff]   ;;  %v5492_v18 = vld [vmem:[%s7520_s1 + $0x9c8] ss:$16 sps:$4 sm:$0xff]  }
 0x183   :  { %v3473_v25 = vpop.f32.mrf.mxu1  ;;  %3718 = vmatmul.mubr.bf16.vlgmr.msra.gmra.mxu1 %v6158_v6  ;;  %v3433_v27 = vadd.f32 %v3432_v24, %v6832_v11  ;;  %3727 = vmatpush1.bf16.msra.mxu0 %v5438_v19  ;;  %v5455_v6 = vld [vmem:[%s7520_s1 + $0xaac] ss:$16 sps:$4 sm:$0xff]   ;;  %v5495_v37 = vld [vmem:[%s7520_s1 + $0xbc8] ss:$16 sps:$4 sm:$0xff]  }
 0x184   :  { %3768 = vmatpush1.bf16.msra.mxu1 %v5441_v20  ;;  %v3434_v30 = vpop.f32.mrf.mxu0  ;;  %3728 = vmatprep.subr.bf16.mxu0 %v5446_v21  ;;  %v5498_v49 = vld [vmem:[%s7520_s1 + $0x9a8] ss:$16 sps:$4 sm:$0xff]   ;;  %v5512_v20 = vld [vmem:[%s7520_s1 + $0x96c] ss:$16 sps:$4 sm:$0xff]  }
 0x185   :  { %v3475_v31 = vpop.f32.mrf.mxu1  ;;  %3769 = vmatprep.subr.bf16.mxu1 %v5449_v22  ;;  %v7034_v11 = vadd.f32 %v3473_v25, %v3433_v27  ;;  %v3435_v33 = vadd.f32 %v3434_v30, %v6843_v15  ;;  %3758 = vmatprep.mubr.bf16.mxu0 %v6198_v41  ;;  %v5458_v41 = vld [vmem:[%s7520_s1 + $0x88c] ss:$16 sps:$4 sm:$0xff]   ;;  %v5501_v46 = vld [vmem:[%s7520_s1 + $0xba8] ss:$16 sps:$4 sm:$0xff]  }
 0x186   :  { %3799 = vmatprep.mubr.bf16.mxu1 %v6203_v43  ;;  %v3436_v34 = vpop.f32.mrf.mxu0  ;;  %v5461_v43 = vld [vmem:[%s7520_s1 + $0xa8c] ss:$16 sps:$4 sm:$0xff]   ;;  %v5504_v23 = vld [vmem:[%s7520_s1 + $0x988] ss:$16 sps:$4 sm:$0xff]  }
 0x187   :  { %v3477_v36 = vpop.f32.mrf.mxu1  ;;  %v7039_v38 = vadd.f32 %v3475_v31, %v3435_v33  ;;  %3729 = vmatpush1.bf16.msra.mxu0 %v5444_v28  ;;  %v5507_v19 = vld [vmem:[%s7520_s1 + $0xb88] ss:$16 sps:$4 sm:$0xff]   ;;  %v5515_v21 = vld [vmem:[%s7520_s1 + $0xb6c] ss:$16 sps:$4 sm:$0xff]  }
 0x188   :  { %3770 = vmatpush1.bf16.msra.mxu1 %v5447_v29  ;;  %v3437_v44 = vpop.f32.mrf.mxu0  ;;  %3730 = vmatprep.subr.bf16.mxu0 %v5452_v26  ;;  %v5510_v22 = vld [vmem:[%s7520_s1 + $0x968] ss:$16 sps:$4 sm:$0xff]   ;;  %v5518_v25 = vld [vmem:[%s7520_s1 + $0x94c] ss:$16 sps:$4 sm:$0xff]  }
 0x189   :  { %v3478_v15 = vpop.f32.mrf.mxu1  ;;  %3771 = vmatprep.subr.bf16.mxu1 %v5455_v6  ;;  %v5513_v24 = vld [vmem:[%s7520_s1 + $0xb68] ss:$16 sps:$4 sm:$0xff]   ;;  %v5521_v27 = vld [vmem:[%s7520_s1 + $0xb4c] ss:$16 sps:$4 sm:$0xff]  }
 0x18a   :  { %v5516_v28 = vld [vmem:[%s7520_s1 + $0x948] ss:$16 sps:$4 sm:$0xff]   ;;  %v5524_v30 = vld [vmem:[%s7520_s1 + $0x92c] ss:$16 sps:$4 sm:$0xff]  }
 0x18b   :  { %3731 = vmatpush1.bf16.msra.mxu0 %v5450_v32  ;;  %v5519_v29 = vld [vmem:[%s7520_s1 + $0xb48] ss:$16 sps:$4 sm:$0xff]   ;;  %v5527_v31 = vld [vmem:[%s7520_s1 + $0xb2c] ss:$16 sps:$4 sm:$0xff]  }
 0x18c   :  { %3772 = vmatpush1.bf16.msra.mxu1 %v5453_v40  ;;  %3732 = vmatprep.subr.bf16.mxu0 %v5458_v41  ;;  %v5522_v26 = vld [vmem:[%s7520_s1 + $0x928] ss:$16 sps:$4 sm:$0xff]   ;;  %v5530_v33 = vld [vmem:[%s7520_s1 + $0x90c] ss:$16 sps:$4 sm:$0xff]  }
 0x18d   :  { %3773 = vmatprep.subr.bf16.mxu1 %v5461_v43  ;;  %v5525_v6 = vld [vmem:[%s7520_s1 + $0xb28] ss:$16 sps:$4 sm:$0xff]   ;;  %v5533_v34 = vld [vmem:[%s7520_s1 + $0xb0c] ss:$16 sps:$4 sm:$0xff]  }
 0x18e   :  { %v5528_v36 = vld [vmem:[%s7520_s1 + $0x908] ss:$16 sps:$4 sm:$0xff]   ;;  %v5536_v40 = vld [vmem:[%s7520_s1 + $0xcec] ss:$16 sps:$4 sm:$0xff]  }
 0x18f   :  { %3733 = vmatpush1.bf16.msra.mxu0 %v5456_v45  ;;  %v5531_v32 = vld [vmem:[%s7520_s1 + $0xb08] ss:$16 sps:$4 sm:$0xff]   ;;  %v5539_v44 = vld [vmem:[%s7520_s1 + $0xeec] ss:$16 sps:$4 sm:$0xff]  }
 0x190   :  { %3774 = vmatpush1.bf16.msra.mxu1 %v5459_v47  ;;  %3734 = vmatprep.subr.bf16.mxu0 %v5464_v48  ;;  %v5534_v15 = vld [vmem:[%s7520_s1 + $0xce8] ss:$16 sps:$4 sm:$0xff]   ;;  %v5542_v43 = vld [vmem:[%s7520_s1 + $0xccc] ss:$16 sps:$4 sm:$0xff]  }
 0x191   :  { %3775 = vmatprep.subr.bf16.mxu1 %v5467_v51  ;;  %v5537_v41 = vld [vmem:[%s7520_s1 + $0xee8] ss:$16 sps:$4 sm:$0xff]   ;;  %v5545_v45 = vld [vmem:[%s7520_s1 + $0xecc] ss:$16 sps:$4 sm:$0xff]  }
 0x193   :  { %3735 = vmatpush1.bf16.msra.mxu0 %v5462_v60  ;;  %v5540_v60 = vld [vmem:[%s7520_s1 + $0xcc8] ss:$16 sps:$4 sm:$0xff]  }
 0x194   :  { %3776 = vmatpush1.bf16.msra.mxu1 %v5465_v0  ;;  %3736 = vmatprep.subr.bf16.mxu0 %v5470_v52  ;;  %v5543_v0 = vld [vmem:[%s7520_s1 + $0xec8] ss:$16 sps:$4 sm:$0xff]  }
 0x195   :  { %3777 = vmatprep.subr.bf16.mxu1 %v5473_v53 }
 0x197   :  { %3737 = vmatpush1.bf16.msra.mxu0 %v5468_v55 }
 0x198   :  { %3778 = vmatpush1.bf16.msra.mxu1 %v5471_v56  ;;  %3738 = vmatprep.subr.bf16.mxu0 %v5476_v57  ;;  %v5546_v57 = vld [vmem:[%s7520_s1 + $0xca8] ss:$16 sps:$4 sm:$0xff]  }
 0x199   :  { %3779 = vmatprep.subr.bf16.mxu1 %v5479_v58  ;;  %v5549_v58 = vld [vmem:[%s7520_s1 + $0xea8] ss:$16 sps:$4 sm:$0xff]  }
 0x19b   :  { %3739 = vmatpush1.bf16.msra.mxu0 %v5474_v61 }
 0x19c   :  { %3780 = vmatpush1.bf16.msra.mxu1 %v5477_v62  ;;  %3740 = vmatprep.subr.bf16.mxu0 %v5482_v63  ;;  %v5552_v63 = vld [vmem:[%s7520_s1 + $0xc88] ss:$16 sps:$4 sm:$0xff]  }
 0x19d   :  { %3781 = vmatprep.subr.bf16.mxu1 %v5485_v1  ;;  %v5555_v1 = vld [vmem:[%s7520_s1 + $0xe88] ss:$16 sps:$4 sm:$0xff]  }
 0x19f   :  { %3741 = vmatpush1.bf16.msra.mxu0 %v5480_v2  ;;  %v5560_v2 = vld [vmem:[%s7520_s1 + $0xc6c] ss:$16 sps:$4 sm:$0xff]  }
 0x1a0   :  { %3782 = vmatpush1.bf16.msra.mxu1 %v5483_v3  ;;  %3742 = vmatprep.subr.bf16.mxu0 %v5488_v4  ;;  %v5563_v3 = vld [vmem:[%s7520_s1 + $0xe6c] ss:$16 sps:$4 sm:$0xff]   ;;  %v5558_v4 = vld [vmem:[%s7520_s1 + $0xc68] ss:$16 sps:$4 sm:$0xff]  }
 0x1a1   :  { %3783 = vmatprep.subr.bf16.mxu1 %v5491_v5  ;;  %v5561_v5 = vld [vmem:[%s7520_s1 + $0xe68] ss:$16 sps:$4 sm:$0xff]  }
 0x1a3   :  { %3743 = vmatpush2.bf16.msra.mxu0 %v5486_v7  ;;  %v5566_v7 = vld [vmem:[%s7520_s1 + $0xc4c] ss:$16 sps:$4 sm:$0xff]  }
 0x1a4   :  { %3784 = vmatpush2.bf16.msra.mxu1 %v5489_v8  ;;  %3744 = vmatprep.subr.bf16.mxu0 %v5494_v9  ;;  %v5569_v8 = vld [vmem:[%s7520_s1 + $0xe4c] ss:$16 sps:$4 sm:$0xff]   ;;  %v5564_v9 = vld [vmem:[%s7520_s1 + $0xc48] ss:$16 sps:$4 sm:$0xff]  }
 0x1a5   :  { %3785 = vmatprep.subr.bf16.mxu1 %v5497_v13  ;;  %v5567_v13 = vld [vmem:[%s7520_s1 + $0xe48] ss:$16 sps:$4 sm:$0xff]  }
 0x1a7   :  { %3745 = vmatpush2.bf16.msra.mxu0 %v5492_v18  ;;  %v5572_v18 = vld [vmem:[%s7520_s1 + $0xc2c] ss:$16 sps:$4 sm:$0xff]  }
 0x1a8   :  { %3786 = vmatpush2.bf16.msra.mxu1 %v5495_v37  ;;  %3746 = vmatprep.subr.bf16.mxu0 %v5500_v12  ;;  %v5575_v37 = vld [vmem:[%s7520_s1 + $0xe2c] ss:$16 sps:$4 sm:$0xff]   ;;  %v5570_v12 = vld [vmem:[%s7520_s1 + $0xc28] ss:$16 sps:$4 sm:$0xff]  }
 0x1a9   :  { %3787 = vmatprep.subr.bf16.mxu1 %v5503_v14  ;;  %v5573_v14 = vld [vmem:[%s7520_s1 + $0xe28] ss:$16 sps:$4 sm:$0xff]  }
 0x1ab   :  { %3747 = vmatpush2.bf16.msra.mxu0 %v5498_v49  ;;  %v5578_v49 = vld [vmem:[%s7520_s1 + $0xc0c] ss:$16 sps:$4 sm:$0xff]  }
 0x1ac   :  { %3788 = vmatpush2.bf16.msra.mxu1 %v5501_v46  ;;  %3748 = vmatprep.subr.bf16.mxu0 %v5506_v16  ;;  %v5581_v46 = vld [vmem:[%s7520_s1 + $0xe0c] ss:$16 sps:$4 sm:$0xff]   ;;  %v5576_v16 = vld [vmem:[%s7520_s1 + $0xc08] ss:$16 sps:$4 sm:$0xff]  }
 0x1ad   :  { %3789 = vmatprep.subr.bf16.mxu1 %v5509_v17  ;;  %v5579_v17 = vld [vmem:[%s7520_s1 + $0xe08] ss:$16 sps:$4 sm:$0xff]  }
 0x1af   :  { %3749 = vmatpush2.bf16.msra.mxu0 %v5504_v23  ;;  %v5584_v23 = vld [vmem:[%s7520_s1 + $0xdec] ss:$16 sps:$4 sm:$0xff]  }
 0x1b0   :  { %3790 = vmatpush2.bf16.msra.mxu1 %v5507_v19  ;;  %3750 = vmatprep.subr.bf16.mxu0 %v5512_v20  ;;  %v5587_v19 = vld [vmem:[%s7520_s1 + $0xfec] ss:$16 sps:$4 sm:$0xff]   ;;  %v5582_v20 = vld [vmem:[%s7520_s1 + $0xde8] ss:$16 sps:$4 sm:$0xff]  }
 0x1b1   :  { %3791 = vmatprep.subr.bf16.mxu1 %v5515_v21  ;;  %v5585_v21 = vld [vmem:[%s7520_s1 + $0xfe8] ss:$16 sps:$4 sm:$0xff]  }
 0x1b3   :  { %3751 = vmatpush2.bf16.msra.mxu0 %v5510_v22  ;;  %v5590_v22 = vld [vmem:[%s7520_s1 + $0xdcc] ss:$16 sps:$4 sm:$0xff]  }
 0x1b4   :  { %3792 = vmatpush2.bf16.msra.mxu1 %v5513_v24  ;;  %3752 = vmatprep.subr.bf16.mxu0 %v5518_v25  ;;  %v5593_v24 = vld [vmem:[%s7520_s1 + $0xfcc] ss:$16 sps:$4 sm:$0xff]   ;;  %v5588_v25 = vld [vmem:[%s7520_s1 + $0xdc8] ss:$16 sps:$4 sm:$0xff]  }
 0x1b5   :  { %3793 = vmatprep.subr.bf16.mxu1 %v5521_v27  ;;  %v5591_v27 = vld [vmem:[%s7520_s1 + $0xfc8] ss:$16 sps:$4 sm:$0xff]  }
 0x1b7   :  { %3753 = vmatpush2.bf16.msra.mxu0 %v5516_v28  ;;  %v5596_v28 = vld [vmem:[%s7520_s1 + $0xdac] ss:$16 sps:$4 sm:$0xff]  }
 0x1b8   :  { %3794 = vmatpush2.bf16.msra.mxu1 %v5519_v29  ;;  %3754 = vmatprep.subr.bf16.mxu0 %v5524_v30  ;;  %v5599_v29 = vld [vmem:[%s7520_s1 + $0xfac] ss:$16 sps:$4 sm:$0xff]   ;;  %v5594_v30 = vld [vmem:[%s7520_s1 + $0xda8] ss:$16 sps:$4 sm:$0xff]  }
 0x1b9   :  { %3795 = vmatprep.subr.bf16.mxu1 %v5527_v31  ;;  %v5597_v31 = vld [vmem:[%s7520_s1 + $0xfa8] ss:$16 sps:$4 sm:$0xff]  }
 0x1bb   :  { %3755 = vmatpush2.bf16.msra.mxu0 %v5522_v26  ;;  %v5602_v26 = vld [vmem:[%s7520_s1 + $0xd8c] ss:$16 sps:$4 sm:$0xff]  }
 0x1bc   :  { %3796 = vmatpush2.bf16.msra.mxu1 %v5525_v6  ;;  %3756 = vmatprep.subr.bf16.mxu0 %v5530_v33  ;;  %v5605_v6 = vld [vmem:[%s7520_s1 + $0xf8c] ss:$16 sps:$4 sm:$0xff]   ;;  %v5600_v33 = vld [vmem:[%s7520_s1 + $0xd88] ss:$16 sps:$4 sm:$0xff]  }
 0x1bd   :  { %3797 = vmatprep.subr.bf16.mxu1 %v5533_v34  ;;  %v5603_v34 = vld [vmem:[%s7520_s1 + $0xf88] ss:$16 sps:$4 sm:$0xff]  }
 0x1bf   :  { %3757 = vmatpush2.bf16.msra.mxu0 %v5528_v36  ;;  %v5608_v36 = vld [vmem:[%s7520_s1 + $0xd6c] ss:$16 sps:$4 sm:$0xff]  }
 0x1c0   :  { %3798 = vmatpush2.bf16.msra.mxu1 %v5531_v32  ;;  %3808 = vmatprep.subr.bf16.mxu0 %v5536_v40  ;;  %v5611_v32 = vld [vmem:[%s7520_s1 + $0xf6c] ss:$16 sps:$4 sm:$0xff]   ;;  %v5606_v40 = vld [vmem:[%s7520_s1 + $0xd68] ss:$16 sps:$4 sm:$0xff]  }
 0x1c1   :  { %3849 = vmatprep.subr.bf16.mxu1 %v5539_v44  ;;  %v5609_v44 = vld [vmem:[%s7520_s1 + $0xf68] ss:$16 sps:$4 sm:$0xff]  }
 0x1c2   :  { %v3514_v47 = vpop.f32.mrf.mxu0  ;;  %3759 = vmatmul.mubr.bf16.vlgmr.msra.gmra.mxu0 %v6374_v50  ;;  %v5548_v50 = vld [vmem:[%s7520_s1 + $0xcac] ss:$16 sps:$4 sm:$0xff]  }
 0x1c3   :  { %v3555_v48 = vpop.f32.mrf.mxu1  ;;  %3800 = vmatmul.mubr.bf16.vlgmr.msra.gmra.mxu1 %v6390_v35  ;;  %v3515_v51 = vadd.f32 %v3514_v47, %v7034_v11  ;;  %3809 = vmatpush1.bf16.msra.mxu0 %v5534_v15  ;;  %v5551_v35 = vld [vmem:[%s7520_s1 + $0xeac] ss:$16 sps:$4 sm:$0xff]  }
 0x1c4   :  { %3850 = vmatpush1.bf16.msra.mxu1 %v5537_v41  ;;  %v7230_v52 = vpop.f32.mrf.mxu0  ;;  %3810 = vmatprep.subr.bf16.mxu0 %v5542_v43  ;;  %v5614_v15 = vld [vmem:[%s7520_s1 + $0xd4c] ss:$16 sps:$4 sm:$0xff]   ;;  %v5612_v43 = vld [vmem:[%s7520_s1 + $0xd48] ss:$16 sps:$4 sm:$0xff]  }
 0x1c5   :  { %v7232_v53 = vpop.f32.mrf.mxu1  ;;  %3851 = vmatprep.subr.bf16.mxu1 %v5545_v45  ;;  %v7240_v11 = vadd.f32 %v3555_v48, %v3515_v51  ;;  %3840 = vmatprep.mubr.bf16.mxu0 %v6386_v54  ;;  %v5554_v54 = vld [vmem:[%s7520_s1 + $0xc8c] ss:$16 sps:$4 sm:$0xff]   ;;  %v5615_v45 = vld [vmem:[%s7520_s1 + $0xf48] ss:$16 sps:$4 sm:$0xff]   ;;  %v3517_v51 = vadd.f32 %v7230_v52, %v7039_v38 }
 0x1c6   :  { %3881 = vmatprep.mubr.bf16.mxu1 %v6406_v59  ;;  %v3518_v55 = vpop.f32.mrf.mxu0  ;;  %v5557_v59 = vld [vmem:[%s7520_s1 + $0xe8c] ss:$16 sps:$4 sm:$0xff]  }
 0x1c7   :  { %v3559_v56 = vpop.f32.mrf.mxu1  ;;  %3811 = vmatpush1.bf16.msra.mxu0 %v5540_v60  ;;  %v5617_v41 = vld [vmem:[%s7520_s1 + $0xf4c] ss:$16 sps:$4 sm:$0xff]   ;;  %v5618_v60 = vld [vmem:[%s7520_s1 + $0xd28] ss:$16 sps:$4 sm:$0xff]   ;;  %v3558_v52 = vadd.f32 %v7232_v53, %v3517_v51  ;;  %v552_v53 = vsub.s32 3, %v5838_v42 }
 0x1c8   :  { %3852 = vmatpush1.bf16.msra.mxu1 %v5543_v0  ;;  %v3519_v61 = vpop.f32.mrf.mxu0  ;;  %3812 = vmatprep.subr.bf16.mxu0 %v5548_v50  ;;  %v5620_v47 = vld [vmem:[%s7520_s1 + $0xd2c] ss:$16 sps:$4 sm:$0xff]   ;;  %v5621_v0 = vld [vmem:[%s7520_s1 + $0xf28] ss:$16 sps:$4 sm:$0xff]   ;;  %v548_v56 = vsub.s32 2, %v5838_v42 }
 0x1c9   :  { %v3560_v62 = vpop.f32.mrf.mxu1  ;;  %3853 = vmatprep.subr.bf16.mxu1 %v5551_v35  ;;  %v5623_v48 = vld [vmem:[%s7520_s1 + $0xf2c] ss:$16 sps:$4 sm:$0xff]   ;;  %v5624_v35 = vld [vmem:[%s7520_s1 + $0xd08] ss:$16 sps:$4 sm:$0xff]   ;;  %v5666_v61 = vld [vmem:[%s7521_s2] sm:$0xf] }
 0x1ca   :  { %v5626_v50 = vld [vmem:[%s7520_s1 + $0xd0c] ss:$16 sps:$4 sm:$0xff]   ;;  %v5627_v55 = vld [vmem:[%s7520_s1 + $0xf08] ss:$16 sps:$4 sm:$0xff]   ;;  %v549_v62 = vrot.slane %v5666_v61, %v548_v56  ;;  %v5661_v56 = vld [vmem:[%s7522_s3 + $0x80] sm:$0xff]  }
 0x1cb   :  { %3813 = vmatpush1.bf16.msra.mxu0 %v5546_v57  ;;  %v5629_v38 = vld [vmem:[%s7520_s1 + $0xf0c] ss:$16 sps:$4 sm:$0xff]  }
 0x1cc   :  { %3854 = vmatpush1.bf16.msra.mxu1 %v5549_v58  ;;  %3814 = vmatprep.subr.bf16.mxu0 %v5554_v54  ;;  %v5630_v57 = vld [vmem:[%s7522_s3 + $0x78] sm:$0xff]   ;;  %v3891_v58 = vmax.f32 %v3558_v52, 0.0 }
 0x1cd   :  { %3855 = vmatprep.subr.bf16.mxu1 %v5557_v59  ;;  %v5631_v54 = vld [vmem:[%s7522_s3 + $0x38] sm:$0xff]   ;;  %v5632_v59 = vld [vmem:[%s7522_s3 + $0x70] sm:$0xff]  }
 0x1cf   :  { %3815 = vmatpush1.bf16.msra.mxu0 %v5552_v63  ;;  %v3895_v63 = vpack.c.bf16 %v3891_v58, %v3891_v58 }
 0x1d0   :  { %3856 = vmatpush1.bf16.msra.mxu1 %v5555_v1  ;;  %3816 = vmatprep.subr.bf16.mxu0 %v5560_v2  ;;  %v553_v1 = vrot.slane %v5666_v61, %v552_v53 }
 0x1d1   :  { %3857 = vmatprep.subr.bf16.mxu1 %v5563_v3 }
 0x1d3   :  { %3817 = vmatpush1.bf16.msra.mxu0 %v5558_v4  ;;  %v5633_v4 = vld [vmem:[%s7522_s3 + $0x30] sm:$0xff]  }
 0x1d4   :  { %3858 = vmatpush1.bf16.msra.mxu1 %v5561_v5  ;;  %3818 = vmatprep.subr.bf16.mxu0 %v5566_v7 }
 0x1d5   :  { %3859 = vmatprep.subr.bf16.mxu1 %v5569_v8  ;;  %v5634_v8 = vld [vmem:[%s7522_s3 + $0x68] sm:$0xff]  }
 0x1d7   :  { %3819 = vmatpush1.bf16.msra.mxu0 %v5564_v9 }
 0x1d8   :  { %3860 = vmatpush1.bf16.msra.mxu1 %v5567_v13  ;;  %3820 = vmatprep.subr.bf16.mxu0 %v5572_v18 }
 0x1d9   :  { %3861 = vmatprep.subr.bf16.mxu1 %v5575_v37 }
 0x1db   :  { %3821 = vmatpush1.bf16.msra.mxu0 %v5570_v12  ;;  %v5636_v12 = vld [vmem:[%s7522_s3 + $0x60] sm:$0xff]  }
 0x1dc   :  { %3862 = vmatpush1.bf16.msra.mxu1 %v5573_v14  ;;  %3822 = vmatprep.subr.bf16.mxu0 %v5578_v49 }
 0x1dd   :  { %3863 = vmatprep.subr.bf16.mxu1 %v5581_v46  ;;  %v5646_v46 = vld [vmem:[%s7522_s3 + $0xf8] sm:$0xff]  }
 0x1df   :  { %3823 = vmatpush1.bf16.msra.mxu0 %v5576_v16  ;;  %v5647_v16 = vld [vmem:[%s7522_s3 + $0xb8] sm:$0xff]  }
 0x1e0   :  { %3864 = vmatpush1.bf16.msra.mxu1 %v5579_v17  ;;  %3824 = vmatprep.subr.bf16.mxu0 %v5584_v23  ;;  %v5648_v17 = vld [vmem:[%s7522_s3 + $0xf0] sm:$0xff]   ;;  %v5637_v23 = vld [vmem:[%s7522_s3 + $0x20] sm:$0xff]  }
 0x1e1   :  { %3865 = vmatprep.subr.bf16.mxu1 %v5587_v19  ;;  %v5649_v19 = vld [vmem:[%s7522_s3 + $0xb0] sm:$0xff]  }
 0x1e3   :  { %3825 = vmatpush2.bf16.msra.mxu0 %v5582_v20  ;;  %v5638_v20 = vld [vmem:[%s7522_s3 + $0x58] sm:$0xff]  }
 0x1e4   :  { %3866 = vmatpush2.bf16.msra.mxu1 %v5585_v21  ;;  %3826 = vmatprep.subr.bf16.mxu0 %v5590_v22  ;;  %v5650_v21 = vld [vmem:[%s7522_s3 + $0xe8] sm:$0xff]   ;;  %v5639_v22 = vld [vmem:[%s7522_s3 + $0x18] sm:$0xff]  }
 0x1e5   :  { %3867 = vmatprep.subr.bf16.mxu1 %v5593_v24  ;;  %v5651_v24 = vld [vmem:[%s7522_s3 + $0xa8] sm:$0xff]  }
 0x1e7   :  { %3827 = vmatpush2.bf16.msra.mxu0 %v5588_v25  ;;  %v5640_v25 = vld [vmem:[%s7522_s3 + $0x50] sm:$0xff]  }
 0x1e8   :  { %3868 = vmatpush2.bf16.msra.mxu1 %v5591_v27  ;;  %3828 = vmatprep.subr.bf16.mxu0 %v5596_v28  ;;  %v5652_v27 = vld [vmem:[%s7522_s3 + $0xe0] sm:$0xff]   ;;  %v5641_v28 = vld [vmem:[%s7522_s3 + $0x10] sm:$0xff]  }
 0x1e9   :  { %3869 = vmatprep.subr.bf16.mxu1 %v5599_v29  ;;  %v5653_v29 = vld [vmem:[%s7522_s3 + $0xa0] sm:$0xff]  }
 0x1eb   :  { %3829 = vmatpush2.bf16.msra.mxu0 %v5594_v30  ;;  %v5642_v30 = vld [vmem:[%s7522_s3 + $0x48] sm:$0xff]  }
 0x1ec   :  { %3870 = vmatpush2.bf16.msra.mxu1 %v5597_v31  ;;  %3830 = vmatprep.subr.bf16.mxu0 %v5602_v26  ;;  %v5654_v31 = vld [vmem:[%s7522_s3 + $0xd8] sm:$0xff]   ;;  %v5643_v26 = vld [vmem:[%s7522_s3 + $0x8] sm:$0xff]  }
 0x1ed   :  { %3871 = vmatprep.subr.bf16.mxu1 %v5605_v6  ;;  %v5655_v6 = vld [vmem:[%s7522_s3 + $0x98] sm:$0xff]  }
 0x1ef   :  { %3831 = vmatpush2.bf16.msra.mxu0 %v5600_v33  ;;  %v5644_v33 = vld [vmem:[%s7522_s3 + $0x40] sm:$0xff]  }
 0x1f0   :  { %3872 = vmatpush2.bf16.msra.mxu1 %v5603_v34  ;;  %3832 = vmatprep.subr.bf16.mxu0 %v5608_v36  ;;  %v5645_v34 = vld [vmem:[%s7522_s3] sm:$0xff]   ;;  %v3890_v36 = vmax.f32 %v7240_v11, 0.0  ;;  %v5658_v11 = vld [vmem:[%s7522_s3 + $0xc8] sm:$0xff]  }
 0x1f1   :  { %3873 = vmatprep.subr.bf16.mxu1 %v5611_v32 }
 0x1f2   :  { %v3894_v32 = vpack.c.bf16 %v3890_v36, %v3890_v36 }
 0x1f3   :  { %3833 = vmatpush2.bf16.msra.mxu0 %v5606_v40  ;;  %v5656_v40 = vld [vmem:[%s7522_s3 + $0xd0] sm:$0xff]  }
 0x1f4   :  { %3874 = vmatpush2.bf16.msra.mxu1 %v5609_v44  ;;  %3834 = vmatprep.subr.bf16.mxu0 %v5614_v15  ;;  %v5657_v44 = vld [vmem:[%s7522_s3 + $0x90] sm:$0xff]  }
 0x1f5   :  { %3875 = vmatprep.subr.bf16.mxu1 %v5617_v41 }
 0x1f7   :  { %3835 = vmatpush2.bf16.msra.mxu0 %v5612_v43 }
 0x1f8   :  { %3876 = vmatpush2.bf16.msra.mxu1 %v5615_v45  ;;  %3836 = vmatprep.subr.bf16.mxu0 %v5620_v47 }
 0x1f9   :  { %3877 = vmatprep.subr.bf16.mxu1 %v5623_v48 }
 0x1fb   :  { %3837 = vmatpush2.bf16.msra.mxu0 %v5618_v60  ;;  %v5659_v60 = vld [vmem:[%s7522_s3 + $0x88] sm:$0xff]  }
 0x1fc   :  { %3878 = vmatpush2.bf16.msra.mxu1 %v5621_v0  ;;  %3838 = vmatprep.subr.bf16.mxu0 %v5626_v50 }
 0x1fd   :  { %3879 = vmatprep.subr.bf16.mxu1 %v5629_v38 }
 0x1ff   :  { %3839 = vmatpush2.bf16.msra.mxu0 %v5624_v35 }
 0x200   :  { %3880 = vmatpush2.bf16.msra.mxu1 %v5627_v55  ;;  %4814 = vmatprep.subr.bf16.mxu0 %v5630_v57  ;;  %v5660_v55 = vld [vmem:[%s7522_s3 + $0xc0] sm:$0xff]  }
 0x201   :  { %4836 = vmatprep.subr.bf16.mxu1 %v5646_v46 }
 0x202   :  { %v3596_v2 = vpop.f32.mrf.mxu0  ;;  %3841 = vmatmul.mubr.bf16.vlgmr.msra.gmra.mxu0 %v6588_v10 }
 0x203   :  { %v3637_v42 = vpop.f32.mrf.mxu1  ;;  %3882 = vmatmul.mubr.bf16.vlgmr.msra.gmra.mxu1 %v6603_v39  ;;  %v3597_v3 = vadd.f32 %v3596_v2, %v549_v62  ;;  %4815 = vmatpush3.bf16.msra.mxu0 %v5631_v54  ;;  %v5635_v39 = vld [vmem:[%s7522_s3 + $0x28] sm:$0xff]  }
 0x204   :  { %4193 = vmatprep.mubr.bf16.mxu0 %v3895_v63  ;;  %v3598_v5 = vpop.f32.mrf.mxu0  ;;  %4816 = vmatprep.subr.bf16.mxu0 %v5632_v59 }
 0x205   :  { %v3639_v7 = vpop.f32.mrf.mxu1  ;;  %v3638_v9 = vadd.f32 %v3637_v42, %v3597_v3  ;;  %v3599_v13 = vadd.f32 %v3598_v5, %v553_v1  ;;  %4837 = vmatpush3.bf16.msra.mxu1 %v5647_v16 }
 0x206   :  { %v3600_v18 = vpop.f32.mrf.mxu0  ;;  %4838 = vmatprep.subr.bf16.mxu1 %v5648_v17 }
 0x207   :  { %v3641_v10 = vpop.f32.mrf.mxu1  ;;  %v3640_v37 = vadd.f32 %v3639_v7, %v3599_v13  ;;  %4817 = vmatpush3.bf16.msra.mxu0 %v5633_v4 }
 0x208   :  { %v3601_v14 = vpop.f32.mrf.mxu0  ;;  %4818 = vmatprep.subr.bf16.mxu0 %v5634_v8 }
 0x209   :  { %v3642_v49 = vpop.f32.mrf.mxu1  ;;  %4839 = vmatpush3.bf16.msra.mxu1 %v5649_v19 }
 0x20a   :  { %4840 = vmatprep.subr.bf16.mxu1 %v5650_v21 }
 0x20b   :  { %4819 = vmatpush3.bf16.msra.mxu0 %v5635_v39 }
 0x20c   :  { %4820 = vmatprep.subr.bf16.mxu0 %v5636_v12 }
 0x20d   :  { %4841 = vmatpush3.bf16.msra.mxu1 %v5651_v24  ;;  %v4781_v24 = vld [vmem:[%s7523_s4] ss:$0 sm:$0xff]  ;;  %s5690_s4 = smov [#allocation2]  }
 0x20e   :  { %4842 = vmatprep.subr.bf16.mxu1 %v5652_v27  ;;  %s4261_s27 = sshll.u32 %s5690_s4, 4  ;;  %s4262_s27 = int_to_ptr.vmem [resolvable:$true] %s4261_s27 }
 0x20f   :  { %4821 = vmatpush3.bf16.msra.mxu0 %v5637_v23  ;;  %s5667_s28 = scalar_lea.vmem %s4262_s27, 32  ;;  %p5672_p1 = scmp.lt.s32.totalorder %s4262_s27, %s4262_s27 }
 0x210   :  { %4822 = vmatprep.subr.bf16.mxu0 %v5638_v20  ;;  %p5668_p0 = scmp.ne.s32.totalorder %s4262_s27, %s5667_s28  ;;  %p5673_p2 = scmp.lt.s32.totalorder %s5667_s28, %s5667_s28 }
 0x211   :  { %4843 = vmatpush3.bf16.msra.mxu1 %v5653_v29 }
 0x212   :  { %4844 = vmatprep.subr.bf16.mxu1 %v5654_v31  ;;  %p5674_p3 = por %p5673_p2, %p5672_p1 }
 0x213   :  { %4823 = vmatpush3.bf16.msra.mxu0 %v5639_v22 }
 0x214   :  { %4824 = vmatprep.subr.bf16.mxu0 %v5640_v25  ;;  %p5675_p4 = pnand %p5674_p3, %p5668_p0 }
 0x215   :  { %4845 = vmatpush3.bf16.msra.mxu1 %v5655_v6 }
 0x216   :  { %4846 = vmatprep.subr.bf16.mxu1 %v5656_v40 }
 0x217   :  { %4825 = vmatpush3.bf16.msra.mxu0 %v5641_v28 }
 0x218   :  { %4826 = vmatprep.subr.bf16.mxu0 %v5642_v30 }
 0x219   :  { %4847 = vmatpush3.bf16.msra.mxu1 %v5657_v44 }
 0x21a   :  { %4848 = vmatprep.subr.bf16.mxu1 %v5658_v11 }
 0x21b   :  { %4827 = vmatpush3.bf16.msra.mxu0 %v5643_v26 }
 0x21c   :  { %4828 = vmatprep.subr.bf16.mxu0 %v5644_v33 }
 0x21d   :  { %4849 = vmatpush3.bf16.msra.mxu1 %v5659_v60 }
 0x21e   :  { %4850 = vmatprep.subr.bf16.mxu1 %v5660_v55 }
 0x21f   :  { %4829 = vmatpush3.bf16.msra.mxu0 %v5645_v34 }
 0x221   :  { %4851 = vmatpush3.bf16.msra.mxu1 %v5661_v56 }
 0x222   :  { %4194 = vmatmul.mubr.bf16.vlgmr.msra.gmra.mxu0 %v3894_v32 }
 0x242   :  { %v3678_v15 = vpop.f32.mrf.mxu0 }
 0x243   :  { %v3719_v41 = vpop.f32.mrf.mxu1  ;;  %v3679_v43 = vadd.f32 %v3678_v15, %v3638_v9 }
 0x244   :  { %v3680_v45 = vpop.f32.mrf.mxu0 }
 0x245   :  { %v3721_v47 = vpop.f32.mrf.mxu1  ;;  %v3720_v48 = vadd.f32 %v3719_v41, %v3679_v43  ;;  %v3681_v51 = vadd.f32 %v3680_v45, %v3640_v37 }
 0x246   :  { %v3682_v0 = vpop.f32.mrf.mxu0 }
 0x247   :  { %v3723_v50 = vpop.f32.mrf.mxu1  ;;  %v3722_v38 = vadd.f32 %v3721_v47, %v3681_v51 }
 0x248   :  { %v3683_v52 = vpop.f32.mrf.mxu0 }
 0x249   :  { %v3724_v35 = vpop.f32.mrf.mxu1 }
 0x282   :  { %v3760_v57 = vpop.f32.mrf.mxu0 }
 0x283   :  { %v3801_v58 = vpop.f32.mrf.mxu1  ;;  %v3761_v53 = vadd.f32 %v3760_v57, %v3720_v48 }
 0x284   :  { %v3762_v61 = vpop.f32.mrf.mxu0 }
 0x285   :  { %v3803_v62 = vpop.f32.mrf.mxu1  ;;  %v3802_v54 = vadd.f32 %v3801_v58, %v3761_v53  ;;  %v3763_v42 = vadd.f32 %v3762_v61, %v3722_v38 }
 0x286   :  { %v3764_v59 = vpop.f32.mrf.mxu0 }
 0x287   :  { %v3805_v63 = vpop.f32.mrf.mxu1  ;;  %v3804_v5 = vadd.f32 %v3803_v62, %v3763_v42 }
 0x288   :  { %v3765_v1 = vpop.f32.mrf.mxu0 }
 0x289   :  { %v3806_v2 = vpop.f32.mrf.mxu1 }
 0x2c2   :  { %v3842_v3 = vpop.f32.mrf.mxu0 }
 0x2c3   :  { %v3883_v4 = vpop.f32.mrf.mxu1  ;;  %v3843_v7 = vadd.f32 %v3842_v3, %v3802_v54 }
 0x2c4   :  { %v3844_v8 = vpop.f32.mrf.mxu0 }
 0x2c5   :  { %v3885_v9 = vpop.f32.mrf.mxu1  ;;  %v3884_v13 = vadd.f32 %v3883_v4, %v3843_v7  ;;  %v3845_v18 = vadd.f32 %v3844_v8, %v3804_v5 }
 0x2c6   :  { %v3846_v10 = vpop.f32.mrf.mxu0 }
 0x2c7   :  { %v3887_v37 = vpop.f32.mrf.mxu1  ;;  %v3886_v39 = vadd.f32 %v3885_v9, %v3845_v18  ;;  %v3892_v12 = vmax.f32 %v3884_v13, 0.0 }
 0x2c8   :  { %v3847_v14 = vpop.f32.mrf.mxu0 }
 0x2c9   :  { %v3888_v49 = vpop.f32.mrf.mxu1  ;;  %v3893_v46 = vmax.f32 %v3886_v39, 0.0  ;;  %v3896_v17 = vpack.c.bf16 %v3892_v12, %v3892_v12 }
 0x2cb   :  { %v3897_v16 = vpack.c.bf16 %v3893_v46, %v3893_v46 }
 0x2cd   :  { %4233 = vmatprep.mubr.bf16.mxu1 %v3897_v16 }
 0x2ce   :  { %4234 = vmatmul.mubr.bf16.vlgmr.msra.gmra.mxu1 %v3896_v17 }
 0x2e2   :  { %v4830_v23 = vpop.f32.mrf.mxu0 }
 0x2e4   :  { %v4831_v19 = vpop.f32.mrf.mxu0 }
 0x2e5   :  { %v4832_v20 = vadd.f32 %v4831_v19, %v4830_v23 }
 0x2e6   :  { %v4833_v21 = vpop.f32.mrf.mxu0 }
 0x2e7   :  { %v4196_v28 = vadd.f32 %v4832_v20, %v4781_v24 }
 0x2e8   :  { %v4834_v22 = vpop.f32.mrf.mxu0 }
 0x38e   :  { %v4852_v25 = vpop.f32.mrf.mxu1 }
 0x390   :  { %v4853_v27 = vpop.f32.mrf.mxu1 }
 0x391   :  { %v4854_v29 = vadd.f32 %v4853_v27, %v4852_v25 }
 0x392   :  { %v4855_v30 = vpop.f32.mrf.mxu1 }
 0x393   :  { %v4236_v31 = vadd.f32 %v4854_v29, %v4196_v28 }
 0x394   :  { %v4856_v26 = vpop.f32.mrf.mxu1 }
 0x395   :  { %v4242_v6 = vsel %vm4241_vm0, %v4236_v31, -inf }
 0x396   :  { %4243 = vmax.xlane.f32.xlu0 %v4242_v6 }
 0x41f   :  { %v4244_v33 = vpop.xlane.xlu0 %4243 }
 0x420   :  { %v4245_v34 = vsub.f32 %v4236_v31, %v4244_v33 }
 0x422   :  { %v4246_v36 = vmul.f32 1.442695, %v4245_v34 }
 0x424   :  { %5662 = vpow2.f32 %v4246_v36 }
 0x431   :  { %v5663_v32 = vpop.eup %5662 }
 0x432   :  { %v4248_v40 = vsel %vm4241_vm0, %v5663_v32, 0.0 }
 0x433   :  { %4249 = vadd.xlane.f32.xlu0 %v4248_v40 }
 0x4bc   :  { %v4250_v44 = vpop.xlane.xlu0 %4249 }
 0x4bd   :  { %5664 = vlog2.f32 %v4250_v44 }
 0x4ca   :  { %v5665_v15 = vpop.eup %5664 }
 0x4cb   :  { %v4252_v41 = vmul.f32 0.6931472, %v5665_v15 }
 0x4cd   :  { %v4253_v43 = vsub.f32 %v4245_v34, %v4252_v41 }
 0x4cf   :  { %4254 = vst [vmem:[#allocation2] sm:$0x3] %v4253_v43 }
 0x4d0   :  { %5678 = shalt.err (!%p5675_p4)
}
 0x4d1   :  { %4264 = dma.vmem_to_hbm [thread:$0]  %s4262_s27, 32, %s7524_s5, [#allocation3]  }
 0x4d2   :  { %5687 = dma.done.wait [#allocation3], 32  }
 0x4d3   :  { %5688 = vsyncadd [#allocation3], 4294967264 }
 0x4d4   :  { %4268 = vsyncpa [#allocation3], 1 }

</bundles_post_ra>
